<compile_context>
chip_gen: v7x
topology: tpu7x:2x2x1
jax: 0.10.0
libtpu: 0.0.40
codegen_flags: <defaults>
</compile_context>

<pallas_src>
import jax
import jax.numpy as jnp
import numpy as np
from jax import lax
from jax.experimental import pallas as pl
from jax.experimental.pallas import tpu as pltpu

EPS = 1e-5
IN_DIM, OUT_DIM = 21, 4
HID, HID_PAD = 200, 256      # hidden width padded to a full 2x128-lane tile
MID, MID_PAD = 100, 128      # bottleneck width padded to 128 lanes


def _elu(v):
    # ELU(alpha=1).  Negative branch uses a numerically stable expm1 built
    # only from exp/tanh (guaranteed Mosaic lowerings):
    #   expm1(v) = tanh(v/2) * (exp(v) + 1)
    # The min() keeps the discarded branch free of inf for large positive v.
    vn = jnp.minimum(v, 0.0)
    return jnp.where(v > 0, v, jnp.tanh(0.5 * vn) * (jnp.exp(vn) + 1.0))


def _relu(v):
    return jnp.maximum(v, 0.0)


# ----------------------------- Pallas kernel -----------------------------
def mynet_kernel(x_ref, w1_ref, b1_ref,
                 A1_ref, a1_ref, A2_ref, a2_ref, A3_ref, a3_ref,
                 S_ref, wr_ref, br_ref, out_ref):
    f32, bf16 = jnp.float32, jnp.bfloat16

    def dot(lhs, rhs):
        # bf16 x bf16 products, f32 accumulation on the MXU.
        return jnp.dot(lhs.astype(bf16), rhs, preferred_element_type=f32)

    # hidden1 + bn0 (folded) + ELU
    h = _elu(dot(x_ref[...], w1_ref[...]) + b1_ref[...])

    # three residual blocks; post-residual BN pre-folded into fc3 / S scale
    for k in range(3):
        res = h
        t = _relu(dot(h, A1_ref[k]) + a1_ref[k])     # fc1 + bn1 (folded) + ReLU
        t = _relu(dot(t, A2_ref[k]) + a2_ref[k])     # fc2 + bn2 (folded) + ReLU
        t = dot(t, A3_ref[k]) + a3_ref[k]            # fc3 (+ post-BN scale/shift)
        h = _elu(t + res * S_ref[k])                 # residual + BN + ELU

    # regression head
    out_ref[...] = dot(h, wr_ref[...]) + br_ref[...]


def mynet_forward(x, params, *, tm=128):
    B = x.shape[0]
    assert B % tm == 0, "batch must be a multiple of the batch tile"
    weights = tuple(params)                      # 11 arrays

    def resident(arr):                           # same block every grid step
        return pl.BlockSpec(arr.shape, lambda i, nd=arr.ndim: (0,) * nd)

    flops = 2 * B * (IN_DIM * HID_PAD
                     + 3 * (HID_PAD * MID_PAD + MID_PAD * HID_PAD
                            + HID_PAD * HID_PAD)
                     + HID_PAD * OUT_DIM)
    bytes_accessed = (x.size * x.dtype.itemsize
                      + B * OUT_DIM * 4
                      + sum(int(a.size) * a.dtype.itemsize for a in weights))

    return pl.pallas_call(
        mynet_kernel,
        out_shape=jax.ShapeDtypeStruct((B, OUT_DIM), jnp.float32),
        grid_spec=pltpu.PrefetchScalarGridSpec(
            num_scalar_prefetch=0,
            grid=(B // tm,),
            in_specs=[pl.BlockSpec((tm, IN_DIM), lambda i: (i, 0))]
                     + [resident(a) for a in weights],
            out_specs=pl.BlockSpec((tm, OUT_DIM), lambda i: (i, 0)),
        ),
        compiler_params=pltpu.CompilerParams(
            dimension_semantics=("parallel",)),
        cost_estimate=pl.CostEstimate(
            flops=flops,
            transcendentals=8 * B * HID_PAD,     # exp+tanh for 4 ELU layers
            bytes_accessed=bytes_accessed),
    )(x, *weights)


# ----------------------------- parameter setup -----------------------------
def _linear_init(key, fan_in, fan_out):
    # PyTorch-style uniform(-1/sqrt(fan_in), 1/sqrt(fan_in)); weight stored
    # as (in, out) so the kernel computes x @ W + b.
    kw, kb = jax.random.split(key)
    bound = 1.0 / np.sqrt(fan_in)
    w = jax.random.uniform(kw, (fan_in, fan_out), jnp.float32, -bound, bound)
    b = jax.random.uniform(kb, (fan_out,), jnp.float32, -bound, bound)
    return w, b


def _bn_init(key, dim):
    # Non-trivial eval-mode BatchNorm stats so the folding path is exercised.
    kg, kb, km, kv = jax.random.split(key, 4)
    gamma = jax.random.uniform(kg, (dim,), jnp.float32, 0.5, 1.5)
    beta = 0.1 * jax.random.normal(kb, (dim,), jnp.float32)
    mean = 0.1 * jax.random.normal(km, (dim,), jnp.float32)
    var = jax.random.uniform(kv, (dim,), jnp.float32, 0.5, 1.5)
    return gamma, beta, mean, var


def make_raw_params(key):
    """Raw PyTorch-layout params of MyNet (weights, biases, BN stats)."""
    keys = iter(jax.random.split(key, 32))
    raw = {
        "hidden1": _linear_init(next(keys), IN_DIM, HID),
        "bn0": _bn_init(next(keys), HID),
        "blocks": [],
        "bn_post": [],
        "regression": _linear_init(next(keys), HID, OUT_DIM),
    }
    for _ in range(3):
        raw["blocks"].append({
            "fc1": _linear_init(next(keys), HID, MID),
            "bn1": _bn_init(next(keys), MID),
            "fc2": _linear_init(next(keys), MID, HID),
            "bn2": _bn_init(next(keys), HID),
            "fc3": _linear_init(next(keys), HID, HID),
        })
        raw["bn_post"].append(_bn_init(next(keys), HID))
    return raw


def _fold_bn(w, b, bn):
    g, bt, m, v = bn
    scale = g * lax.rsqrt(v + EPS)
    return w * scale[None, :], (b - m) * scale + bt


def _pad2(w, rows, cols):
    return jnp.zeros((rows, cols), w.dtype).at[: w.shape[0], : w.shape[1]].set(w)


def _pad1(b, n):
    return jnp.zeros((n,), b.dtype).at[: b.shape[0]].set(b)


def make_kernel_params(raw, weight_dtype=jnp.bfloat16):
    """Fold BNs, fold post-residual BN into fc3, zero-pad to 256/128 lanes,
    and cast the weight matrices to `weight_dtype` (biases/scales stay f32)."""
    # hidden1 + bn0
    w1, b1 = _fold_bn(*raw["hidden1"], raw["bn0"])
    w1, b1 = _pad2(w1, IN_DIM, HID_PAD), _pad1(b1, HID_PAD)

    A1s, a1s, A2s, a2s, A3s, a3s, Ss = [], [], [], [], [], [], []
    for blk, bn_post in zip(raw["blocks"], raw["bn_post"]):
        wa, ba = _fold_bn(*blk["fc1"], blk["bn1"])        # fc1 + bn1
        wb, bb = _fold_bn(*blk["fc2"], blk["bn2"])        # fc2 + bn2
        wc, bc = blk["fc3"]
        g, bt, m, v = bn_post                             # post-residual BN
        s = g * lax.rsqrt(v + EPS)
        t = bt - m * s
        wc = wc * s[None, :]                              # A3' = A3 * s
        bc = bc * s + t                                   # a3' = a3 * s + t
        A1s.append(_pad2(wa, HID_PAD, MID_PAD)); a1s.append(_pad1(ba, MID_PAD))
        A2s.append(_pad2(wb, MID_PAD, HID_PAD)); a2s.append(_pad1(bb, HID_PAD))
        A3s.append(_pad2(wc, HID_PAD, HID_PAD)); a3s.append(_pad1(bc, HID_PAD))
        Ss.append(_pad1(s, HID_PAD))

    wr, br = raw["regression"]
    wr = _pad2(wr, HID_PAD, OUT_DIM)

    wd = weight_dtype
    return (w1.astype(wd), b1[None, :],
            jnp.stack(A1s).astype(wd), jnp.stack(a1s)[:, None, :],
            jnp.stack(A2s).astype(wd), jnp.stack(a2s)[:, None, :],
            jnp.stack(A3s).astype(wd), jnp.stack(a3s)[:, None, :],
            jnp.stack(Ss)[:, None, :],
            wr.astype(wd), br[None, :])


# ----------------------------- pure-JAX references -----------------------------
def mynet_reference_f32(x, raw):
    """Faithful f32 forward of the PyTorch MyNet (eval-mode BatchNorm)."""
    hp = lax.Precision.HIGHEST

    def lin(h, wb):
        w, b = wb
        return jnp.dot(h, w, precision=hp) + b

    def bn(h, p):
        g, bt, m, v = p
        return (h - m) * (g * lax.rsqrt(v + EPS)) + bt

    h = _elu(bn(lin(x, raw["hidden1"]), raw["bn0"]))
    for blk, bn_post in zip(raw["blocks"], raw["bn_post"]):
        res = h
        t = _relu(bn(lin(h, blk["fc1"]), blk["bn1"]))
        t = _relu(bn(lin(t, blk["fc2"]), blk["bn2"]))
        t = lin(t, blk["fc3"])
        h = _elu(bn(t + res, bn_post))
    return lin(h, raw["regression"])


def folded_forward(x, params, *, cast_lhs):
    """Pure-JAX mirror of the exact kernel math (folded + padded params)."""
    (w1, b1, A1, a1, A2, a2, A3, a3, S, wr, br) = params

    def dot(lhs, rhs):
        if cast_lhs:
            return jnp.dot(lhs.astype(jnp.bfloat16), rhs,
                           preferred_element_type=jnp.float32)
        return jnp.dot(lhs, rhs, precision=lax.Precision.HIGHEST)

    h = _elu(dot(x, w1) + b1)
    for k in range(3):
        res = h
        t = _relu(dot(h, A1[k]) + a1[k])
        t = _relu(dot(t, A2[k]) + a2[k])
        t = dot(t, A3[k]) + a3[k]
        h = _elu(t + res * S[k])
    return dot(h, wr) + br


# ----------------------------- main -----------------------------
if __name__ == "__main__":
    key = jax.random.PRNGKey(0)
    k_x, k_p = jax.random.split(key)

    B, TM = 256, 128
    x = jax.random.normal(k_x, (B, IN_DIM), jnp.float32)
    raw = make_raw_params(k_p)

    # (1) Host check: BN folding + zero padding preserve MyNet semantics (f32).
    params_f32 = make_kernel_params(raw, weight_dtype=jnp.float32)
    np.testing.assert_allclose(
        np.asarray(folded_forward(x, params_f32, cast_lhs=False)),
        np.asarray(mynet_reference_f32(x, raw)),
        rtol=1e-4, atol=1e-4)

    # (2) Pallas kernel (bf16 weights, f32 accumulation) vs matched reference.
    params = make_kernel_params(raw, weight_dtype=jnp.bfloat16)
    out = jax.block_until_ready(mynet_forward(x, params, tm=TM))
    ref = folded_forward(x, params, cast_lhs=True)
    np.testing.assert_allclose(np.asarray(out), np.asarray(ref),
                               rtol=5e-3, atol=5e-3)
    assert out.shape == (B, OUT_DIM)

    print("KERNEL_OK")
</pallas_src>

<mosaic_0001>
module attributes {stable_mosaic.version = 11 : i64} {
  func.func @mynet_kernel(%arg0: i32, %arg1: memref<128x21xf32, #tpu.memory_space<vmem>>, %arg2: memref<21x256xbf16, #tpu.memory_space<vmem>>, %arg3: memref<1x256xf32, #tpu.memory_space<vmem>>, %arg4: memref<3x256x128xbf16, #tpu.memory_space<vmem>>, %arg5: memref<3x1x128xf32, #tpu.memory_space<vmem>>, %arg6: memref<3x128x256xbf16, #tpu.memory_space<vmem>>, %arg7: memref<3x1x256xf32, #tpu.memory_space<vmem>>, %arg8: memref<3x256x256xbf16, #tpu.memory_space<vmem>>, %arg9: memref<3x1x256xf32, #tpu.memory_space<vmem>>, %arg10: memref<3x1x256xf32, #tpu.memory_space<vmem>>, %arg11: memref<256x4xbf16, #tpu.memory_space<vmem>>, %arg12: memref<1x4xf32, #tpu.memory_space<vmem>>, %arg13: memref<128x4xf32, #tpu.memory_space<vmem>>) attributes {dimension_semantics = [#tpu.dimension_semantics<parallel>], iteration_bounds = array<i64: 2>, scalar_prefetch = 0 : i64, scratch_operands = 0 : i64, tpu.core_type = #tpu.core_type<tc>, window_params = [{transform_indices = @transform_0, window_bounds = array<i64: 128, 21>}, {pipeline_mode = #tpu.pipeline_mode<synchronous>, transform_indices = @transform_1, window_bounds = array<i64: 21, 256>}, {pipeline_mode = #tpu.pipeline_mode<synchronous>, transform_indices = @transform_2, window_bounds = array<i64: 1, 256>}, {pipeline_mode = #tpu.pipeline_mode<synchronous>, transform_indices = @transform_3, window_bounds = array<i64: 3, 256, 128>}, {pipeline_mode = #tpu.pipeline_mode<synchronous>, transform_indices = @transform_4, window_bounds = array<i64: 3, 1, 128>}, {pipeline_mode = #tpu.pipeline_mode<synchronous>, transform_indices = @transform_5, window_bounds = array<i64: 3, 128, 256>}, {pipeline_mode = #tpu.pipeline_mode<synchronous>, transform_indices = @transform_6, window_bounds = array<i64: 3, 1, 256>}, {pipeline_mode = #tpu.pipeline_mode<synchronous>, transform_indices = @transform_7, window_bounds = array<i64: 3, 256, 256>}, {pipeline_mode = #tpu.pipeline_mode<synchronous>, transform_indices = @transform_8, window_bounds = array<i64: 3, 1, 256>}, {pipeline_mode = #tpu.pipeline_mode<synchronous>, transform_indices = @transform_9, window_bounds = array<i64: 3, 1, 256>}, {pipeline_mode = #tpu.pipeline_mode<synchronous>, transform_indices = @transform_10, window_bounds = array<i64: 256, 4>}, {pipeline_mode = #tpu.pipeline_mode<synchronous>, transform_indices = @transform_11, window_bounds = array<i64: 1, 4>}, {transform_indices = @transform_12, window_bounds = array<i64: 128, 4>}]} {
    %c0 = arith.constant 0 : index
    %c0_0 = arith.constant 0 : index
    %0 = vector.load %arg1[%c0, %c0_0] : memref<128x21xf32, #tpu.memory_space<vmem>>, vector<128x21xf32>
    %c0_1 = arith.constant 0 : index
    %c0_2 = arith.constant 0 : index
    %1 = vector.load %arg2[%c0_1, %c0_2] : memref<21x256xbf16, #tpu.memory_space<vmem>>, vector<21x256xbf16>
    %2 = arith.truncf %0 : vector<128x21xf32> to vector<128x21xbf16>
    %cst = arith.constant dense<0.000000e+00> : vector<128x256xf32>
    %3 = tpu.matmul %2, %1, %cst {dimension_numbers = #tpu.dot_dimension_numbers<[1], [0], [0], [1], [0, 0, 1, 1], [], []>} : vector<128x21xbf16>, vector<21x256xbf16>, vector<128x256xf32> -> vector<128x256xf32>
    %c0_3 = arith.constant 0 : index
    %c0_4 = arith.constant 0 : index
    %4 = vector.load %arg3[%c0_3, %c0_4] : memref<1x256xf32, #tpu.memory_space<vmem>>, vector<1x256xf32>
    %5 = vector.broadcast %4 : vector<1x256xf32> to vector<128x256xf32>
    %6 = arith.addf %3, %5 : vector<128x256xf32>
    %cst_5 = arith.constant 0.000000e+00 : f32
    %7 = vector.broadcast %cst_5 : f32 to vector<128x256xf32>
    %8 = arith.minimumf %6, %7 : vector<128x256xf32>
    %cst_6 = arith.constant 0.000000e+00 : f32
    %9 = vector.broadcast %cst_6 : f32 to vector<128x256xf32>
    %10 = arith.cmpf ogt, %6, %9 : vector<128x256xf32>
    %cst_7 = arith.constant 5.000000e-01 : f32
    %11 = vector.broadcast %cst_7 : f32 to vector<128x256xf32>
    %12 = arith.mulf %11, %8 : vector<128x256xf32>
    %13 = math.tanh %12 : vector<128x256xf32>
    %14 = math.exp %8 : vector<128x256xf32>
    %cst_8 = arith.constant 1.000000e+00 : f32
    %15 = vector.broadcast %cst_8 : f32 to vector<128x256xf32>
    %16 = arith.addf %14, %15 : vector<128x256xf32>
    %17 = arith.mulf %13, %16 : vector<128x256xf32>
    %18 = arith.select %10, %6, %17 : vector<128x256xi1>, vector<128x256xf32>
    %c0_9 = arith.constant 0 : index
    %c0_10 = arith.constant 0 : index
    %c0_11 = arith.constant 0 : index
    %19 = vector.load %arg4[%c0_9, %c0_10, %c0_11] : memref<3x256x128xbf16, #tpu.memory_space<vmem>>, vector<1x256x128xbf16>
    %20 = vector.shape_cast %19 : vector<1x256x128xbf16> to vector<256x128xbf16>
    %21 = arith.truncf %18 : vector<128x256xf32> to vector<128x256xbf16>
    %cst_12 = arith.constant dense<0.000000e+00> : vector<128x128xf32>
    %22 = tpu.matmul %21, %20, %cst_12 {dimension_numbers = #tpu.dot_dimension_numbers<[1], [0], [0], [1], [0, 0, 1, 1], [], []>} : vector<128x256xbf16>, vector<256x128xbf16>, vector<128x128xf32> -> vector<128x128xf32>
    %c0_13 = arith.constant 0 : index
    %c0_14 = arith.constant 0 : index
    %c0_15 = arith.constant 0 : index
    %23 = vector.load %arg5[%c0_13, %c0_14, %c0_15] : memref<3x1x128xf32, #tpu.memory_space<vmem>>, vector<1x1x128xf32>
    %24 = vector.shape_cast %23 : vector<1x1x128xf32> to vector<1x128xf32>
    %25 = vector.broadcast %24 : vector<1x128xf32> to vector<128x128xf32>
    %26 = arith.addf %22, %25 : vector<128x128xf32>
    %cst_16 = arith.constant 0.000000e+00 : f32
    %27 = vector.broadcast %cst_16 : f32 to vector<128x128xf32>
    %28 = arith.maximumf %26, %27 : vector<128x128xf32>
    %c0_17 = arith.constant 0 : index
    %c0_18 = arith.constant 0 : index
    %c0_19 = arith.constant 0 : index
    %29 = vector.load %arg6[%c0_17, %c0_18, %c0_19] : memref<3x128x256xbf16, #tpu.memory_space<vmem>>, vector<1x128x256xbf16>
    %30 = vector.shape_cast %29 : vector<1x128x256xbf16> to vector<128x256xbf16>
    %31 = arith.truncf %28 : vector<128x128xf32> to vector<128x128xbf16>
    %cst_20 = arith.constant dense<0.000000e+00> : vector<128x256xf32>
    %32 = tpu.matmul %31, %30, %cst_20 {dimension_numbers = #tpu.dot_dimension_numbers<[1], [0], [0], [1], [0, 0, 1, 1], [], []>} : vector<128x128xbf16>, vector<128x256xbf16>, vector<128x256xf32> -> vector<128x256xf32>
    %c0_21 = arith.constant 0 : index
    %c0_22 = arith.constant 0 : index
    %c0_23 = arith.constant 0 : index
    %33 = vector.load %arg7[%c0_21, %c0_22, %c0_23] : memref<3x1x256xf32, #tpu.memory_space<vmem>>, vector<1x1x256xf32>
    %34 = vector.shape_cast %33 : vector<1x1x256xf32> to vector<1x256xf32>
    %35 = vector.broadcast %34 : vector<1x256xf32> to vector<128x256xf32>
    %36 = arith.addf %32, %35 : vector<128x256xf32>
    %cst_24 = arith.constant 0.000000e+00 : f32
    %37 = vector.broadcast %cst_24 : f32 to vector<128x256xf32>
    %38 = arith.maximumf %36, %37 : vector<128x256xf32>
    %c0_25 = arith.constant 0 : index
    %c0_26 = arith.constant 0 : index
    %c0_27 = arith.constant 0 : index
    %39 = vector.load %arg8[%c0_25, %c0_26, %c0_27] : memref<3x256x256xbf16, #tpu.memory_space<vmem>>, vector<1x256x256xbf16>
    %40 = vector.shape_cast %39 : vector<1x256x256xbf16> to vector<256x256xbf16>
    %41 = arith.truncf %38 : vector<128x256xf32> to vector<128x256xbf16>
    %cst_28 = arith.constant dense<0.000000e+00> : vector<128x256xf32>
    %42 = tpu.matmul %41, %40, %cst_28 {dimension_numbers = #tpu.dot_dimension_numbers<[1], [0], [0], [1], [0, 0, 1, 1], [], []>} : vector<128x256xbf16>, vector<256x256xbf16>, vector<128x256xf32> -> vector<128x256xf32>
    %c0_29 = arith.constant 0 : index
    %c0_30 = arith.constant 0 : index
    %c0_31 = arith.constant 0 : index
    %43 = vector.load %arg9[%c0_29, %c0_30, %c0_31] : memref<3x1x256xf32, #tpu.memory_space<vmem>>, vector<1x1x256xf32>
    %44 = vector.shape_cast %43 : vector<1x1x256xf32> to vector<1x256xf32>
    %45 = vector.broadcast %44 : vector<1x256xf32> to vector<128x256xf32>
    %46 = arith.addf %42, %45 : vector<128x256xf32>
    %c0_32 = arith.constant 0 : index
    %c0_33 = arith.constant 0 : index
    %c0_34 = arith.constant 0 : index
    %47 = vector.load %arg10[%c0_32, %c0_33, %c0_34] : memref<3x1x256xf32, #tpu.memory_space<vmem>>, vector<1x1x256xf32>
    %48 = vector.shape_cast %47 : vector<1x1x256xf32> to vector<1x256xf32>
    %49 = vector.broadcast %48 : vector<1x256xf32> to vector<128x256xf32>
    %50 = arith.mulf %18, %49 : vector<128x256xf32>
    %51 = arith.addf %46, %50 : vector<128x256xf32>
    %cst_35 = arith.constant 0.000000e+00 : f32
    %52 = vector.broadcast %cst_35 : f32 to vector<128x256xf32>
    %53 = arith.minimumf %51, %52 : vector<128x256xf32>
    %cst_36 = arith.constant 0.000000e+00 : f32
    %54 = vector.broadcast %cst_36 : f32 to vector<128x256xf32>
    %55 = arith.cmpf ogt, %51, %54 : vector<128x256xf32>
    %cst_37 = arith.constant 5.000000e-01 : f32
    %56 = vector.broadcast %cst_37 : f32 to vector<128x256xf32>
    %57 = arith.mulf %56, %53 : vector<128x256xf32>
    %58 = math.tanh %57 : vector<128x256xf32>
    %59 = math.exp %53 : vector<128x256xf32>
    %cst_38 = arith.constant 1.000000e+00 : f32
    %60 = vector.broadcast %cst_38 : f32 to vector<128x256xf32>
    %61 = arith.addf %59, %60 : vector<128x256xf32>
    %62 = arith.mulf %58, %61 : vector<128x256xf32>
    %63 = arith.select %55, %51, %62 : vector<128x256xi1>, vector<128x256xf32>
    %c1 = arith.constant 1 : index
    %c0_39 = arith.constant 0 : index
    %c0_40 = arith.constant 0 : index
    %64 = vector.load %arg4[%c1, %c0_39, %c0_40] : memref<3x256x128xbf16, #tpu.memory_space<vmem>>, vector<1x256x128xbf16>
    %65 = vector.shape_cast %64 : vector<1x256x128xbf16> to vector<256x128xbf16>
    %66 = arith.truncf %63 : vector<128x256xf32> to vector<128x256xbf16>
    %cst_41 = arith.constant dense<0.000000e+00> : vector<128x128xf32>
    %67 = tpu.matmul %66, %65, %cst_41 {dimension_numbers = #tpu.dot_dimension_numbers<[1], [0], [0], [1], [0, 0, 1, 1], [], []>} : vector<128x256xbf16>, vector<256x128xbf16>, vector<128x128xf32> -> vector<128x128xf32>
    %c1_42 = arith.constant 1 : index
    %c0_43 = arith.constant 0 : index
    %c0_44 = arith.constant 0 : index
    %68 = vector.load %arg5[%c1_42, %c0_43, %c0_44] : memref<3x1x128xf32, #tpu.memory_space<vmem>>, vector<1x1x128xf32>
    %69 = vector.shape_cast %68 : vector<1x1x128xf32> to vector<1x128xf32>
    %70 = vector.broadcast %69 : vector<1x128xf32> to vector<128x128xf32>
    %71 = arith.addf %67, %70 : vector<128x128xf32>
    %cst_45 = arith.constant 0.000000e+00 : f32
    %72 = vector.broadcast %cst_45 : f32 to vector<128x128xf32>
    %73 = arith.maximumf %71, %72 : vector<128x128xf32>
    %c1_46 = arith.constant 1 : index
    %c0_47 = arith.constant 0 : index
    %c0_48 = arith.constant 0 : index
    %74 = vector.load %arg6[%c1_46, %c0_47, %c0_48] : memref<3x128x256xbf16, #tpu.memory_space<vmem>>, vector<1x128x256xbf16>
    %75 = vector.shape_cast %74 : vector<1x128x256xbf16> to vector<128x256xbf16>
    %76 = arith.truncf %73 : vector<128x128xf32> to vector<128x128xbf16>
    %cst_49 = arith.constant dense<0.000000e+00> : vector<128x256xf32>
    %77 = tpu.matmul %76, %75, %cst_49 {dimension_numbers = #tpu.dot_dimension_numbers<[1], [0], [0], [1], [0, 0, 1, 1], [], []>} : vector<128x128xbf16>, vector<128x256xbf16>, vector<128x256xf32> -> vector<128x256xf32>
    %c1_50 = arith.constant 1 : index
    %c0_51 = arith.constant 0 : index
    %c0_52 = arith.constant 0 : index
    %78 = vector.load %arg7[%c1_50, %c0_51, %c0_52] : memref<3x1x256xf32, #tpu.memory_space<vmem>>, vector<1x1x256xf32>
    %79 = vector.shape_cast %78 : vector<1x1x256xf32> to vector<1x256xf32>
    %80 = vector.broadcast %79 : vector<1x256xf32> to vector<128x256xf32>
    %81 = arith.addf %77, %80 : vector<128x256xf32>
    %cst_53 = arith.constant 0.000000e+00 : f32
    %82 = vector.broadcast %cst_53 : f32 to vector<128x256xf32>
    %83 = arith.maximumf %81, %82 : vector<128x256xf32>
    %c1_54 = arith.constant 1 : index
    %c0_55 = arith.constant 0 : index
    %c0_56 = arith.constant 0 : index
    %84 = vector.load %arg8[%c1_54, %c0_55, %c0_56] : memref<3x256x256xbf16, #tpu.memory_space<vmem>>, vector<1x256x256xbf16>
    %85 = vector.shape_cast %84 : vector<1x256x256xbf16> to vector<256x256xbf16>
    %86 = arith.truncf %83 : vector<128x256xf32> to vector<128x256xbf16>
    %cst_57 = arith.constant dense<0.000000e+00> : vector<128x256xf32>
    %87 = tpu.matmul %86, %85, %cst_57 {dimension_numbers = #tpu.dot_dimension_numbers<[1], [0], [0], [1], [0, 0, 1, 1], [], []>} : vector<128x256xbf16>, vector<256x256xbf16>, vector<128x256xf32> -> vector<128x256xf32>
    %c1_58 = arith.constant 1 : index
    %c0_59 = arith.constant 0 : index
    %c0_60 = arith.constant 0 : index
    %88 = vector.load %arg9[%c1_58, %c0_59, %c0_60] : memref<3x1x256xf32, #tpu.memory_space<vmem>>, vector<1x1x256xf32>
    %89 = vector.shape_cast %88 : vector<1x1x256xf32> to vector<1x256xf32>
    %90 = vector.broadcast %89 : vector<1x256xf32> to vector<128x256xf32>
    %91 = arith.addf %87, %90 : vector<128x256xf32>
    %c1_61 = arith.constant 1 : index
    %c0_62 = arith.constant 0 : index
    %c0_63 = arith.constant 0 : index
    %92 = vector.load %arg10[%c1_61, %c0_62, %c0_63] : memref<3x1x256xf32, #tpu.memory_space<vmem>>, vector<1x1x256xf32>
    %93 = vector.shape_cast %92 : vector<1x1x256xf32> to vector<1x256xf32>
    %94 = vector.broadcast %93 : vector<1x256xf32> to vector<128x256xf32>
    %95 = arith.mulf %63, %94 : vector<128x256xf32>
    %96 = arith.addf %91, %95 : vector<128x256xf32>
    %cst_64 = arith.constant 0.000000e+00 : f32
    %97 = vector.broadcast %cst_64 : f32 to vector<128x256xf32>
    %98 = arith.minimumf %96, %97 : vector<128x256xf32>
    %cst_65 = arith.constant 0.000000e+00 : f32
    %99 = vector.broadcast %cst_65 : f32 to vector<128x256xf32>
    %100 = arith.cmpf ogt, %96, %99 : vector<128x256xf32>
    %cst_66 = arith.constant 5.000000e-01 : f32
    %101 = vector.broadcast %cst_66 : f32 to vector<128x256xf32>
    %102 = arith.mulf %101, %98 : vector<128x256xf32>
    %103 = math.tanh %102 : vector<128x256xf32>
    %104 = math.exp %98 : vector<128x256xf32>
    %cst_67 = arith.constant 1.000000e+00 : f32
    %105 = vector.broadcast %cst_67 : f32 to vector<128x256xf32>
    %106 = arith.addf %104, %105 : vector<128x256xf32>
    %107 = arith.mulf %103, %106 : vector<128x256xf32>
    %108 = arith.select %100, %96, %107 : vector<128x256xi1>, vector<128x256xf32>
    %c2 = arith.constant 2 : index
    %c0_68 = arith.constant 0 : index
    %c0_69 = arith.constant 0 : index
    %109 = vector.load %arg4[%c2, %c0_68, %c0_69] : memref<3x256x128xbf16, #tpu.memory_space<vmem>>, vector<1x256x128xbf16>
    %110 = vector.shape_cast %109 : vector<1x256x128xbf16> to vector<256x128xbf16>
    %111 = arith.truncf %108 : vector<128x256xf32> to vector<128x256xbf16>
    %cst_70 = arith.constant dense<0.000000e+00> : vector<128x128xf32>
    %112 = tpu.matmul %111, %110, %cst_70 {dimension_numbers = #tpu.dot_dimension_numbers<[1], [0], [0], [1], [0, 0, 1, 1], [], []>} : vector<128x256xbf16>, vector<256x128xbf16>, vector<128x128xf32> -> vector<128x128xf32>
    %c2_71 = arith.constant 2 : index
    %c0_72 = arith.constant 0 : index
    %c0_73 = arith.constant 0 : index
    %113 = vector.load %arg5[%c2_71, %c0_72, %c0_73] : memref<3x1x128xf32, #tpu.memory_space<vmem>>, vector<1x1x128xf32>
    %114 = vector.shape_cast %113 : vector<1x1x128xf32> to vector<1x128xf32>
    %115 = vector.broadcast %114 : vector<1x128xf32> to vector<128x128xf32>
    %116 = arith.addf %112, %115 : vector<128x128xf32>
    %cst_74 = arith.constant 0.000000e+00 : f32
    %117 = vector.broadcast %cst_74 : f32 to vector<128x128xf32>
    %118 = arith.maximumf %116, %117 : vector<128x128xf32>
    %c2_75 = arith.constant 2 : index
    %c0_76 = arith.constant 0 : index
    %c0_77 = arith.constant 0 : index
    %119 = vector.load %arg6[%c2_75, %c0_76, %c0_77] : memref<3x128x256xbf16, #tpu.memory_space<vmem>>, vector<1x128x256xbf16>
    %120 = vector.shape_cast %119 : vector<1x128x256xbf16> to vector<128x256xbf16>
    %121 = arith.truncf %118 : vector<128x128xf32> to vector<128x128xbf16>
    %cst_78 = arith.constant dense<0.000000e+00> : vector<128x256xf32>
    %122 = tpu.matmul %121, %120, %cst_78 {dimension_numbers = #tpu.dot_dimension_numbers<[1], [0], [0], [1], [0, 0, 1, 1], [], []>} : vector<128x128xbf16>, vector<128x256xbf16>, vector<128x256xf32> -> vector<128x256xf32>
    %c2_79 = arith.constant 2 : index
    %c0_80 = arith.constant 0 : index
    %c0_81 = arith.constant 0 : index
    %123 = vector.load %arg7[%c2_79, %c0_80, %c0_81] : memref<3x1x256xf32, #tpu.memory_space<vmem>>, vector<1x1x256xf32>
    %124 = vector.shape_cast %123 : vector<1x1x256xf32> to vector<1x256xf32>
    %125 = vector.broadcast %124 : vector<1x256xf32> to vector<128x256xf32>
    %126 = arith.addf %122, %125 : vector<128x256xf32>
    %cst_82 = arith.constant 0.000000e+00 : f32
    %127 = vector.broadcast %cst_82 : f32 to vector<128x256xf32>
    %128 = arith.maximumf %126, %127 : vector<128x256xf32>
    %c2_83 = arith.constant 2 : index
    %c0_84 = arith.constant 0 : index
    %c0_85 = arith.constant 0 : index
    %129 = vector.load %arg8[%c2_83, %c0_84, %c0_85] : memref<3x256x256xbf16, #tpu.memory_space<vmem>>, vector<1x256x256xbf16>
    %130 = vector.shape_cast %129 : vector<1x256x256xbf16> to vector<256x256xbf16>
    %131 = arith.truncf %128 : vector<128x256xf32> to vector<128x256xbf16>
    %cst_86 = arith.constant dense<0.000000e+00> : vector<128x256xf32>
    %132 = tpu.matmul %131, %130, %cst_86 {dimension_numbers = #tpu.dot_dimension_numbers<[1], [0], [0], [1], [0, 0, 1, 1], [], []>} : vector<128x256xbf16>, vector<256x256xbf16>, vector<128x256xf32> -> vector<128x256xf32>
    %c2_87 = arith.constant 2 : index
    %c0_88 = arith.constant 0 : index
    %c0_89 = arith.constant 0 : index
    %133 = vector.load %arg9[%c2_87, %c0_88, %c0_89] : memref<3x1x256xf32, #tpu.memory_space<vmem>>, vector<1x1x256xf32>
    %134 = vector.shape_cast %133 : vector<1x1x256xf32> to vector<1x256xf32>
    %135 = vector.broadcast %134 : vector<1x256xf32> to vector<128x256xf32>
    %136 = arith.addf %132, %135 : vector<128x256xf32>
    %c2_90 = arith.constant 2 : index
    %c0_91 = arith.constant 0 : index
    %c0_92 = arith.constant 0 : index
    %137 = vector.load %arg10[%c2_90, %c0_91, %c0_92] : memref<3x1x256xf32, #tpu.memory_space<vmem>>, vector<1x1x256xf32>
    %138 = vector.shape_cast %137 : vector<1x1x256xf32> to vector<1x256xf32>
    %139 = vector.broadcast %138 : vector<1x256xf32> to vector<128x256xf32>
    %140 = arith.mulf %108, %139 : vector<128x256xf32>
    %141 = arith.addf %136, %140 : vector<128x256xf32>
    %cst_93 = arith.constant 0.000000e+00 : f32
    %142 = vector.broadcast %cst_93 : f32 to vector<128x256xf32>
    %143 = arith.minimumf %141, %142 : vector<128x256xf32>
    %cst_94 = arith.constant 0.000000e+00 : f32
    %144 = vector.broadcast %cst_94 : f32 to vector<128x256xf32>
    %145 = arith.cmpf ogt, %141, %144 : vector<128x256xf32>
    %cst_95 = arith.constant 5.000000e-01 : f32
    %146 = vector.broadcast %cst_95 : f32 to vector<128x256xf32>
    %147 = arith.mulf %146, %143 : vector<128x256xf32>
    %148 = math.tanh %147 : vector<128x256xf32>
    %149 = math.exp %143 : vector<128x256xf32>
    %cst_96 = arith.constant 1.000000e+00 : f32
    %150 = vector.broadcast %cst_96 : f32 to vector<128x256xf32>
    %151 = arith.addf %149, %150 : vector<128x256xf32>
    %152 = arith.mulf %148, %151 : vector<128x256xf32>
    %153 = arith.select %145, %141, %152 : vector<128x256xi1>, vector<128x256xf32>
    %c0_97 = arith.constant 0 : index
    %c0_98 = arith.constant 0 : index
    %154 = vector.load %arg11[%c0_97, %c0_98] : memref<256x4xbf16, #tpu.memory_space<vmem>>, vector<256x4xbf16>
    %155 = arith.truncf %153 : vector<128x256xf32> to vector<128x256xbf16>
    %cst_99 = arith.constant dense<0.000000e+00> : vector<128x4xf32>
    %156 = tpu.matmul %155, %154, %cst_99 {dimension_numbers = #tpu.dot_dimension_numbers<[1], [0], [0], [1], [0, 0, 1, 1], [], []>} : vector<128x256xbf16>, vector<256x4xbf16>, vector<128x4xf32> -> vector<128x4xf32>
    %c0_100 = arith.constant 0 : index
    %c0_101 = arith.constant 0 : index
    %157 = vector.load %arg12[%c0_100, %c0_101] : memref<1x4xf32, #tpu.memory_space<vmem>>, vector<1x4xf32>
    %158 = vector.broadcast %157 : vector<1x4xf32> to vector<128x4xf32>
    %159 = arith.addf %156, %158 : vector<128x4xf32>
    %c0_102 = arith.constant 0 : index
    %c0_103 = arith.constant 0 : index
    %160 = vector.load %arg13[%c0_102, %c0_103] : memref<128x4xf32, #tpu.memory_space<vmem>>, vector<128x4xf32>
    tpu.vector_store %arg13[%c0_102, %c0_103], %159 {strides = array<i32>} : memref<128x4xf32, #tpu.memory_space<vmem>>, vector<128x4xf32>,
    return
  }
  func.func @transform_0(%arg0: i32) -> (i32, i32) {
    %c0_i32 = arith.constant 0 : i32
    %c0_i32_0 = arith.constant 0 : i32
    return %arg0, %c0_i32 : i32, i32
  }
  func.func @transform_1(%arg0: i32) -> (i32, i32) {
    %c0_i32 = arith.constant 0 : i32
    %c0_i32_0 = arith.constant 0 : i32
    %c0_i32_1 = arith.constant 0 : i32
    return %c0_i32, %c0_i32_0 : i32, i32
  }
  func.func @transform_2(%arg0: i32) -> (i32, i32) {
    %c0_i32 = arith.constant 0 : i32
    %c0_i32_0 = arith.constant 0 : i32
    %c0_i32_1 = arith.constant 0 : i32
    return %c0_i32, %c0_i32_0 : i32, i32
  }
  func.func @transform_3(%arg0: i32) -> (i32, i32, i32) {
    %c0_i32 = arith.constant 0 : i32
    %c0_i32_0 = arith.constant 0 : i32
    %c0_i32_1 = arith.constant 0 : i32
    %c0_i32_2 = arith.constant 0 : i32
    return %c0_i32, %c0_i32_0, %c0_i32_1 : i32, i32, i32
  }
  func.func @transform_4(%arg0: i32) -> (i32, i32, i32) {
    %c0_i32 = arith.constant 0 : i32
    %c0_i32_0 = arith.constant 0 : i32
    %c0_i32_1 = arith.constant 0 : i32
    %c0_i32_2 = arith.constant 0 : i32
    return %c0_i32, %c0_i32_0, %c0_i32_1 : i32, i32, i32
  }
  func.func @transform_5(%arg0: i32) -> (i32, i32, i32) {
    %c0_i32 = arith.constant 0 : i32
    %c0_i32_0 = arith.constant 0 : i32
    %c0_i32_1 = arith.constant 0 : i32
    %c0_i32_2 = arith.constant 0 : i32
    return %c0_i32, %c0_i32_0, %c0_i32_1 : i32, i32, i32
  }
  func.func @transform_6(%arg0: i32) -> (i32, i32, i32) {
    %c0_i32 = arith.constant 0 : i32
    %c0_i32_0 = arith.constant 0 : i32
    %c0_i32_1 = arith.constant 0 : i32
    %c0_i32_2 = arith.constant 0 : i32
    return %c0_i32, %c0_i32_0, %c0_i32_1 : i32, i32, i32
  }
  func.func @transform_7(%arg0: i32) -> (i32, i32, i32) {
    %c0_i32 = arith.constant 0 : i32
    %c0_i32_0 = arith.constant 0 : i32
    %c0_i32_1 = arith.constant 0 : i32
    %c0_i32_2 = arith.constant 0 : i32
    return %c0_i32, %c0_i32_0, %c0_i32_1 : i32, i32, i32
  }
  func.func @transform_8(%arg0: i32) -> (i32, i32, i32) {
    %c0_i32 = arith.constant 0 : i32
    %c0_i32_0 = arith.constant 0 : i32
    %c0_i32_1 = arith.constant 0 : i32
    %c0_i32_2 = arith.constant 0 : i32
    return %c0_i32, %c0_i32_0, %c0_i32_1 : i32, i32, i32
  }
  func.func @transform_9(%arg0: i32) -> (i32, i32, i32) {
    %c0_i32 = arith.constant 0 : i32
    %c0_i32_0 = arith.constant 0 : i32
    %c0_i32_1 = arith.constant 0 : i32
    %c0_i32_2 = arith.constant 0 : i32
    return %c0_i32, %c0_i32_0, %c0_i32_1 : i32, i32, i32
  }
  func.func @transform_10(%arg0: i32) -> (i32, i32) {
    %c0_i32 = arith.constant 0 : i32
    %c0_i32_0 = arith.constant 0 : i32
    %c0_i32_1 = arith.constant 0 : i32
    return %c0_i32, %c0_i32_0 : i32, i32
  }
  func.func @transform_11(%arg0: i32) -> (i32, i32) {
    %c0_i32 = arith.constant 0 : i32
    %c0_i32_0 = arith.constant 0 : i32
    %c0_i32_1 = arith.constant 0 : i32
    return %c0_i32, %c0_i32_0 : i32, i32
  }
  func.func @transform_12(%arg0: i32) -> (i32, i32) {
    %c0_i32 = arith.constant 0 : i32
    %c0_i32_0 = arith.constant 0 : i32
    return %arg0, %c0_i32 : i32, i32
  }
}

</mosaic_0001>

<bundles_post_ra>
// kernel: tpu_custom_call.1
= control target key start
LH: loop header
LB: loop body
LE: loop exit
PB: predicated region body
PF: predicated region fallthrough
CT: control target
= control target key end

     0   :  { %17 = vsyncpa [#allocation3], 0  ;;  %s9132_s0 = inlined_call_operand.vmem [shape: f32[256,21], index: 0, kind: input, shape index: {}]   ;;  %s9133_s1 = inlined_call_operand.vmem [shape: bf16[21,256], index: 1, kind: input, shape index: {}]   ;;  %s9134_s2 = inlined_call_operand.vmem [shape: f32[1,256], index: 2, kind: input, shape index: {}]   ;;  %s9135_s3 = inlined_call_operand.vmem [shape: bf16[3,256,128], index: 3, kind: input, shape index: {}]   ;;  %s9136_s4 = inlined_call_operand.vmem [shape: f32[3,1,128], index: 4, kind: input, shape index: {}]   ;;  %s9137_s5 = inlined_call_operand.hbm [shape: bf16[3,128,256], index: 5, kind: input, shape index: {}]   ;;  %s9138_s6 = inlined_call_operand.vmem [shape: f32[3,1,256], index: 6, kind: input, shape index: {}]   ;;  %s9139_s7 = inlined_call_operand.hbm [shape: bf16[3,256,256], index: 7, kind: input, shape index: {}]   ;;  %s9140_s8 = inlined_call_operand.vmem [shape: f32[3,1,256], index: 8, kind: input, shape index: {}]   ;;  %s9141_s9 = inlined_call_operand.vmem [shape: f32[3,1,256], index: 9, kind: input, shape index: {}]   ;;  %s9142_s10 = inlined_call_operand.vmem [shape: bf16[256,4], index: 10, kind: input, shape index: {}]   ;;  %s9143_s11 = inlined_call_operand.vmem [shape: f32[1,4], index: 11, kind: input, shape index: {}]   ;;  %s9144_s12 = inlined_call_operand.vmem [shape: f32[256,4], index: 12, kind: output, shape index: {}]  }
   0x1   :  { %18 = vsyncpa [#allocation5], 0  ;;  %s6505_s21 = smov 0  }
   0x2 LB: > { %s4961_s22 = sadd.s32 4294967295, %s6432_s21   ;;  %p4963_p0 = scmp.ge.s32.totalorder %s6432_s21, 1  ;;  %s6432_s21 = sphi %s6505_s21, %s24_s21  }
   0x3   : > { %p312_p1 = scmp.lt.s32.totalorder %s6432_s21, 3  ;;  %s6434_s23 = smov [#allocation2]  }
   0x4   : > { %s336_s24 = sshll.u32 %s6434_s23, 4  ;;  %p6519_p3 = scmp.eq.s32.totalorder %s4961_s22, 0  ;;  %s337_s24 = int_to_ptr.vmem [resolvable:$true] %s336_s24 }
   0x5   : > { %p6513_p2 = pnand %p4963_p0, %p312_p1  ;;  %s6435_s27 = smov [#allocation4]  }
   0x6   : > { %s9193_s26 = scalar_select %p6519_p3, 1, 0 }
   0x7   : > { %s9192_s25 = scalar_select %p6513_p2, 1, 0 }
   0x8   : > { %p5540_p4 = pneg %p6513_p2  ;;  %s352_s28 = sshll.u32 %s6435_s27, 4  ;;  %s6531_s28 = int_to_ptr.vmem [resolvable:$true] %s352_s28 }
   0x9   : > { %s6362_s14 = scalar_lea.hbm %s9137_s5, 6144 }
   0xa   : > { %p6527_p5 = pnand %p6519_p3, %p5540_p4  ;;  %p6363_p6 = scmp.ne.s32.totalorder %s9137_s5, %s6362_s14 }
   0xb   : > { %p6369_p10 = scmp.lt.u32.totalorder %s6362_s14, %s9137_s5 }
   0xc   : > { %p6364_p7 = pneg %p6527_p5 }
   0xe   : > { %p6365_p8 = pnand %p6364_p7, %p6363_p6 }
  0x10   : > { %p6366_p9 = pneg %p6365_p8 }
  0x12   : > { %p6371_p11 = pnand %p6369_p10, %p6366_p9 }
  0x14   : > { %6374 = shalt.err (!%p6371_p11)
}
  0x15   : > { %s6375_s19 = scalar_lea.vmem %s337_s24, 6144  ;;  %p6383_p1 = scmp.lt.s32.totalorder %s337_s24, %s337_s24 }
  0x16   : > { %p6376_p12 = scmp.ne.s32.totalorder %s337_s24, %s6375_s19  ;;  %p6384_p4 = scmp.lt.s32.totalorder %s6375_s19, %s6375_s19 }
  0x18   : > { %p6378_p13 = pnand %p6376_p12, %p6364_p7  ;;  %p6385_p3 = por %p6384_p4, %p6383_p1 }
  0x1a   : > { %p6379_p0 = pneg %p6378_p13 }
  0x1c   : > { %p6386_p2 = pnand %p6385_p3, %p6379_p0 }
  0x1e   : > { %6389 = shalt.err (!%p6386_p2)
}
  0x1f   : > { %s6436_s20 = smov 128   ;;  %s6437_s23 = smov 8  }
  0x20   : > { %5543 = dma.hbm_to_vmem [thread:$0]  (!%p6527_p5), %s9137_s5, 6144, %s337_s24, [#allocation3], %s6436_s20, %s6436_s20, %s6437_s23  }
  0x21   : > { %s6390_s15 = scalar_lea.hbm %s9139_s7, 12288 }
  0x22   : > { %p6391_p6 = scmp.ne.s32.totalorder %s9139_s7, %s6390_s15  ;;  %p6397_p8 = scmp.lt.u32.totalorder %s6390_s15, %s9139_s7 }
  0x24   : > { %p6393_p2 = pnand %p6391_p6, %p6364_p7 }
  0x26   : > { %p6394_p3 = pneg %p6393_p2 }
  0x28   : > { %p6399_p9 = pnand %p6397_p8, %p6394_p3 }
  0x2a   : > { %6402 = shalt.err (!%p6399_p9)
}
  0x2b   : > { %s6403_s24 = scalar_lea.vmem %s6531_s28, 12288  ;;  %p6411_p13 = scmp.lt.s32.totalorder %s6531_s28, %s6531_s28 }
  0x2c   : > { %p6404_p10 = scmp.ne.s32.totalorder %s6531_s28, %s6403_s24  ;;  %p6412_p0 = scmp.lt.s32.totalorder %s6403_s24, %s6403_s24 }
  0x2e   : > { %p6406_p11 = pnand %p6404_p10, %p6364_p7  ;;  %p6413_p1 = por %p6412_p0, %p6411_p13 }
  0x30   : > { %p6407_p12 = pneg %p6406_p11 }
  0x32   : > { %p6414_p4 = pnand %p6413_p1, %p6407_p12 }
  0x34   : > { %6417 = shalt.err (!%p6414_p4)
}
  0x35   : > { %5546 = dma.hbm_to_vmem [thread:$0]  (!%p6527_p5), %s9139_s7, 12288, %s6531_s28, [#allocation5], %s6436_s20, %s6436_s20, %s6437_s23  }
  0x36   : > { %p9195_p6 = scmp.ne.s32.totalorder %s9192_s25, 0 }
  0x38   : > { %389 = sbr.rel (%p9195_p6) target bundleno = 2743 (0xab7), region = 68 }
  0x3f   : > { %p9196_p2 = scmp.ne.s32.totalorder %s9193_s26, 0 }
  0x41   : > { %6423 = dma.done.wait (%p9196_p2), [#allocation3], 6144  }
  0x42   : > { %6425 = vsyncadd (%p9196_p2), [#allocation3], 4294961152 }
  0x43   : > { %6427 = dma.done.wait (%p9196_p2), [#allocation5], 12288  }
  0x44   : > { %6429 = vsyncadd (%p9196_p2), [#allocation5], 4294955008  ;;  %v9148_v0 = vmov 0   ;;  %s4970_s28 = sshll.u32 %s4961_s22, 4  ;;  %vm527_vm0 = vcmask 1041408   ;;  %vm528_vm1 = vcmask 1042432   ;;  %v477_v51 = vlaneseq }
  0x45   : > { %569 = vmatprep.mubr.bf16.mxu0 %v9148_v0  ;;  %609 = vmatprep.mubr.bf16.mxu1 %v9148_v0  ;;  %p436_p5 = scmp.lt.s32.totalorder %s4970_s28, 31  ;;  %v6439_v1 = vmov 65535   ;;  %v5565_v3 = vld [vmem:[%s9133_s1 + $0x4] ss:$8 sps:$4 sm:$0xff]   ;;  %v5567_v4 = vld [vmem:[%s9133_s1] ss:$8 sps:$4 sm:$0xff]  }
  0x46   : > { %v529_v2 = vsel %vm527_vm0, 4294967295, %v6439_v1  ;;  %v466_v5 = vld [vmem:[%s9133_s1 + $0x10] sm:$0x77]  ;;  %537 = vmatprep.subr.bf16.mxu0 %v5565_v3  ;;  %5528 = vmatprep.subr.bf16.mxu1 %v5565_v3  ;;  %vm502_vm2 = vcmask 171008   ;;  %v5570_v17 = vld [vmem:[%s9135_s3 + $0x40] sm:$0xff]   ;;  %v5572_v37 = vld [vmem:[%s9135_s3 + $0x48] sm:$0xff]  }
  0x47   : > { %s9291_s28 = smov (!%p436_p5, %s4970_s28), 31  ;;  %v530_v6 = vsel %vm528_vm1, %v529_v2, 0  ;;  %v4977_v7 = vcombine.high %v466_v5, %v466_v5  ;;  %v4976_v8 = vcombine.low %v466_v5, %v466_v5  ;;  %538 = vmatpush1.bf16.msra.mxu0 %v5567_v4  ;;  %5530 = vmatpush1.bf16.msra.mxu1 %v5567_v4  ;;  %v5571_v18 = vld [vmem:[%s9135_s3] sm:$0xff]   ;;  %v5573_v38 = vld [vmem:[%s9135_s3 + $0x8] sm:$0xff]   ;;  %v5574_v39 = vld [vmem:[%s9135_s3 + $0x50] sm:$0xff]   ;;  %v478_v52 = vshrl.u32 %v477_v51, 7 }
  0x48   : > { %s4971_s25 = sshll.u32 %s9291_s28, 3  ;;  %v5575_v40 = vld [vmem:[%s9135_s3 + $0x10] sm:$0xff]   ;;  %v5576_v41 = vld [vmem:[%s9135_s3 + $0x58] sm:$0xff]   ;;  %v5578_v43 = vld [vmem:[%s9135_s3 + $0x60] sm:$0xff]  }
  0x49   : > { %s6605_s22 = scalar_lea.vmem %s9132_s0, %s4971_s25  ;;  %v535_v13 = vand.u32 %v4977_v7, %v530_v6  ;;  %v532_v14 = vand.u32 %v4976_v8, %v530_v6  ;;  %v5577_v42 = vld [vmem:[%s9135_s3 + $0x18] sm:$0xff]   ;;  %v5579_v44 = vld [vmem:[%s9135_s3 + $0x20] sm:$0xff]   ;;  %v5580_v45 = vld [vmem:[%s9135_s3 + $0x68] sm:$0xff]   ;;  %v6692_v56 = vsub.s32 0, %v478_v52  ;;  %v6697_v58 = vsub.s32 1, %v478_v52  ;;  %s9079_s20 = scalar_lea.vmem %s9144_s12, %s4971_s25 }
  0x4a   : > { %v448_v9 = vld [vmem:[%s6605_s22] sm:$0xff]  ;;  %v449_v10 = vld [vmem:[%s6605_s22 + $0x8] sm:$0xff]  ;;  %v450_v19 = vld [vmem:[%s6605_s22 + $0x10] sm:$0xff] }
  0x4b   : > { %v456_v11 = vld [vmem:[%s6605_s22 + $0x40] sm:$0xff]  ;;  %v457_v12 = vld [vmem:[%s6605_s22 + $0x48] sm:$0xff]  ;;  %539 = vmatprep.subr.bf16.mxu0 %v535_v13  ;;  %v467_v15 = vpack.c.bf16 %v449_v10, %v448_v9  ;;  %5529 = vmatprep.subr.bf16.mxu1 %v535_v13  ;;  %v451_v20 = vld [vmem:[%s6605_s22 + $0x18] sm:$0xff]  ;;  %9197 = vst [vmem:[#allocation8_spill] sm:$0xff] %v6692_v56 }
  0x4c   : > { %v471_v16 = vpack.c.bf16 %v457_v12, %v456_v11  ;;  %540 = vmatpush1.bf16.msra.mxu0 %v532_v14  ;;  %5531 = vmatpush1.bf16.msra.mxu1 %v532_v14  ;;  %v458_v21 = vld [vmem:[%s6605_s22 + $0x50] sm:$0xff]  ;;  %v459_v22 = vld [vmem:[%s6605_s22 + $0x58] sm:$0xff]  ;;  %v468_v23 = vpack.c.bf16 %v451_v20, %v450_v19  ;;  %v452_v25 = vld [vmem:[%s6605_s22 + $0x20] sm:$0xff]  ;;  %9198 = vst [vmem:[#allocation9_spill] sm:$0xff] %v6697_v58 }
  0x4d   : > { %5272 = vmatprep.subr.bf16.mxu1 %v5570_v17  ;;  %v472_v24 = vpack.c.bf16 %v459_v22, %v458_v21  ;;  %v453_v26 = vld [vmem:[%s6605_s22 + $0x28] sm:$0xff]  ;;  %v460_v27 = vld [vmem:[%s6605_s22 + $0x60] sm:$0xff]  ;;  %v454_v31 = vld [vmem:[%s6605_s22 + $0x30] sm:$0xff] }
  0x4e   : > { %v461_v28 = vld [vmem:[%s6605_s22 + $0x68] sm:$0xff]  ;;  %v469_v29 = vpack.c.bf16 %v453_v26, %v452_v25  ;;  %v455_v32 = vld [vmem:[%s6605_s22 + $0x38] sm:$0xff]  ;;  %v462_v33 = vld [vmem:[%s6605_s22 + $0x70] sm:$0xff] }
  0x4f   : > { %4978 = vmatmul.mubr.msk.bf16.vlgmr.msra.gmra.mrb[0].mxu0 %vm502_vm2, %v467_v15  ;;  %4982 = vmatmul.mubr.msk.bf16.vlgmr.msra.gmra.mrb[0].mxu1 %vm502_vm2, %v471_v16  ;;  %v473_v30 = vpack.c.bf16 %v461_v28, %v460_v27  ;;  %v463_v34 = vld [vmem:[%s6605_s22 + $0x78] sm:$0xff]  ;;  %v470_v35 = vpack.c.bf16 %v455_v32, %v454_v31  ;;  %v5581_v46 = vld [vmem:[%s9135_s3 + $0x28] sm:$0xff]   ;;  %v5582_v47 = vld [vmem:[%s9135_s3 + $0x70] sm:$0xff]  }
  0x50   : > { %579 = vmatprep.mubr.bf16.mxu0 %v9148_v0  ;;  %619 = vmatprep.mubr.bf16.mxu1 %v9148_v0  ;;  %v474_v36 = vpack.c.bf16 %v463_v34, %v462_v33  ;;  %v5583_v48 = vld [vmem:[%s9135_s3 + $0x30] sm:$0xff]   ;;  %v5584_v49 = vld [vmem:[%s9135_s3 + $0x78] sm:$0xff]   ;;  %v5586_v53 = vld [vmem:[#allocation2] ss:$8 sps:$4 sm:$0xff]  }
  0x51   : > { %5273 = vmatpush3.bf16.msra.mxu1 %v5571_v18  ;;  %v5585_v50 = vld [vmem:[%s9135_s3 + $0x38] sm:$0xff]   ;;  %v5588_v54 = vld [vmem:[#allocation2 + $0x4] ss:$8 sps:$4 sm:$0xff]   ;;  %v475_v57 = vld [vmem:[%s9134_s2] sm:$0x3] }
  0x52   : > { %5274 = vmatprep.subr.bf16.mxu1 %v5572_v37  ;;  %v5591_v55 = vld [vmem:[#allocation2 + $0x14] ss:$8 sps:$4 sm:$0xff]   ;;  %1318 = vmatprep.subr.bf16.mxu0 %v5588_v54  ;;  %v5589_v59 = vld [vmem:[#allocation2 + $0x10] ss:$8 sps:$4 sm:$0xff]   ;;  %v5594_v60 = vld [vmem:[#allocation2 + $0x24] ss:$8 sps:$4 sm:$0xff]   ;;  %v6700_v61 = vrot.slane %v475_v57, %v6692_v56  ;;  %v6703_v62 = vrot.slane %v475_v57, %v6697_v58 }
  0x53   : > { %1319 = vmatpush1.bf16.msra.mxu0 %v5586_v53  ;;  %v5592_v63 = vld [vmem:[#allocation2 + $0x20] ss:$8 sps:$4 sm:$0xff]   ;;  %v5597_v1 = vld [vmem:[#allocation2 + $0x34] ss:$8 sps:$4 sm:$0xff]   ;;  %v5595_v10 = vld [vmem:[#allocation2 + $0x30] ss:$8 sps:$4 sm:$0xff]  }
  0x54   : > { %1320 = vmatprep.subr.bf16.mxu0 %v5591_v55  ;;  %v5600_v15 = vld [vmem:[#allocation2 + $0x44] ss:$8 sps:$4 sm:$0xff]   ;;  %v5603_v26 = vld [vmem:[#allocation2 + $0x54] ss:$8 sps:$4 sm:$0xff]  }
  0x55   : > { %5275 = vmatpush3.bf16.msra.mxu1 %v5573_v38  ;;  %v5601_v38 = vld [vmem:[#allocation2 + $0x50] ss:$8 sps:$4 sm:$0xff]  }
  0x56   : > { %5276 = vmatprep.subr.bf16.mxu1 %v5574_v39 }
  0x57   : > { %4979 = vmatmul.mubr.msk.bf16.gmra.mrb[4].mxu0 %vm502_vm2, %v468_v23  ;;  %4983 = vmatmul.mubr.msk.bf16.gmra.mrb[4].mxu1 %vm502_vm2, %v472_v24  ;;  %v5598_v24 = vld [vmem:[#allocation2 + $0x40] ss:$8 sps:$4 sm:$0xff]  }
  0x58   : > { %589 = vmatprep.mubr.bf16.mxu0 %v9148_v0  ;;  %629 = vmatprep.mubr.bf16.mxu1 %v9148_v0 }
  0x59   : > { %5277 = vmatpush3.bf16.msra.mxu1 %v5575_v40  ;;  %1321 = vmatpush1.bf16.msra.mxu0 %v5589_v59 }
  0x5a   : > { %5278 = vmatprep.subr.bf16.mxu1 %v5576_v41  ;;  %1322 = vmatprep.subr.bf16.mxu0 %v5594_v60 }
  0x5d   : > { %5279 = vmatpush3.bf16.msra.mxu1 %v5577_v42  ;;  %1323 = vmatpush1.bf16.msra.mxu0 %v5592_v63 }
  0x5e   : > { %5280 = vmatprep.subr.bf16.mxu1 %v5578_v43  ;;  %1324 = vmatprep.subr.bf16.mxu0 %v5597_v1 }
  0x5f   : > { %4980 = vmatmul.mubr.msk.bf16.gmra.mrb[8].mxu0 %vm502_vm2, %v469_v29  ;;  %4984 = vmatmul.mubr.msk.bf16.gmra.mrb[8].mxu1 %vm502_vm2, %v473_v30 }
  0x60   : > { %599 = vmatprep.mubr.bf16.mxu0 %v9148_v0  ;;  %639 = vmatprep.mubr.bf16.mxu1 %v9148_v0 }
  0x61   : > { %5281 = vmatpush3.bf16.msra.mxu1 %v5579_v44  ;;  %1325 = vmatpush1.bf16.msra.mxu0 %v5595_v10 }
  0x62   : > { %5282 = vmatprep.subr.bf16.mxu1 %v5580_v45  ;;  %1326 = vmatprep.subr.bf16.mxu0 %v5600_v15 }
  0x65   : > { %5283 = vmatpush3.bf16.msra.mxu1 %v5581_v46  ;;  %1327 = vmatpush1.bf16.msra.mxu0 %v5598_v24 }
  0x66   : > { %5284 = vmatprep.subr.bf16.mxu1 %v5582_v47  ;;  %1328 = vmatprep.subr.bf16.mxu0 %v5603_v26 }
  0x67   : > { %4981 = vmatmul.mubr.msk.bf16.gmra.mrb[12].mxu0 %vm502_vm2, %v470_v35  ;;  %4985 = vmatmul.mubr.msk.bf16.gmra.mrb[12].mxu1 %vm502_vm2, %v474_v36 }
  0x68   : > { %1350 = vmatprep.mubr.bf16.mxu0 %v9148_v0 }
  0x69   : > { %5285 = vmatpush3.bf16.msra.mxu1 %v5583_v48  ;;  %1329 = vmatpush1.bf16.msra.mxu0 %v5601_v38 }
  0x6a   : > { %5286 = vmatprep.subr.bf16.mxu1 %v5584_v49 }
  0x6d   : > { %5287 = vmatpush3.bf16.msra.mxu1 %v5585_v50 }
 0x122   : > { %v571_v2 = vpop.f32.mrb[0].mxu0  ;;  %v611_v3 = vpop.f32.mrb[0].mxu1 }
 0x123   : > { %v6706_v4 = vadd.f32 %v571_v2, %v6700_v61  ;;  %v573_v5 = vpop.f32.mrb[1].mxu0  ;;  %v613_v6 = vpop.f32.mrb[1].mxu1  ;;  %v6734_v36 = vadd.f32 %v611_v3, %v6700_v61 }
 0x124   : > { %v6709_v7 = vadd.f32 %v573_v5, %v6703_v62  ;;  %v575_v8 = vpop.f32.mrb[2].mxu0  ;;  %v6711_v9 = vpop.f32.mrb[2].mxu1  ;;  %v6749_v45 = vadd.f32 %v613_v6, %v6703_v62 }
 0x125   : > { %v650_v11 = vmin.f32 %v6706_v4, 0.0  ;;  %v6715_v12 = vadd.f32 %v575_v8, %v6700_v61  ;;  %v577_v13 = vpop.f32.mrb[3].mxu0  ;;  %v6717_v14 = vpop.f32.mrb[3].mxu1  ;;  %v666_v52 = vmin.f32 %v6734_v36, 0.0  ;;  %v6758_v57 = vadd.f32 %v6711_v9, %v6700_v61 }
 0x126   : > { %v651_v16 = vmin.f32 %v6709_v7, 0.0  ;;  %v6721_v17 = vadd.f32 %v577_v13, %v6703_v62  ;;  %v667_v2 = vmin.f32 %v6749_v45, 0.0  ;;  %v6767_v10 = vadd.f32 %v6717_v14, %v6703_v62 }
 0x127   : > { %v714_v18 = vmul.f32 0.5, %v650_v11  ;;  %v778_v19 = vmul.f32 1.442695, %v650_v11  ;;  %v652_v20 = vmin.f32 %v6715_v12, 0.0  ;;  %v730_v1 = vmul.f32 0.5, %v666_v52 }
 0x128   : > { %v715_v21 = vmul.f32 0.5, %v651_v16  ;;  %v780_v22 = vmul.f32 1.442695, %v651_v16  ;;  %v653_v23 = vmin.f32 %v6721_v17, 0.0  ;;  %v810_v8 = vmul.f32 1.442695, %v666_v52 }
 0x129   : > { %5850 = vtanh.f32 %v714_v18  ;;  %v716_v25 = vmul.f32 0.5, %v652_v20  ;;  %v782_v27 = vmul.f32 1.442695, %v652_v20  ;;  %v731_v24 = vmul.f32 0.5, %v667_v2 }
 0x12a   : > { %5852 = vpow2.f32 %v778_v19  ;;  %v581_v28 = vpop.f32.mrb[4].mxu0  ;;  %v717_v29 = vmul.f32 0.5, %v653_v23  ;;  %v6728_v32 = vpop.f32.mrb[4].mxu1  ;;  %v784_v33 = vmul.f32 1.442695, %v653_v23  ;;  %vm682_vm3 = vcmp.gt.f32.partialorder %v6706_v4, 0.0 }
 0x12b   : > { %5854 = vtanh.f32 %v715_v21  ;;  %v6726_v30 = vadd.f32 %v581_v28, %v6700_v61  ;;  %v583_v31 = vpop.f32.mrb[5].mxu0  ;;  %v6736_v37 = vpop.f32.mrb[5].mxu1  ;;  %vm684_vm4 = vcmp.gt.f32.partialorder %v6715_v12, 0.0  ;;  %vm683_vm5 = vcmp.gt.f32.partialorder %v6709_v7, 0.0 }
 0x12c   : > { %5856 = vpow2.f32 %v780_v22  ;;  %v6731_v34 = vadd.f32 %v583_v31, %v6703_v62  ;;  %v585_v35 = vpop.f32.mrb[6].mxu0  ;;  %v6742_v42 = vpop.f32.mrb[6].mxu1  ;;  %v668_v22 = vmin.f32 %v6758_v57, 0.0  ;;  %vm685_vm6 = vcmp.gt.f32.partialorder %v6721_v17, 0.0 }
 0x12d   : > { %5858 = vtanh.f32 %v716_v25  ;;  %v654_v39 = vmin.f32 %v6726_v30, 0.0  ;;  %v6740_v40 = vadd.f32 %v585_v35, %v6700_v61  ;;  %v587_v41 = vpop.f32.mrb[7].mxu0  ;;  %v6751_v46 = vpop.f32.mrb[7].mxu1  ;;  %v812_v25 = vmul.f32 1.442695, %v667_v2 }
 0x12e   : > { %5860 = vpow2.f32 %v782_v27  ;;  %v655_v43 = vmin.f32 %v6731_v34, 0.0  ;;  %v6746_v44 = vadd.f32 %v587_v41, %v6703_v62  ;;  %v732_v38 = vmul.f32 0.5, %v668_v22 }
 0x12f   : > { %5862 = vtanh.f32 %v717_v29  ;;  %v718_v47 = vmul.f32 0.5, %v654_v39  ;;  %v786_v48 = vmul.f32 1.442695, %v654_v39  ;;  %v656_v49 = vmin.f32 %v6740_v40, 0.0 }
 0x130   : > { %5864 = vpow2.f32 %v784_v33  ;;  %v719_v50 = vmul.f32 0.5, %v655_v43  ;;  %v788_v51 = vmul.f32 1.442695, %v655_v43  ;;  %v657_v54 = vmin.f32 %v6746_v44, 0.0 }
 0x131   : > { %5866 = vtanh.f32 %v718_v47  ;;  %v720_v53 = vmul.f32 0.5, %v656_v49  ;;  %v790_v55 = vmul.f32 1.442695, %v656_v49  ;;  %v669_v29 = vmin.f32 %v6767_v10, 0.0 }
 0x132   : > { %5868 = vpow2.f32 %v786_v48  ;;  %v591_v59 = vpop.f32.mrb[8].mxu0  ;;  %v6760_v60 = vpop.f32.mrb[8].mxu1  ;;  %v721_v16 = vmul.f32 0.5, %v657_v54  ;;  %v792_v21 = vmul.f32 1.442695, %v657_v54  ;;  %vm687_vm7 = vcmp.gt.f32.partialorder %v6731_v34, 0.0 }
 0x133   : > { %v5851_v63 = vpop.eup %5850  ;;  %5870 = vtanh.f32 %v719_v50  ;;  %v593_v3 = vpop.f32.mrb[9].mxu0  ;;  %v6779_v14 = vadd.f32 %v591_v59, %v6700_v61  ;;  %v814_v43 = vmul.f32 1.442695, %v668_v22  ;;  %vm689_vm8 = vcmp.gt.f32.partialorder %v6746_v44, 0.0 }
 0x134   : > { %v6763_v5 = vpop.f32.mrb[9].mxu1  ;;  %v5853_v6 = vpop.eup %5852  ;;  %5872 = vpow2.f32 %v788_v51  ;;  %v6782_v26 = vadd.f32 %v593_v3, %v6703_v62  ;;  %v733_v51 = vmul.f32 0.5, %v669_v29  ;;  %vm686_vm9 = vcmp.gt.f32.partialorder %v6726_v30, 0.0 }
 0x135   : > { %v595_v9 = vpop.f32.mrb[10].mxu0  ;;  %v6769_v11 = vpop.f32.mrb[10].mxu1  ;;  %v842_v15 = vadd.f32 1.0, %v5853_v6  ;;  %5874 = vtanh.f32 %v720_v53  ;;  %v658_v31 = vmin.f32 %v6779_v14, 0.0  ;;  %vm688_vm10 = vcmp.gt.f32.partialorder %v6740_v40, 0.0 }
 0x136   : > { %v6771_v13 = vpop.eup %5854  ;;  %v597_v18 = vpop.f32.mrb[11].mxu0  ;;  %5876 = vpow2.f32 %v790_v55  ;;  %v6789_v39 = vadd.f32 %v595_v9, %v6700_v61  ;;  %v659_v52 = vmin.f32 %v6782_v26, 0.0  ;;  %vm691_vm11 = vcmp.gt.f32.partialorder %v6782_v26, 0.0 }
 0x137   : > { %v6773_v19 = vpop.f32.mrb[11].mxu1  ;;  %v6775_v20 = vpop.eup %5856  ;;  %5878 = vtanh.f32 %v730_v1  ;;  %v874_v28 = vmul.f32 %v5851_v63, %v842_v15  ;;  %v816_v63 = vmul.f32 1.442695, %v669_v29  ;;  %v722_v1 = vmul.f32 0.5, %v658_v31 }
 0x138   : > { %v5859_v23 = vpop.eup %5858  ;;  %5880 = vpow2.f32 %v810_v8  ;;  %v660_v9 = vmin.f32 %v6789_v39, 0.0  ;;  %v6835_v29 = vadd.f32 %v6736_v37, %v6703_v62  ;;  %vm690_vm13 = vcmp.gt.f32.partialorder %v6779_v14, 0.0 }
 0x139   : > { %v5861_v27 = vpop.eup %5860  ;;  %5882 = vtanh.f32 %v721_v16  ;;  %v6805_v59 = vsel %vm682_vm3, %v6706_v4, %v874_v28  ;;  %v6819_v4 = vadd.f32 %v6728_v32, %v6700_v61  ;;  %v6831_v28 = vadd.f32 %v597_v18, %v6703_v62 }
 0x13a   : > { %v6786_v33 = vpop.eup %5862  ;;  %v844_v35 = vadd.f32 1.0, %v5861_v27  ;;  %5884 = vpow2.f32 %v792_v21  ;;  %v601_v47 = vpop.f32.mrb[12].mxu0  ;;  %9199 = vst [vmem:[#allocation10_spill] sm:$0xff] %v6805_v59  ;;  %9202 = vst [vmem:[#allocation13_spill] sm:$0xff] %v6835_v29  ;;  %v671_v0 = vmin.f32 %v6835_v29, 0.0  ;;  %vm692_vm14 = vcmp.gt.f32.partialorder %v6789_v39, 0.0 }
 0x13b   : > { %v6791_v41 = vpop.eup %5864  ;;  %v6795_v48 = vpop.f32.mrb[12].mxu1  ;;  %5886 = vtanh.f32 %v731_v24  ;;  %9201 = vst [vmem:[#allocation12_spill] sm:$0xff] %v6819_v4  ;;  %v670_v32 = vmin.f32 %v6819_v4, 0.0  ;;  %vm693_vm12 = vcmp.gt.f32.partialorder %v6831_v28, 0.0  ;;  %vm699_vm15 = vcmp.gt.f32.partialorder %v6749_v45, 0.0 }
 0x13c   : > { %v6797_v49 = vpop.eup %5866  ;;  %v876_v50 = vmul.f32 %v5859_v23, %v844_v35  ;;  %v603_v53 = vpop.f32.mrb[13].mxu0  ;;  %5888 = vpow2.f32 %v812_v25  ;;  %v794_v23 = vmul.f32 1.442695, %v658_v31  ;;  %v796_v25 = vmul.f32 1.442695, %v659_v52 }
 0x13d   : > { %v6800_v54 = vpop.f32.mrb[13].mxu1  ;;  %v6802_v55 = vpop.eup %5868  ;;  %5890 = vtanh.f32 %v732_v38  ;;  %v724_v31 = vmul.f32 0.5, %v660_v9  ;;  %v734_v18 = vmul.f32 0.5, %v670_v32  ;;  %v818_v37 = vmul.f32 1.442695, %v670_v32 }
 0x13e   : > { %v605_v2 = vpop.f32.mrb[14].mxu0  ;;  %v6807_v3 = vpop.f32.mrb[14].mxu1  ;;  %v6814_v8 = vsel %vm684_vm4, %v6715_v12, %v876_v50  ;;  %5892 = vpow2.f32 %v814_v43  ;;  %v723_v12 = vmul.f32 0.5, %v659_v52  ;;  %v798_v43 = vmul.f32 1.442695, %v660_v9 }
 0x13f   : > { %v6809_v6 = vpop.eup %5870  ;;  %9200 = vst [vmem:[#allocation11_spill] sm:$0xff] %v6814_v8  ;;  %v6821_v15 = vpop.f32.mrb[15].mxu0  ;;  %5894 = vtanh.f32 %v733_v51  ;;  %v661_v50 = vmin.f32 %v6831_v28, 0.0  ;;  %v6842_v51 = vadd.f32 %v6742_v42, %v6700_v61  ;;  %v6852_v42 = vadd.f32 %v6751_v46, %v6703_v62 }
 0x140   : > { %v6823_v16 = vpop.f32.mrb[15].mxu1  ;;  %v5873_v21 = vpop.eup %5872  ;;  %5896 = vpow2.f32 %v816_v63  ;;  %v6857_v32 = vadd.f32 %v601_v47, %v6700_v61  ;;  %v6860_v56 = vadd.f32 %v603_v53, %v6703_v62  ;;  %v843_v47 = vadd.f32 1.0, %v6775_v20 }
 0x141   : > { %v6827_v24 = vpop.eup %5874  ;;  %5898 = vtanh.f32 %v722_v1  ;;  %9204 = vst [vmem:[#allocation15_spill] sm:$0xff] %v6842_v51  ;;  %v800_v22 = vmul.f32 1.442695, %v661_v50  ;;  %v672_v58 = vmin.f32 %v6842_v51, 0.0  ;;  %9206 = vst [vmem:[#allocation17_spill] sm:$0xff] %v6852_v42  ;;  %v6877_v4 = vadd.f32 1.0, %v5873_v21 }
 0x142   : > { %v5877_v27 = vpop.eup %5876  ;;  %5900 = vpow2.f32 %v794_v23  ;;  %v725_v23 = vmul.f32 0.5, %v661_v50  ;;  %v673_v50 = vmin.f32 %v6852_v42, 0.0  ;;  %v6875_v42 = vadd.f32 1.0, %v6802_v55 }
 0x143   : > { %v6837_v35 = vpop.eup %5878  ;;  %5902 = vtanh.f32 %v723_v12  ;;  %v736_v46 = vmul.f32 0.5, %v672_v58  ;;  %v822_v53 = vmul.f32 1.442695, %v672_v58  ;;  %v6881_v20 = vadd.f32 1.0, %v5877_v27 }
 0x144   : > { %9203 = vst [vmem:[#allocation14_spill] sm:$0xff] %v6837_v35  ;;  %v5881_v38 = vpop.eup %5880  ;;  %5904 = vpow2.f32 %v796_v25  ;;  %v735_v25 = vmul.f32 0.5, %v671_v0  ;;  %v6888_v21 = vadd.f32 %v6760_v60, %v6700_v61  ;;  %v6903_v60 = vadd.f32 %v6763_v5, %v6703_v62 }
 0x145   : > { %v6844_v52 = vpop.eup %5882  ;;  %5906 = vtanh.f32 %v724_v31  ;;  %vm695_vm0 = vcmp.gt.f32.partialorder %v6860_v56, 0.0  ;;  %vm694_vm2 = vcmp.gt.f32.partialorder %v6857_v32, 0.0 }
 0x146   : > { %v5885_v63 = vpop.eup %5884  ;;  %5908 = vpow2.f32 %v798_v43  ;;  %v820_v43 = vmul.f32 1.442695, %v671_v0  ;;  %v845_v0 = vadd.f32 1.0, %v6791_v41  ;;  %9211 = vst [vmem:[#allocation22_spill] sm:$0xff] %v6888_v21 }
 0x147   : > { %v6847_v1 = vpop.eup %5886  ;;  %5910 = vtanh.f32 %v734_v18  ;;  %v6867_v18 = vadd.f32 %v605_v2, %v6700_v61  ;;  %v824_v2 = vmul.f32 1.442695, %v673_v50 }
 0x148   : > { %9205 = vst [vmem:[#allocation16_spill] sm:$0xff] %v6847_v1  ;;  %v5889_v9 = vpop.eup %5888  ;;  %5912 = vpow2.f32 %v818_v37  ;;  %v662_v1 = vmin.f32 %v6857_v32, 0.0  ;;  %v737_v37 = vmul.f32 0.5, %v673_v50  ;;  %v6898_v50 = vadd.f32 1.0, %v5885_v63 }
 0x149   : > { %v6854_v12 = vpop.eup %5890  ;;  %5914 = vtanh.f32 %v725_v23  ;;  %v664_v41 = vmin.f32 %v6867_v18, 0.0  ;;  %vm696_vm3 = vcmp.gt.f32.partialorder %v6867_v18, 0.0 }
 0x14a   : > { %9207 = vst [vmem:[#allocation18_spill] sm:$0xff] %v6854_v12  ;;  %v5893_v31 = vpop.eup %5892  ;;  %5916 = vpow2.f32 %v800_v22  ;;  %v726_v58 = vmul.f32 0.5, %v662_v1  ;;  %v802_v55 = vmul.f32 1.442695, %v662_v1  ;;  %v674_v1 = vmin.f32 %v6888_v21, 0.0 }
 0x14b   : > { %v6863_v35 = vpop.eup %5894  ;;  %5918 = vtanh.f32 %v735_v25  ;;  %v6892_v25 = vadd.f32 %v6821_v15, %v6703_v62  ;;  %v6907_v15 = vadd.f32 1.0, %v5889_v9 }
 0x14c   : > { %9208 = vst [vmem:[#allocation19_spill] sm:$0xff] %v6863_v35  ;;  %v5897_v12 = vpop.eup %5896  ;;  %v663_v35 = vmin.f32 %v6860_v56, 0.0  ;;  %5920 = vpow2.f32 %v820_v43  ;;  %v6896_v43 = vadd.f32 1.0, %v5881_v38  ;;  %v728_v38 = vmul.f32 0.5, %v664_v41 }
 0x14d   : > { %v6870_v51 = vpop.eup %5898  ;;  %5922 = vtanh.f32 %v736_v46  ;;  %9215 = vst [vmem:[#allocation26_spill] sm:$0xff] %v6907_v15  ;;  %v665_v63 = vmin.f32 %v6892_v25, 0.0  ;;  %v738_v9 = vmul.f32 0.5, %v674_v1  ;;  %v675_v15 = vmin.f32 %v6903_v60, 0.0 }
 0x14e   : > { %9209 = vst [vmem:[#allocation20_spill] sm:$0xff] %v6870_v51  ;;  %v5901_v23 = vpop.eup %5900  ;;  %5924 = vpow2.f32 %v822_v53  ;;  %9213 = vst [vmem:[#allocation24_spill] sm:$0xff] %v6896_v43  ;;  %v727_v46 = vmul.f32 0.5, %v663_v35  ;;  %v804_v53 = vmul.f32 1.442695, %v663_v35  ;;  %vm697_vm4 = vcmp.gt.f32.partialorder %v6892_v25, 0.0 }
 0x14f   : > { %v6879_v29 = vpop.eup %5902  ;;  %5926 = vtanh.f32 %v737_v37  ;;  %v6910_v37 = vadd.f32 1.0, %v5893_v31  ;;  %v806_v35 = vmul.f32 1.442695, %v664_v41  ;;  %v6916_v21 = vadd.f32 1.0, %v5901_v23 }
 0x150   : > { %9210 = vst [vmem:[#allocation21_spill] sm:$0xff] %v6879_v29  ;;  %v5905_v22 = vpop.eup %5904  ;;  %5928 = vpow2.f32 %v824_v2  ;;  %v6923_v31 = vadd.f32 %v6769_v11, %v6700_v61  ;;  %v729_v41 = vmul.f32 0.5, %v665_v63  ;;  %v875_v23 = vmul.f32 %v6771_v13, %v843_v47 }
 0x151   : > { %v6894_v27 = vpop.eup %5906  ;;  %5930 = vtanh.f32 %v726_v58  ;;  %9216 = vst [vmem:[#allocation27_spill] sm:$0xff] %v6910_v37  ;;  %v6918_v5 = vadd.f32 1.0, %v5905_v22  ;;  %v826_v58 = vmul.f32 1.442695, %v674_v1  ;;  %v877_v22 = vmul.f32 %v6786_v33, %v845_v0 }
 0x152   : > { %9212 = vst [vmem:[#allocation23_spill] sm:$0xff] %v6894_v27  ;;  %v5909_v51 = vpop.eup %5908  ;;  %v6912_v27 = vadd.f32 1.0, %v5897_v12  ;;  %5932 = vpow2.f32 %v802_v55  ;;  %v6932_v1 = vadd.f32 %v6773_v19, %v6703_v62  ;;  %v739_v11 = vmul.f32 0.5, %v675_v15 }
 0x153   : > { %v6905_v29 = vpop.eup %5910  ;;  %5934 = vtanh.f32 %v727_v46  ;;  %v808_v46 = vmul.f32 1.442695, %v665_v63  ;;  %v6944_v13 = vsel %vm685_vm6, %v6721_v17, %v877_v22  ;;  %v6946_v47 = vadd.f32 1.0, %v5909_v51 }
 0x154   : > { %9214 = vst [vmem:[#allocation25_spill] sm:$0xff] %v6905_v29  ;;  %v5913_v43 = vpop.eup %5912  ;;  %5936 = vpow2.f32 %v804_v53  ;;  %v676_v53 = vmin.f32 %v6923_v31, 0.0  ;;  %9219 = vst [vmem:[#allocation30_spill] sm:$0xff] %v6944_v13  ;;  %v828_v19 = vmul.f32 1.442695, %v675_v15  ;;  %v6957_v17 = vadd.f32 %v6795_v48, %v6700_v61 }
 0x155   : > { %v6914_v2 = vpop.eup %5914  ;;  %5938 = vtanh.f32 %v728_v38  ;;  %v6939_v38 = vsel %vm683_vm5, %v6709_v7, %v875_v23  ;;  %v677_v7 = vmin.f32 %v6932_v1, 0.0  ;;  %v6961_v51 = vadd.f32 %v6800_v54, %v6703_v62 }
 0x156   : > { %v5917_v29 = vpop.eup %5916  ;;  %5940 = vpow2.f32 %v806_v35  ;;  %9218 = vst [vmem:[#allocation29_spill] sm:$0xff] %v6939_v38  ;;  %v971_v0 = vpack.c.bf16 %v6944_v13, %v6939_v38  ;;  %v740_v35 = vmul.f32 0.5, %v676_v53  ;;  %v6965_v15 = vadd.f32 %v6807_v3, %v6700_v61 }
 0x157   : > { %v6925_v12 = vpop.eup %5918  ;;  %5942 = vtanh.f32 %v738_v9  ;;  %v830_v9 = vmul.f32 1.442695, %v676_v53  ;;  %v6972_v22 = vadd.f32 1.0, %v5917_v29  ;;  %v9220_v48 = vpack.c.bf16 %v6814_v8, %v6805_v59 }
 0x158   : > { %v5921_v55 = vpop.eup %5920  ;;  %5944 = vpow2.f32 %v826_v58  ;;  %1121 = vmatprep.mubr.bf16.mxu1 %v971_v0  ;;  %v832_v53 = vmul.f32 1.442695, %v677_v7  ;;  %v678_v61 = vmin.f32 %v6957_v17, 0.0  ;;  %v679_v3 = vmin.f32 %v6961_v51, 0.0 }
 0x159   : > { %v6934_v37 = vpop.eup %5922  ;;  %5946 = vtanh.f32 %v729_v41  ;;  %v6970_v41 = vadd.f32 1.0, %v5913_v43  ;;  %1122 = vmatmul.mubr.bf16.vlgmr.msra.gmra.mrb[16].mxu1 %v9220_v48  ;;  %v6982_v43 = vadd.f32 1.0, %v5921_v55  ;;  %vm698_vm5 = vcmp.gt.f32.partialorder %v6734_v36, 0.0 }
 0x15a   : > { %9217 = vst [vmem:[#allocation28_spill] sm:$0xff] %v6934_v37  ;;  %v5925_v33 = vpop.eup %5924  ;;  %5948 = vpow2.f32 %v808_v46  ;;  %v741_v46 = vmul.f32 0.5, %v677_v7  ;;  %v834_v7 = vmul.f32 1.442695, %v678_v61  ;;  %vm700_vm6 = vcmp.gt.f32.partialorder %v6758_v57, 0.0 }
 0x15b   : > { %v6950_v63 = vpop.eup %5926  ;;  %5950 = vtanh.f32 %v739_v11  ;;  %v6984_v29 = vadd.f32 1.0, %v5925_v33  ;;  %v680_v11 = vmin.f32 %v6965_v15, 0.0  ;;  %v743_v33 = vmul.f32 0.5, %v679_v3 }
 0x15c   : > { %v5929_v23 = vpop.eup %5928  ;;  %5952 = vpow2.f32 %v828_v19  ;;  %v742_v19 = vmul.f32 0.5, %v678_v61  ;;  %v879_v61 = vmul.f32 %v6809_v6, %v6877_v4  ;;  %v878_v6 = vmul.f32 %v6797_v49, %v6875_v42 }
 0x15d   : > { %v6967_v58 = vpop.eup %5930  ;;  %5954 = vtanh.f32 %v740_v35  ;;  %v6987_v48 = vadd.f32 1.0, %v5929_v23  ;;  %v836_v23 = vmul.f32 1.442695, %v679_v3  ;;  %v880_v4 = vmul.f32 %v6827_v24, %v6881_v20 }
 0x15e   : > { %v5933_v54 = vpop.eup %5932  ;;  %5956 = vpow2.f32 %v830_v9  ;;  %v744_v9 = vmul.f32 0.5, %v680_v11  ;;  %v7037_v20 = vsel %vm686_vm9, %v6726_v30, %v878_v6  ;;  %vm711_vm9 = vcmp.gt.f32.partialorder %v6961_v51, 0.0 }
 0x15f   : > { %v6979_v0 = vpop.eup %5934  ;;  %v6993_v38 = vadd.f32 1.0, %v5933_v54  ;;  %5958 = vtanh.f32 %v741_v46  ;;  %v838_v54 = vmul.f32 1.442695, %v680_v11  ;;  %v7007_v46 = vadd.f32 %v6823_v16, %v6703_v62 }
 0x160   : > { %v5937_v13 = vpop.eup %5936  ;;  %5960 = vpow2.f32 %v832_v53  ;;  %v7022_v62 = vsel %vm687_vm7, %v6731_v34, %v879_v61  ;;  %v7049_v30 = vsel %vm688_vm10, %v6740_v40, %v880_v4  ;;  %vm707_vm10 = vcmp.gt.f32.partialorder %v6903_v60, 0.0 }
 0x161   : > { %v6989_v8 = vpop.eup %5938  ;;  %v6995_v55 = vadd.f32 1.0, %v5937_v13  ;;  %5962 = vtanh.f32 %v742_v19  ;;  %v881_v13 = vmul.f32 %v6844_v52, %v6898_v50  ;;  %v681_v16 = vmin.f32 %v7007_v46, 0.0 }
 0x162   : > { %v5941_v35 = vpop.eup %5940  ;;  %5964 = vpow2.f32 %v834_v7  ;;  %v9222_v7 = vld [vmem:[#allocation12_spill] sm:$0xff] }
 0x163   : > { %v7000_v59 = vpop.eup %5942  ;;  %v856_v53 = vadd.f32 1.0, %v5941_v35  ;;  %5966 = vtanh.f32 %v743_v33  ;;  %v7027_v49 = vsel %vm689_vm8, %v6746_v44, %v881_v13  ;;  %v9221_v44 = vld [vmem:[#allocation13_spill] sm:$0xff]  ;;  %v840_v11 = vmul.f32 1.442695, %v681_v16  ;;  %v9225_v13 = vld [vmem:[#allocation15_spill] sm:$0xff] }
 0x164   : > { %v5945_v37 = vpop.eup %5944  ;;  %5968 = vpow2.f32 %v836_v23  ;;  %v973_v42 = vpack.c.bf16 %v7027_v49, %v7022_v62  ;;  %vm703_vm7 = vcmp.gt.f32.partialorder %v9221_v44, 0.0  ;;  %vm702_vm8 = vcmp.gt.f32.partialorder %v9222_v7, 0.0  ;;  %v9223_v33 = vld [vmem:[#allocation17_spill] sm:$0xff] }
 0x165   : > { %v5947_v3 = vpop.eup %5946  ;;  %v7030_v52 = vadd.f32 1.0, %v5945_v37  ;;  %5970 = vtanh.f32 %v744_v9  ;;  %v745_v37 = vmul.f32 0.5, %v681_v16  ;;  %vm705_vm1 = vcmp.gt.f32.partialorder %v9223_v33, 0.0  ;;  %v9224_v35 = vld [vmem:[#allocation21_spill] sm:$0xff]  ;;  %v9226_v16 = vld [vmem:[#allocation20_spill] sm:$0xff] }
 0x166   : > { %v5949_v24 = vpop.eup %5948  ;;  %5972 = vpow2.f32 %v838_v54  ;;  %1129 = vmatprep.mubr.bf16.mxu1 %v973_v42  ;;  %v883_v23 = vmul.f32 %v9224_v35, %v6918_v5  ;;  %v885_v9 = vmul.f32 %v6914_v2, %v6972_v22  ;;  %v972_v54 = vpack.c.bf16 %v7049_v30, %v7037_v20  ;;  %v9227_v22 = vld [vmem:[#allocation23_spill] sm:$0xff] }
 0x167   : > { %v7039_v34 = vpop.eup %5950  ;;  %v857_v50 = vadd.f32 1.0, %v5949_v24  ;;  %5974 = vtanh.f32 %v745_v37  ;;  %v882_v40 = vmul.f32 %v9226_v16, %v6916_v21  ;;  %v884_v24 = vmul.f32 %v9227_v22, %v6946_v47 }
 0x168   : > { %v5953_v19 = vpop.eup %5952  ;;  %5976 = vpow2.f32 %v840_v11  ;;  %v7067_v5 = vsel %vm691_vm11, %v6782_v26, %v883_v23  ;;  %v7072_v2 = vsel %vm693_vm12, %v6831_v28, %v885_v9  ;;  %1130 = vmatmul.mubr.bf16.gmra.mrb[20].mxu1 %v972_v54  ;;  %v887_v28 = vmul.f32 %v6979_v0, %v6995_v55  ;;  %v9228_v11 = vld [vmem:[#allocation22_spill] sm:$0xff] }
 0x169   : > { %v7055_v61 = vpop.eup %5954  ;;  %v7058_v6 = vadd.f32 1.0, %v5953_v19  ;;  %v975_v26 = vpack.c.bf16 %v7072_v2, %v7067_v5  ;;  %v7085_v21 = vsel %vm690_vm13, %v6779_v14, %v882_v40  ;;  %vm706_vm11 = vcmp.gt.f32.partialorder %v9228_v11, 0.0  ;;  %v9229_v55 = vld [vmem:[#allocation26_spill] sm:$0xff] }
 0x16a   : > { %v5957_v4 = vpop.eup %5956  ;;  %vm708_vm12 = vcmp.gt.f32.partialorder %v6923_v31, 0.0  ;;  %v7094_v19 = vsel %vm692_vm14, %v6789_v39, %v884_v24  ;;  %v889_v35 = vmul.f32 %v5947_v3, %v857_v50  ;;  %v886_v23 = vmul.f32 %v6967_v58, %v6993_v38  ;;  %v9230_v3 = vld [vmem:[#allocation16_spill] sm:$0xff]  ;;  %v9231_v50 = vld [vmem:[#allocation19_spill] sm:$0xff] }
 0x16b   : > { %v5959_v42 = vpop.eup %5958  ;;  %v7077_v37 = vadd.f32 1.0, %v5957_v4  ;;  %v888_v14 = vmul.f32 %v6989_v8, %v856_v53  ;;  %vm710_vm13 = vcmp.gt.f32.partialorder %v6957_v17, 0.0  ;;  %1137 = vmatprep.mubr.bf16.mxu1 %v975_v26  ;;  %v974_v0 = vpack.c.bf16 %v7094_v19, %v7085_v21  ;;  %v9233_v24 = vld [vmem:[#allocation24_spill] sm:$0xff]  ;;  %v9234_v26 = vld [vmem:[#allocation14_spill] sm:$0xff] }
 0x16c   : > { %v5961_v47 = vpop.eup %5960  ;;  %v7106_v39 = vsel %vm695_vm0, %v6860_v56, %v887_v28  ;;  %v891_v38 = vmul.f32 %v9230_v3, %v9229_v55  ;;  %vm713_vm14 = vcmp.gt.f32.partialorder %v7007_v46, 0.0  ;;  %v7114_v8 = vsel %vm697_vm4, %v6892_v25, %v889_v35  ;;  %v9236_v35 = vld [vmem:[#allocation18_spill] sm:$0xff] }
 0x16d   : > { %v5963_v9 = vpop.eup %5962  ;;  %v869_v54 = vadd.f32 1.0, %v5961_v47  ;;  %v7119_v53 = vsel %vm694_vm2, %v6857_v32, %v886_v23  ;;  %v7124_v56 = vsel %vm696_vm3, %v6867_v18, %v888_v14  ;;  %v893_v16 = vmul.f32 %v9231_v50, %v6912_v27  ;;  %v9235_v47 = vld [vmem:[#allocation27_spill] sm:$0xff] }
 0x16e   : > { %v5965_v58 = vpop.eup %5964  ;;  %vm712_vm0 = vcmp.gt.f32.partialorder %v6965_v15, 0.0  ;;  %v977_v25 = vpack.c.bf16 %v7114_v8, %v7106_v39  ;;  %v976_v22 = vpack.c.bf16 %v7124_v56, %v7119_v53  ;;  %v7136_v32 = vsel %vm699_vm15, %v6749_v45, %v891_v38 }
 0x16f   : > { %v5967_v40 = vpop.eup %5966  ;;  %v870_v4 = vadd.f32 1.0, %v5965_v58  ;;  %vm9232_vm2 = vcmp.gt.f32.partialorder %v6767_v10, 0.0  ;;  %v890_v28 = vmul.f32 %v9234_v26, %v9233_v24  ;;  %v892_v23 = vmul.f32 %v9236_v35, %v9235_v47 }
 0x170   : > { %v5969_v18 = vpop.eup %5968  ;;  %v7141_v27 = vsel %vm9232_vm2, %v6767_v10, %v893_v16  ;;  %v895_v14 = vmul.f32 %v6925_v12, %v6982_v43  ;;  %v897_v38 = vmul.f32 %v6950_v63, %v6987_v48  ;;  %v9237_v10 = vld [vmem:[#allocation25_spill] sm:$0xff]  ;;  %v9238_v63 = vld [vmem:[#allocation28_spill] sm:$0xff]  ;;  %1138 = vmatmul.mubr.bf16.gmra.mrb[24].mxu1 %v974_v0  ;;  %vm9239_vm15 = vcmp.gt.f32.partialorder %v9225_v13, 0.0 }
 0x171   : > { %v5971_v55 = vpop.eup %5970  ;;  %v871_v3 = vadd.f32 1.0, %v5969_v18  ;;  %v979_v45 = vpack.c.bf16 %v7141_v27, %v7136_v32  ;;  %v894_v58 = vmul.f32 %v9237_v10, %v6970_v41  ;;  %v7158_v16 = vsel %vm698_vm5, %v6734_v36, %v890_v28  ;;  %1145 = vmatprep.mubr.bf16.mxu1 %v977_v25  ;;  %v5606_v10 = vld [vmem:[#allocation2 + $0x64] ss:$8 sps:$4 sm:$0xff]  }
 0x172   : > { %v5973_v50 = vpop.eup %5972  ;;  %v7163_v12 = vsel %vm700_vm6, %v6758_v57, %v892_v23  ;;  %v7168_v43 = vsel %vm703_vm7, %v9221_v44, %v895_v14  ;;  %v896_v48 = vmul.f32 %v9238_v63, %v6984_v29  ;;  %v7177_v24 = vsel %vm705_vm1, %v9223_v33, %v897_v38  ;;  %v5604_v38 = vld [vmem:[#allocation2 + $0x60] ss:$8 sps:$4 sm:$0xff]   ;;  %1330 = vmatprep.subr.bf16.mxu0 %v5606_v10 }
 0x173   : > { %v5975_v41 = vpop.eup %5974  ;;  %v872_v18 = vadd.f32 1.0, %v5973_v50  ;;  %v978_v36 = vpack.c.bf16 %v7163_v12, %v7158_v16  ;;  %v7182_v57 = vsel %vm702_vm8, %v9222_v7, %v894_v58  ;;  %v981_v29 = vpack.c.bf16 %v7177_v24, %v7168_v43  ;;  %v5609_v58 = vld [vmem:[#allocation2 + $0x74] ss:$8 sps:$4 sm:$0xff]   ;;  %1331 = vmatpush1.bf16.msra.mxu0 %v5604_v38  ;;  %v5607_v50 = vld [vmem:[#allocation2 + $0x70] ss:$8 sps:$4 sm:$0xff]  }
 0x174   : > { %v5977_v44 = vpop.eup %5976  ;;  %v7189_v0 = vsel %vm9239_vm15, %v9225_v13, %v896_v48  ;;  %v899_v26 = vmul.f32 %v7039_v34, %v7058_v6  ;;  %v901_v33 = vmul.f32 %v5959_v42, %v869_v54  ;;  %v898_v7 = vmul.f32 %v7000_v59, %v7030_v52  ;;  %1332 = vmatprep.subr.bf16.mxu0 %v5609_v58  ;;  %v5610_v63 = vld [vmem:[#allocation4] ss:$8 sps:$4 sm:$0xff]   ;;  %v5612_v48 = vld [vmem:[#allocation4 + $0x4] ss:$8 sps:$4 sm:$0xff]  }
 0x175   : > { %v873_v28 = vadd.f32 1.0, %v5977_v44  ;;  %v980_v47 = vpack.c.bf16 %v7189_v0, %v7182_v57  ;;  %v900_v25 = vmul.f32 %v7055_v61, %v7077_v37  ;;  %vm9240_vm1 = vcmp.gt.f32.partialorder %v6932_v1, 0.0  ;;  %1683 = vmatprep.subr.bf16.mxu1 %v5612_v48  ;;  %v5616_v44 = vld [vmem:[#allocation4 + $0x20] ss:$8 sps:$4 sm:$0xff]  }
 0x176   : > { %v7202_v35 = vsel %vm707_vm10, %v6903_v60, %v899_v26  ;;  %v7207_v34 = vsel %vm9240_vm1, %v6932_v1, %v901_v33  ;;  %v903_v13 = vmul.f32 %v5967_v40, %v871_v3  ;;  %v902_v6 = vmul.f32 %v5963_v9, %v870_v4  ;;  %v9241_v4 = vld [vmem:[#allocation8_spill] sm:$0xff]  ;;  %1684 = vmatpush1.bf16.msra.mxu1 %v5610_v63  ;;  %v5619_v26 = vld [vmem:[#allocation4 + $0x30] ss:$8 sps:$4 sm:$0xff]  }
 0x177   : > { %v983_v42 = vpack.c.bf16 %v7207_v34, %v7202_v35  ;;  %v930_v59 = vsel %vm706_vm11, %v9228_v11, %v898_v7  ;;  %v932_v52 = vsel %vm708_vm12, %v6923_v31, %v900_v25  ;;  %v905_v60 = vmul.f32 %v5975_v41, %v873_v28  ;;  %1333 = vmatpush1.bf16.msra.mxu0 %v5607_v50  ;;  %v5615_v41 = vld [vmem:[#allocation4 + $0x14] ss:$8 sps:$4 sm:$0xff]   ;;  %v5624_v33 = vld [vmem:[#allocation4 + $0x44] ss:$8 sps:$4 sm:$0xff]   ;;  %v5622_v28 = vld [vmem:[#allocation4 + $0x40] ss:$8 sps:$4 sm:$0xff]  }
 0x178   : > { %v982_v61 = vpack.c.bf16 %v932_v52, %v930_v59  ;;  %v935_v1 = vsel %vm711_vm9, %v6961_v51, %v903_v13  ;;  %v904_v37 = vmul.f32 %v5971_v55, %v872_v18  ;;  %v934_v9 = vsel %vm710_vm13, %v6957_v17, %v902_v6  ;;  %1146 = vmatmul.mubr.bf16.gmra.mrb[28].mxu1 %v976_v22  ;;  %v1796_v51 = vld [vmem:[%s9141_s9] sm:$0x3]  ;;  %v9242_v17 = vld [vmem:[#allocation9_spill] sm:$0xff]  ;;  %v5613_v18 = vld [vmem:[#allocation4 + $0x10] ss:$8 sps:$4 sm:$0xff]  }
 0x179   : > { %v937_v54 = vsel %vm713_vm14, %v7007_v46, %v905_v60  ;;  %1153 = vmatprep.mubr.bf16.mxu1 %v979_v45  ;;  %v7233_v23 = vrot.slane %v1796_v51, %v9241_v4  ;;  %v7236_v14 = vrot.slane %v1796_v51, %v9242_v17  ;;  %1685 = vmatprep.subr.bf16.mxu1 %v5615_v41  ;;  %v5625_v7 = vld [vmem:[#allocation4 + $0x50] ss:$8 sps:$4 sm:$0xff]   ;;  %v5630_v25 = vld [vmem:[#allocation4 + $0x64] ss:$8 sps:$4 sm:$0xff]   ;;  %v5628_v13 = vld [vmem:[#allocation4 + $0x60] ss:$8 sps:$4 sm:$0xff]  }
 0x17a   : > { %v985_v11 = vpack.c.bf16 %v937_v54, %v935_v1  ;;  %v936_v31 = vsel %vm712_vm0, %v6965_v15, %v904_v37  ;;  %1686 = vmatpush1.bf16.msra.mxu1 %v5613_v18  ;;  %v5633_v6 = vld [vmem:[#allocation4 + $0x74] ss:$8 sps:$4 sm:$0xff]   ;;  %v5640_v37 = vld [vmem:[#allocation4 + $0xa0] ss:$8 sps:$4 sm:$0xff]   ;;  %v5649_v51 = vld [vmem:[#allocation4 + $0xd0] ss:$8 sps:$4 sm:$0xff]  }
 0x17b   : > { %v984_v40 = vpack.c.bf16 %v936_v31, %v934_v9  ;;  %v7239_v46 = vmul.f32 %v7233_v23, %v930_v59  ;;  %v7242_v55 = vmul.f32 %v7233_v23, %v932_v52  ;;  %v7245_v15 = vmul.f32 %v7233_v23, %v934_v9  ;;  %v5636_v59 = vld [vmem:[#allocation4 + $0x84] ss:$8 sps:$4 sm:$0xff]   ;;  %v5634_v52 = vld [vmem:[#allocation4 + $0x80] ss:$8 sps:$4 sm:$0xff]   ;;  %v5639_v60 = vld [vmem:[#allocation4 + $0x94] ss:$8 sps:$4 sm:$0xff]  }
 0x17c   : > { %v7248_v22 = vmul.f32 %v7236_v14, %v935_v1  ;;  %v7251_v3 = vmul.f32 %v7233_v23, %v936_v31  ;;  %v7254_v45 = vmul.f32 %v7236_v14, %v937_v54  ;;  %v5642_v1 = vld [vmem:[#allocation4 + $0xa4] ss:$8 sps:$4 sm:$0xff]   ;;  %v5645_v9 = vld [vmem:[#allocation4 + $0xb4] ss:$8 sps:$4 sm:$0xff]   ;;  %v5643_v54 = vld [vmem:[#allocation4 + $0xb0] ss:$8 sps:$4 sm:$0xff]  }
 0x17d   : > { %v5646_v31 = vld [vmem:[#allocation4 + $0xc0] ss:$8 sps:$4 sm:$0xff]  }
 0x17e   : > { %9243 = vst [vmem:[#allocation13_spill] sm:$0xff] %v7251_v3  ;;  %9244 = vst [vmem:[#allocation12_spill] sm:$0xff] %v7254_v45  ;;  %v7259_v10 = vld [vmem:[%s9136_s4] ss:$0 sm:$0xff] }
 0x180   : > { %1154 = vmatmul.mubr.bf16.gmra.mrb[32].mxu1 %v978_v36  ;;  %v5618_v36 = vld [vmem:[#allocation4 + $0x24] ss:$8 sps:$4 sm:$0xff]  }
 0x181   : > { %1161 = vmatprep.mubr.bf16.mxu1 %v981_v29  ;;  %1687 = vmatprep.subr.bf16.mxu1 %v5618_v36  ;;  %v5621_v29 = vld [vmem:[#allocation4 + $0x34] ss:$8 sps:$4 sm:$0xff]  }
 0x182   : > { %1688 = vmatpush1.bf16.msra.mxu1 %v5616_v44 }
 0x183   : > { %1689 = vmatprep.subr.bf16.mxu1 %v5621_v29 }
 0x186   : > { %1690 = vmatpush1.bf16.msra.mxu1 %v5619_v26 }
 0x187   : > { %1691 = vmatprep.subr.bf16.mxu1 %v5624_v33  ;;  %v9245_v33 = vmov 0  }
 0x188   : > { %1162 = vmatmul.mubr.bf16.gmra.mrb[36].mxu1 %v980_v47  ;;  %v5627_v47 = vld [vmem:[#allocation4 + $0x54] ss:$8 sps:$4 sm:$0xff]  }
 0x189   : > { %1169 = vmatprep.mubr.bf16.mxu1 %v983_v42  ;;  %v5631_v42 = vld [vmem:[#allocation4 + $0x70] ss:$8 sps:$4 sm:$0xff]  }
 0x18a   : > { %1692 = vmatpush1.bf16.msra.mxu1 %v5622_v28 }
 0x18b   : > { %1693 = vmatprep.subr.bf16.mxu1 %v5627_v47 }
 0x18e   : > { %1694 = vmatpush1.bf16.msra.mxu1 %v5625_v7 }
 0x18f   : > { %1695 = vmatprep.subr.bf16.mxu1 %v5630_v25 }
 0x190   : > { %1170 = vmatmul.mubr.bf16.gmra.mrb[40].mxu1 %v982_v61  ;;  %v5637_v61 = vld [vmem:[#allocation4 + $0x90] ss:$8 sps:$4 sm:$0xff]  }
 0x191   : > { %1177 = vmatprep.mubr.bf16.mxu1 %v985_v11  ;;  %v5648_v11 = vld [vmem:[#allocation4 + $0xc4] ss:$8 sps:$4 sm:$0xff]  }
 0x192   : > { %1696 = vmatpush1.bf16.msra.mxu1 %v5628_v13 }
 0x193   : > { %1697 = vmatprep.subr.bf16.mxu1 %v5633_v6 }
 0x196   : > { %1698 = vmatpush1.bf16.msra.mxu1 %v5631_v42 }
 0x197   : > { %1699 = vmatprep.subr.bf16.mxu1 %v5636_v59 }
 0x198   : > { %1178 = vmatmul.mubr.bf16.gmra.mrb[44].mxu1 %v984_v40  ;;  %v5651_v40 = vld [vmem:[#allocation4 + $0xd4] ss:$8 sps:$4 sm:$0xff]  }
 0x19a   : > { %1700 = vmatpush1.bf16.msra.mxu1 %v5634_v52 }
 0x19b   : > { %1701 = vmatprep.subr.bf16.mxu1 %v5639_v60 }
 0x19e   : > { %1702 = vmatpush1.bf16.msra.mxu1 %v5637_v61 }
 0x19f   : > { %1703 = vmatprep.subr.bf16.mxu1 %v5642_v1 }
 0x1a2   : > { %1704 = vmatpush1.bf16.msra.mxu1 %v5640_v37 }
 0x1a3   : > { %1705 = vmatprep.subr.bf16.mxu1 %v5645_v9 }
 0x1a6   : > { %1706 = vmatpush1.bf16.msra.mxu1 %v5643_v54 }
 0x1a7   : > { %1707 = vmatprep.subr.bf16.mxu1 %v5648_v11 }
 0x1aa   : > { %1708 = vmatpush1.bf16.msra.mxu1 %v5646_v31 }
 0x1ab   : > { %1709 = vmatprep.subr.bf16.mxu1 %v5651_v40 }
 0x1ae   : > { %1710 = vmatpush1.bf16.msra.mxu1 %v5649_v51 }
 0x22c   : > { %v5288_v38 = vpop.f32.mrb[16].mxu1 }
 0x22d   : > { %v5289_v58 = vpop.f32.mrb[17].mxu1 }
 0x22e   : > { %v5290_v50 = vadd.f32 %v5289_v58, %v5288_v38  ;;  %v5291_v63 = vpop.f32.mrb[18].mxu1 }
 0x22f   : > { %v5292_v48 = vpop.f32.mrb[19].mxu1 }
 0x230   : > { %v1124_v41 = vadd.f32 %v5290_v50, %v7259_v10  ;;  %v5293_v18 = vadd.f32 %v5292_v48, %v5291_v63 }
 0x232   : > { %v1127_v36 = vadd.f32 %v5293_v18, %v7259_v10  ;;  %v1186_v44 = vmax.f32 %v1124_v41, 0.0 }
 0x234   : > { %v1187_v29 = vmax.f32 %v1127_v36, 0.0 }
 0x236   : > { %v1218_v26 = vpack.c.bf16 %v1187_v29, %v1186_v44 }
 0x238   : > { %1351 = vmatmul.mubr.bf16.vlgmr.msra.gmra.mrb[16].mxu0 %v1218_v26 }
 0x239   : > { %1360 = vmatprep.mubr.bf16.mxu0 %v9245_v33 }
 0x23b   : > { %v5294_v28 = vpop.f32.mrb[20].mxu1 }
 0x23c   : > { %v5295_v47 = vpop.f32.mrb[21].mxu1 }
 0x23d   : > { %v5296_v7 = vadd.f32 %v5295_v47, %v5294_v28  ;;  %v5297_v25 = vpop.f32.mrb[22].mxu1 }
 0x23e   : > { %v5298_v13 = vpop.f32.mrb[23].mxu1 }
 0x23f   : > { %v1132_v6 = vadd.f32 %v5296_v7, %v7259_v10  ;;  %v5299_v42 = vadd.f32 %v5298_v13, %v5297_v25 }
 0x241   : > { %v1135_v59 = vadd.f32 %v5299_v42, %v7259_v10  ;;  %v1188_v52 = vmax.f32 %v1132_v6, 0.0 }
 0x243   : > { %v1189_v60 = vmax.f32 %v1135_v59, 0.0  ;;  %v5300_v61 = vpop.f32.mrb[24].mxu1 }
 0x244   : > { %v5301_v1 = vpop.f32.mrb[25].mxu1 }
 0x245   : > { %v5302_v37 = vadd.f32 %v5301_v1, %v5300_v61  ;;  %v5303_v9 = vpop.f32.mrb[26].mxu1  ;;  %v1219_v54 = vpack.c.bf16 %v1189_v60, %v1188_v52 }
 0x246   : > { %v5304_v11 = vpop.f32.mrb[27].mxu1 }
 0x247   : > { %v1140_v31 = vadd.f32 %v5302_v37, %v7259_v10  ;;  %v5305_v40 = vadd.f32 %v5304_v11, %v5303_v9  ;;  %1361 = vmatmul.mubr.bf16.gmra.mrb[20].mxu0 %v1219_v54 }
 0x248   : > { %1370 = vmatprep.mubr.bf16.mxu0 %v9245_v33 }
 0x249   : > { %v1143_v51 = vadd.f32 %v5305_v40, %v7259_v10  ;;  %v1190_v38 = vmax.f32 %v1140_v31, 0.0 }
 0x24b   : > { %v1191_v58 = vmax.f32 %v1143_v51, 0.0  ;;  %v5306_v50 = vpop.f32.mrb[28].mxu1 }
 0x24c   : > { %v5307_v63 = vpop.f32.mrb[29].mxu1 }
 0x24d   : > { %v5308_v48 = vadd.f32 %v5307_v63, %v5306_v50  ;;  %v5309_v41 = vpop.f32.mrb[30].mxu1  ;;  %v1220_v18 = vpack.c.bf16 %v1191_v58, %v1190_v38 }
 0x24e   : > { %v5310_v36 = vpop.f32.mrb[31].mxu1 }
 0x24f   : > { %v1148_v44 = vadd.f32 %v5308_v48, %v7259_v10  ;;  %v5311_v29 = vadd.f32 %v5310_v36, %v5309_v41  ;;  %1371 = vmatmul.mubr.bf16.gmra.mrb[24].mxu0 %v1220_v18 }
 0x250   : > { %1380 = vmatprep.mubr.bf16.mxu0 %v9245_v33 }
 0x251   : > { %v1151_v26 = vadd.f32 %v5311_v29, %v7259_v10  ;;  %v1192_v28 = vmax.f32 %v1148_v44, 0.0 }
 0x253   : > { %v1193_v47 = vmax.f32 %v1151_v26, 0.0  ;;  %v5312_v7 = vpop.f32.mrb[32].mxu1 }
 0x254   : > { %v5313_v25 = vpop.f32.mrb[33].mxu1 }
 0x255   : > { %v5314_v13 = vadd.f32 %v5313_v25, %v5312_v7  ;;  %v5315_v6 = vpop.f32.mrb[34].mxu1  ;;  %v1221_v42 = vpack.c.bf16 %v1193_v47, %v1192_v28 }
 0x256   : > { %v5316_v59 = vpop.f32.mrb[35].mxu1 }
 0x257   : > { %v1156_v52 = vadd.f32 %v5314_v13, %v7259_v10  ;;  %v5317_v60 = vadd.f32 %v5316_v59, %v5315_v6  ;;  %1381 = vmatmul.mubr.bf16.gmra.mrb[28].mxu0 %v1221_v42 }
 0x258   : > { %1390 = vmatprep.mubr.bf16.mxu0 %v9245_v33 }
 0x259   : > { %v1159_v61 = vadd.f32 %v5317_v60, %v7259_v10  ;;  %v1194_v1 = vmax.f32 %v1156_v52, 0.0 }
 0x25b   : > { %v1195_v37 = vmax.f32 %v1159_v61, 0.0  ;;  %v5318_v9 = vpop.f32.mrb[36].mxu1 }
 0x25c   : > { %v5319_v54 = vpop.f32.mrb[37].mxu1 }
 0x25d   : > { %v5320_v11 = vadd.f32 %v5319_v54, %v5318_v9  ;;  %v5321_v31 = vpop.f32.mrb[38].mxu1  ;;  %v1222_v40 = vpack.c.bf16 %v1195_v37, %v1194_v1 }
 0x25e   : > { %v5322_v51 = vpop.f32.mrb[39].mxu1 }
 0x25f   : > { %v1164_v38 = vadd.f32 %v5320_v11, %v7259_v10  ;;  %v5323_v58 = vadd.f32 %v5322_v51, %v5321_v31  ;;  %1391 = vmatmul.mubr.bf16.gmra.mrb[32].mxu0 %v1222_v40  ;;  %v5652_v40 = vld [vmem:[#allocation4 + $0xe0] ss:$8 sps:$4 sm:$0xff]   ;;  %v5654_v51 = vld [vmem:[#allocation4 + $0xe4] ss:$8 sps:$4 sm:$0xff]  }
 0x260   : > { %1400 = vmatprep.mubr.bf16.mxu0 %v9245_v33  ;;  %1711 = vmatprep.subr.bf16.mxu1 %v5654_v51 }
 0x261   : > { %v1167_v50 = vadd.f32 %v5323_v58, %v7259_v10  ;;  %v1196_v63 = vmax.f32 %v1164_v38, 0.0  ;;  %v5657_v38 = vld [vmem:[#allocation4 + $0xf4] ss:$8 sps:$4 sm:$0xff]   ;;  %1712 = vmatpush1.bf16.msra.mxu1 %v5652_v40  ;;  %v5655_v58 = vld [vmem:[#allocation4 + $0xf0] ss:$8 sps:$4 sm:$0xff]  }
 0x262   : > { %1713 = vmatprep.subr.bf16.mxu1 %v5657_v38 }
 0x263   : > { %v1197_v48 = vmax.f32 %v1167_v50, 0.0  ;;  %v5324_v41 = vpop.f32.mrb[40].mxu1  ;;  %v5658_v50 = vld [vmem:[%s9135_s3 + $0xc0] sm:$0xff]  }
 0x264   : > { %v5325_v18 = vpop.f32.mrb[41].mxu1  ;;  %5336 = vmatprep.subr.bf16.mxu0 %v5658_v50 }
 0x265   : > { %v5326_v36 = vadd.f32 %v5325_v18, %v5324_v41  ;;  %v5327_v44 = vpop.f32.mrb[42].mxu1  ;;  %v1223_v29 = vpack.c.bf16 %v1197_v48, %v1196_v63  ;;  %1714 = vmatpush1.bf16.msra.mxu1 %v5655_v58  ;;  %v5660_v63 = vld [vmem:[%s9135_s3 + $0xc8] sm:$0xff]   ;;  %v5662_v41 = vld [vmem:[%s9135_s3 + $0xd0] sm:$0xff]  }
 0x266   : > { %v5328_v26 = vpop.f32.mrb[43].mxu1  ;;  %v5661_v48 = vld [vmem:[%s9135_s3 + $0x88] sm:$0xff]   ;;  %v5663_v18 = vld [vmem:[%s9135_s3 + $0x90] sm:$0xff]  }
 0x267   : > { %v1172_v28 = vadd.f32 %v5326_v36, %v7259_v10  ;;  %v5329_v47 = vadd.f32 %v5328_v26, %v5327_v44  ;;  %1401 = vmatmul.mubr.bf16.gmra.mrb[36].mxu0 %v1223_v29  ;;  %v5664_v36 = vld [vmem:[%s9135_s3 + $0xd8] sm:$0xff]   ;;  %v5666_v29 = vld [vmem:[%s9135_s3 + $0xe0] sm:$0xff]  }
 0x268   : > { %1410 = vmatprep.mubr.bf16.mxu0 %v9245_v33  ;;  %v5665_v44 = vld [vmem:[%s9135_s3 + $0x98] sm:$0xff]   ;;  %v5667_v26 = vld [vmem:[%s9135_s3 + $0xa0] sm:$0xff]  }
 0x269   : > { %v1175_v7 = vadd.f32 %v5329_v47, %v7259_v10  ;;  %v1198_v25 = vmax.f32 %v1172_v28, 0.0  ;;  %v1226_v28 = vld [vmem:[%s9138_s6] sm:$0x3] }
 0x26a   : > { %v7318_v47 = vrot.slane %v1226_v28, %v9241_v4 }
 0x26b   : > { %v1199_v13 = vmax.f32 %v1175_v7, 0.0  ;;  %v5330_v6 = vpop.f32.mrb[44].mxu1  ;;  %v7321_v7 = vrot.slane %v1226_v28, %v9242_v17 }
 0x26c   : > { %v5331_v42 = vpop.f32.mrb[45].mxu1 }
 0x26d   : > { %v5332_v59 = vadd.f32 %v5331_v42, %v5330_v6  ;;  %v5333_v52 = vpop.f32.mrb[46].mxu1  ;;  %v1224_v60 = vpack.c.bf16 %v1199_v13, %v1198_v25 }
 0x26e   : > { %v5334_v61 = vpop.f32.mrb[47].mxu1 }
 0x26f   : > { %v1180_v1 = vadd.f32 %v5332_v59, %v7259_v10  ;;  %v5335_v37 = vadd.f32 %v5334_v61, %v5333_v52  ;;  %1411 = vmatmul.mubr.bf16.gmra.mrb[40].mxu0 %v1224_v60 }
 0x270   : > { %1420 = vmatprep.mubr.bf16.mxu0 %v9245_v33 }
 0x271   : > { %v1183_v9 = vadd.f32 %v5335_v37, %v7259_v10  ;;  %v1200_v54 = vmax.f32 %v1180_v1, 0.0  ;;  %v5659_v10 = vld [vmem:[%s9135_s3 + $0x80] sm:$0xff]  }
 0x272   : > { %5337 = vmatpush3.bf16.msra.mxu0 %v5659_v10 }
 0x273   : > { %v1201_v11 = vmax.f32 %v1183_v9, 0.0  ;;  %5338 = vmatprep.subr.bf16.mxu0 %v5660_v63 }
 0x275   : > { %v1225_v31 = vpack.c.bf16 %v1201_v11, %v1200_v54 }
 0x276   : > { %5339 = vmatpush3.bf16.msra.mxu0 %v5661_v48 }
 0x277   : > { %1421 = vmatmul.mubr.bf16.gmra.mrb[44].mxu0 %v1225_v31  ;;  %5340 = vmatprep.subr.bf16.mxu0 %v5662_v41 }
 0x27a   : > { %5341 = vmatpush3.bf16.msra.mxu0 %v5663_v18 }
 0x27b   : > { %5342 = vmatprep.subr.bf16.mxu0 %v5664_v36 }
 0x27e   : > { %5343 = vmatpush3.bf16.msra.mxu0 %v5665_v44 }
 0x27f   : > { %5344 = vmatprep.subr.bf16.mxu0 %v5666_v29 }
 0x282   : > { %5345 = vmatpush3.bf16.msra.mxu0 %v5667_v26 }
 0x30b   : > { %v1352_v25 = vpop.f32.mrb[16].mxu0 }
 0x30c   : > { %v1353_v13 = vadd.f32 %v1352_v25, %v7318_v47  ;;  %v1354_v6 = vpop.f32.mrb[17].mxu0 }
 0x30d   : > { %v1355_v42 = vadd.f32 %v1354_v6, %v7321_v7  ;;  %v1356_v59 = vpop.f32.mrb[18].mxu0 }
 0x30e   : > { %v1357_v52 = vadd.f32 %v1356_v59, %v7318_v47  ;;  %v1358_v60 = vpop.f32.mrb[19].mxu0  ;;  %v1431_v1 = vmax.f32 %v1353_v13, 0.0 }
 0x30f   : > { %v1359_v61 = vadd.f32 %v1358_v60, %v7321_v7  ;;  %v1432_v9 = vmax.f32 %v1355_v42, 0.0 }
 0x310   : > { %v1433_v37 = vmax.f32 %v1357_v52, 0.0 }
 0x311   : > { %v1434_v54 = vmax.f32 %v1359_v61, 0.0 }
 0x312   : > { %v1495_v11 = vpack.c.bf16 %v1433_v37, %v1431_v1 }
 0x313   : > { %v1496_v31 = vpack.c.bf16 %v1434_v54, %v1432_v9 }
 0x315   : > { %1715 = vmatprep.mubr.bf16.mxu1 %v1496_v31 }
 0x316   : > { %1716 = vmatmul.mubr.bf16.vlgmr.msra.gmra.mrb[48].mxu1 %v1495_v11 }
 0x31a   : > { %v1362_v40 = vpop.f32.mrb[20].mxu0 }
 0x31b   : > { %v1363_v51 = vadd.f32 %v1362_v40, %v7318_v47  ;;  %v1364_v38 = vpop.f32.mrb[21].mxu0 }
 0x31c   : > { %v1365_v58 = vadd.f32 %v1364_v38, %v7321_v7  ;;  %v1366_v50 = vpop.f32.mrb[22].mxu0 }
 0x31d   : > { %v1367_v10 = vadd.f32 %v1366_v50, %v7318_v47  ;;  %v1368_v63 = vpop.f32.mrb[23].mxu0  ;;  %v1435_v41 = vmax.f32 %v1363_v51, 0.0 }
 0x31e   : > { %v1369_v48 = vadd.f32 %v1368_v63, %v7321_v7  ;;  %v1436_v36 = vmax.f32 %v1365_v58, 0.0 }
 0x31f   : > { %v1437_v18 = vmax.f32 %v1367_v10, 0.0 }
 0x320   : > { %v1438_v44 = vmax.f32 %v1369_v48, 0.0 }
 0x321   : > { %v1497_v29 = vpack.c.bf16 %v1437_v18, %v1435_v41 }
 0x322   : > { %v1498_v26 = vpack.c.bf16 %v1438_v44, %v1436_v36  ;;  %v1372_v28 = vpop.f32.mrb[24].mxu0 }
 0x323   : > { %v1373_v25 = vadd.f32 %v1372_v28, %v7318_v47  ;;  %v1374_v13 = vpop.f32.mrb[25].mxu0 }
 0x324   : > { %v1375_v6 = vadd.f32 %v1374_v13, %v7321_v7  ;;  %v1376_v42 = vpop.f32.mrb[26].mxu0  ;;  %1725 = vmatprep.mubr.bf16.mxu1 %v1498_v26 }
 0x325   : > { %v1377_v59 = vadd.f32 %v1376_v42, %v7318_v47  ;;  %v1378_v52 = vpop.f32.mrb[27].mxu0  ;;  %1726 = vmatmul.mubr.bf16.gmra.mrb[52].mxu1 %v1497_v29  ;;  %v1439_v61 = vmax.f32 %v1373_v25, 0.0 }
 0x326   : > { %v1379_v60 = vadd.f32 %v1378_v52, %v7321_v7  ;;  %v1440_v37 = vmax.f32 %v1375_v6, 0.0 }
 0x327   : > { %v1441_v1 = vmax.f32 %v1377_v59, 0.0 }
 0x328   : > { %v1442_v9 = vmax.f32 %v1379_v60, 0.0 }
 0x329   : > { %v1499_v54 = vpack.c.bf16 %v1441_v1, %v1439_v61 }
 0x32a   : > { %v1500_v11 = vpack.c.bf16 %v1442_v9, %v1440_v37  ;;  %v1382_v31 = vpop.f32.mrb[28].mxu0 }
 0x32b   : > { %v1383_v40 = vadd.f32 %v1382_v31, %v7318_v47  ;;  %v1384_v51 = vpop.f32.mrb[29].mxu0 }
 0x32c   : > { %v1385_v38 = vadd.f32 %v1384_v51, %v7321_v7  ;;  %v1386_v58 = vpop.f32.mrb[30].mxu0  ;;  %1735 = vmatprep.mubr.bf16.mxu1 %v1500_v11 }
 0x32d   : > { %v1387_v50 = vadd.f32 %v1386_v58, %v7318_v47  ;;  %v1388_v10 = vpop.f32.mrb[31].mxu0  ;;  %1736 = vmatmul.mubr.bf16.gmra.mrb[56].mxu1 %v1499_v54  ;;  %v1443_v48 = vmax.f32 %v1383_v40, 0.0 }
 0x32e   : > { %v1389_v63 = vadd.f32 %v1388_v10, %v7321_v7  ;;  %v1444_v18 = vmax.f32 %v1385_v38, 0.0 }
 0x32f   : > { %v1445_v41 = vmax.f32 %v1387_v50, 0.0 }
 0x330   : > { %v1446_v36 = vmax.f32 %v1389_v63, 0.0 }
 0x331   : > { %v1501_v44 = vpack.c.bf16 %v1445_v41, %v1443_v48 }
 0x332   : > { %v1502_v29 = vpack.c.bf16 %v1446_v36, %v1444_v18  ;;  %v1392_v26 = vpop.f32.mrb[32].mxu0 }
 0x333   : > { %v1393_v28 = vadd.f32 %v1392_v26, %v7318_v47  ;;  %v1394_v25 = vpop.f32.mrb[33].mxu0 }
 0x334   : > { %v1395_v13 = vadd.f32 %v1394_v25, %v7321_v7  ;;  %v1396_v6 = vpop.f32.mrb[34].mxu0  ;;  %1745 = vmatprep.mubr.bf16.mxu1 %v1502_v29 }
 0x335   : > { %v1397_v42 = vadd.f32 %v1396_v6, %v7318_v47  ;;  %v1398_v59 = vpop.f32.mrb[35].mxu0  ;;  %1746 = vmatmul.mubr.bf16.gmra.mrb[60].mxu1 %v1501_v44  ;;  %v1447_v60 = vmax.f32 %v1393_v28, 0.0 }
 0x336   : > { %v1399_v52 = vadd.f32 %v1398_v59, %v7321_v7  ;;  %v1448_v1 = vmax.f32 %v1395_v13, 0.0 }
 0x337   : > { %v1449_v61 = vmax.f32 %v1397_v42, 0.0 }
 0x338   : > { %v1450_v37 = vmax.f32 %v1399_v52, 0.0 }
 0x339   : > { %v1503_v9 = vpack.c.bf16 %v1449_v61, %v1447_v60 }
 0x33a   : > { %v1504_v54 = vpack.c.bf16 %v1450_v37, %v1448_v1  ;;  %v1402_v11 = vpop.f32.mrb[36].mxu0 }
 0x33b   : > { %v1403_v31 = vadd.f32 %v1402_v11, %v7318_v47  ;;  %v1404_v40 = vpop.f32.mrb[37].mxu0 }
 0x33c   : > { %v1405_v51 = vadd.f32 %v1404_v40, %v7321_v7  ;;  %v1406_v38 = vpop.f32.mrb[38].mxu0  ;;  %1755 = vmatprep.mubr.bf16.mxu1 %v1504_v54 }
 0x33d   : > { %v1407_v58 = vadd.f32 %v1406_v38, %v7318_v47  ;;  %v1408_v50 = vpop.f32.mrb[39].mxu0  ;;  %1756 = vmatmul.mubr.bf16.gmra.mrb[64].mxu1 %v1503_v9  ;;  %v1451_v63 = vmax.f32 %v1403_v31, 0.0 }
 0x33e   : > { %v1409_v10 = vadd.f32 %v1408_v50, %v7321_v7  ;;  %v1452_v41 = vmax.f32 %v1405_v51, 0.0 }
 0x33f   : > { %v1453_v48 = vmax.f32 %v1407_v58, 0.0 }
 0x340   : > { %v1454_v18 = vmax.f32 %v1409_v10, 0.0 }
 0x341   : > { %v1505_v36 = vpack.c.bf16 %v1453_v48, %v1451_v63 }
 0x342   : > { %v1506_v44 = vpack.c.bf16 %v1454_v18, %v1452_v41  ;;  %v1412_v29 = vpop.f32.mrb[40].mxu0 }
 0x343   : > { %v1413_v26 = vadd.f32 %v1412_v29, %v7318_v47  ;;  %v1414_v28 = vpop.f32.mrb[41].mxu0  ;;  %v5671_v29 = vld [vmem:[%s9135_s3 + $0xb0] sm:$0xff]  }
 0x344   : > { %v1415_v25 = vadd.f32 %v1414_v28, %v7321_v7  ;;  %v1416_v13 = vpop.f32.mrb[42].mxu0  ;;  %1765 = vmatprep.mubr.bf16.mxu1 %v1506_v44  ;;  %v5668_v44 = vld [vmem:[%s9135_s3 + $0xe8] sm:$0xff]   ;;  %v5673_v28 = vld [vmem:[%s9135_s3 + $0xb8] sm:$0xff]  }
 0x345   : > { %v1417_v6 = vadd.f32 %v1416_v13, %v7318_v47  ;;  %v1418_v42 = vpop.f32.mrb[43].mxu0  ;;  %1766 = vmatmul.mubr.bf16.gmra.mrb[68].mxu1 %v1505_v36  ;;  %v1455_v52 = vmax.f32 %v1413_v26, 0.0  ;;  %5346 = vmatprep.subr.bf16.mxu0 %v5668_v44  ;;  %v5672_v26 = vld [vmem:[%s9135_s3 + $0xf8] sm:$0xff]   ;;  %v5676_v13 = vld [vmem:[#allocation2 + $0x84] ss:$8 sps:$4 sm:$0xff]  }
 0x346   : > { %v1419_v59 = vadd.f32 %v1418_v42, %v7321_v7  ;;  %v1456_v61 = vmax.f32 %v1415_v25, 0.0  ;;  %v5674_v25 = vld [vmem:[#allocation2 + $0x80] ss:$8 sps:$4 sm:$0xff]   ;;  %2544 = vmatprep.subr.bf16.mxu1 %v5676_v13  ;;  %v5688_v44 = vld [vmem:[#allocation2 + $0xc4] ss:$8 sps:$4 sm:$0xff]  }
 0x347   : > { %v1457_v60 = vmax.f32 %v1417_v6, 0.0  ;;  %v5679_v6 = vld [vmem:[#allocation2 + $0x94] ss:$8 sps:$4 sm:$0xff]   ;;  %v1511_v42 = vld [vmem:[%s9140_s8] sm:$0x3]  ;;  %2545 = vmatpush1.bf16.msra.mxu1 %v5674_v25 }
 0x348   : > { %v1458_v1 = vmax.f32 %v1419_v59, 0.0  ;;  %v5677_v59 = vld [vmem:[#allocation2 + $0x90] ss:$8 sps:$4 sm:$0xff]   ;;  %2546 = vmatprep.subr.bf16.mxu1 %v5679_v6  ;;  %v5686_v6 = vld [vmem:[#allocation2 + $0xc0] ss:$8 sps:$4 sm:$0xff]  }
 0x349   : > { %v1507_v37 = vpack.c.bf16 %v1457_v60, %v1455_v52  ;;  %v5682_v52 = vld [vmem:[#allocation2 + $0xa4] ss:$8 sps:$4 sm:$0xff]   ;;  %v7378_v60 = vrot.slane %v1511_v42, %v9241_v4 }
 0x34a   : > { %v1508_v9 = vpack.c.bf16 %v1458_v1, %v1456_v61  ;;  %v1422_v54 = vpop.f32.mrb[44].mxu0  ;;  %v7381_v61 = vrot.slane %v1511_v42, %v9242_v17  ;;  %v5680_v1 = vld [vmem:[#allocation2 + $0xa0] ss:$8 sps:$4 sm:$0xff]  }
 0x34b   : > { %v1423_v11 = vadd.f32 %v1422_v54, %v7318_v47  ;;  %v1424_v31 = vpop.f32.mrb[45].mxu0  ;;  %2547 = vmatpush1.bf16.msra.mxu1 %v5677_v59 }
 0x34c   : > { %v1425_v40 = vadd.f32 %v1424_v31, %v7321_v7  ;;  %v1426_v51 = vpop.f32.mrb[46].mxu0  ;;  %1775 = vmatprep.mubr.bf16.mxu1 %v1508_v9  ;;  %2548 = vmatprep.subr.bf16.mxu1 %v5682_v52  ;;  %v5691_v52 = vld [vmem:[#allocation2 + $0xd4] ss:$8 sps:$4 sm:$0xff]  }
 0x34d   : > { %v1427_v38 = vadd.f32 %v1426_v51, %v7318_v47  ;;  %v1428_v58 = vpop.f32.mrb[47].mxu0  ;;  %1776 = vmatmul.mubr.bf16.gmra.mrb[72].mxu1 %v1507_v37  ;;  %v1459_v10 = vmax.f32 %v1423_v11, 0.0  ;;  %v5669_v47 = vld [vmem:[%s9135_s3 + $0xa8] sm:$0xff]   ;;  %v5685_v37 = vld [vmem:[#allocation2 + $0xb4] ss:$8 sps:$4 sm:$0xff]  }
 0x34e   : > { %v1429_v50 = vadd.f32 %v1428_v58, %v7321_v7  ;;  %v1460_v48 = vmax.f32 %v1425_v40, 0.0  ;;  %v5670_v7 = vld [vmem:[%s9135_s3 + $0xf0] sm:$0xff]   ;;  %5347 = vmatpush3.bf16.msra.mxu0 %v5669_v47 }
 0x34f   : > { %v1461_v63 = vmax.f32 %v1427_v38, 0.0  ;;  %5348 = vmatprep.subr.bf16.mxu0 %v5670_v7  ;;  %v9246_v11 = vld [vmem:[#allocation10_spill] sm:$0xff]  ;;  %v9247_v38 = vld [vmem:[#allocation29_spill] sm:$0xff]  ;;  %2549 = vmatpush1.bf16.msra.mxu1 %v5680_v1 }
 0x350   : > { %v1462_v41 = vmax.f32 %v1429_v50, 0.0  ;;  %v1808_v31 = vmul.f32 %v7233_v23, %v9246_v11  ;;  %v1809_v58 = vmul.f32 %v7236_v14, %v9247_v38  ;;  %2550 = vmatprep.subr.bf16.mxu1 %v5685_v37  ;;  %v5689_v37 = vld [vmem:[#allocation2 + $0xd0] ss:$8 sps:$4 sm:$0xff]   ;;  %v1812_v11 = vmul.f32 %v7233_v23, %v7037_v20 }
 0x351   : > { %v1509_v18 = vpack.c.bf16 %v1461_v63, %v1459_v10  ;;  %v5683_v10 = vld [vmem:[#allocation2 + $0xb0] ss:$8 sps:$4 sm:$0xff]   ;;  %v1815_v38 = vmul.f32 %v7236_v14, %v7027_v49  ;;  %v7420_v20 = vmul.f32 %v7236_v14, %v7067_v5 }
 0x352   : > { %v1510_v36 = vpack.c.bf16 %v1462_v41, %v1460_v48  ;;  %5349 = vmatpush3.bf16.msra.mxu0 %v5671_v29  ;;  %v9248_v41 = vld [vmem:[#allocation11_spill] sm:$0xff]  ;;  %v9249_v29 = vld [vmem:[#allocation30_spill] sm:$0xff] }
 0x353   : > { %5350 = vmatprep.subr.bf16.mxu0 %v5672_v26  ;;  %v1811_v26 = vmul.f32 %v7236_v14, %v9249_v29  ;;  %2551 = vmatpush1.bf16.msra.mxu1 %v5683_v10 }
 0x354   : > { %1785 = vmatprep.mubr.bf16.mxu1 %v1510_v36  ;;  %2552 = vmatprep.subr.bf16.mxu1 %v5688_v44  ;;  %v7439_v44 = vmul.f32 %v7236_v14, %v7106_v39 }
 0x355   : > { %1786 = vmatmul.mubr.bf16.gmra.mrb[76].mxu1 %v1509_v18  ;;  %v1810_v18 = vmul.f32 %v7233_v23, %v9248_v41 }
 0x356   : > { %2576 = vmatprep.mubr.bf16.mxu1 %v9245_v33  ;;  %5351 = vmatpush3.bf16.msra.mxu0 %v5673_v28 }
 0x357   : > { %2553 = vmatpush1.bf16.msra.mxu1 %v5686_v6 }
 0x358   : > { %2554 = vmatprep.subr.bf16.mxu1 %v5691_v52 }
 0x35b   : > { %2555 = vmatpush1.bf16.msra.mxu1 %v5689_v37 }
 0x3e9   : > { %v1717_v9 = vpop.f32.mrb[48].mxu1 }
 0x3ea   : > { %v1718_v54 = vadd.f32 %v1717_v9, %v7378_v60  ;;  %v1719_v40 = vpop.f32.mrb[49].mxu1 }
 0x3eb   : > { %v1720_v51 = vadd.f32 %v1719_v40, %v7381_v61  ;;  %v1721_v50 = vpop.f32.mrb[50].mxu1 }
 0x3ec   : > { %v7389_v63 = vadd.f32 %v1808_v31, %v1718_v54  ;;  %v1722_v48 = vadd.f32 %v1721_v50, %v7378_v60  ;;  %v1723_v36 = vpop.f32.mrb[51].mxu1  ;;  %v5694_v54 = vld [vmem:[#allocation2 + $0xe4] ss:$8 sps:$4 sm:$0xff]   ;;  %v1813_v31 = vmul.f32 %v7236_v14, %v7022_v62  ;;  %v7424_v62 = vmul.f32 %v7233_v23, %v7094_v19 }
 0x3ed   : > { %v7394_v47 = vadd.f32 %v1809_v58, %v1720_v51  ;;  %v1724_v7 = vadd.f32 %v1723_v36, %v7381_v61  ;;  %v1814_v51 = vmul.f32 %v7233_v23, %v7049_v30  ;;  %v7416_v58 = vmul.f32 %v7233_v23, %v7085_v21  ;;  %v5692_v30 = vld [vmem:[#allocation2 + $0xe0] ss:$8 sps:$4 sm:$0xff]   ;;  %2556 = vmatprep.subr.bf16.mxu1 %v5694_v54 }
 0x3ee   : > { %v1872_v28 = vmin.f32 %v7389_v63, 0.0  ;;  %v7400_v25 = vadd.f32 %v1810_v18, %v1722_v48  ;;  %v7430_v18 = vmul.f32 %v7236_v14, %v7072_v2  ;;  %v7435_v19 = vmul.f32 %v7233_v23, %v7119_v53  ;;  %2557 = vmatpush1.bf16.msra.mxu1 %v5692_v30 }
 0x3ef   : > { %v7402_v13 = vadd.f32 %v1811_v26, %v1724_v7  ;;  %v1873_v9 = vmin.f32 %v7394_v47, 0.0  ;;  %v7443_v7 = vmul.f32 %v7233_v23, %v7124_v56  ;;  %vm1904_vm4 = vcmp.gt.f32.partialorder %v7389_v63, 0.0 }
 0x3f0   : > { %v2000_v42 = vmul.f32 1.442695, %v1872_v28  ;;  %v1874_v59 = vmin.f32 %v7400_v25, 0.0  ;;  %v1936_v40 = vmul.f32 0.5, %v1872_v28  ;;  %v7450_v28 = vmul.f32 %v7236_v14, %v7114_v8 }
 0x3f1   : > { %v2002_v48 = vmul.f32 1.442695, %v1873_v9  ;;  %v1875_v49 = vmin.f32 %v7402_v13, 0.0  ;;  %v1937_v53 = vmul.f32 0.5, %v1873_v9  ;;  %v7463_v8 = vmul.f32 %v7233_v23, %v7158_v16 }
 0x3f2   : > { %v2004_v1 = vmul.f32 1.442695, %v1874_v59  ;;  %5978 = vpow2.f32 %v2000_v42  ;;  %v1938_v50 = vmul.f32 0.5, %v1874_v59  ;;  %v7480_v16 = vmul.f32 %v7233_v23, %v7182_v57 }
 0x3f3   : > { %v1939_v56 = vmul.f32 0.5, %v1875_v49  ;;  %v2006_v52 = vmul.f32 1.442695, %v1875_v49  ;;  %v7493_v57 = vmul.f32 %v7236_v14, %v7177_v24  ;;  %vm1906_vm3 = vcmp.gt.f32.partialorder %v7400_v25, 0.0 }
 0x3f4   : > { %5980 = vpow2.f32 %v2004_v1  ;;  %vm1905_vm5 = vcmp.gt.f32.partialorder %v7394_v47, 0.0  ;;  %vm1907_vm6 = vcmp.gt.f32.partialorder %v7402_v13, 0.0 }
 0x3f5   : > { %5982 = vtanh.f32 %v1936_v40  ;;  %v7475_v40 = vmul.f32 %v7236_v14, %v7141_v27  ;;  %v7489_v27 = vmul.f32 %v7233_v23, %v7189_v0 }
 0x3f6   : > { %5984 = vtanh.f32 %v1938_v50 }
 0x3f7   : > { %5986 = vpow2.f32 %v2002_v48 }
 0x3f8   : > { %v1727_v10 = vpop.f32.mrb[52].mxu1  ;;  %5988 = vtanh.f32 %v1937_v53 }
 0x3f9   : > { %v1728_v41 = vadd.f32 %v1727_v10, %v7378_v60  ;;  %v1729_v21 = vpop.f32.mrb[53].mxu1  ;;  %5990 = vtanh.f32 %v1939_v56 }
 0x3fa   : > { %v1730_v5 = vadd.f32 %v1729_v21, %v7381_v61  ;;  %v1731_v36 = vpop.f32.mrb[54].mxu1  ;;  %5992 = vpow2.f32 %v2006_v52 }
 0x3fb   : > { %v7445_v29 = vadd.f32 %v1812_v11, %v1728_v41  ;;  %v1732_v2 = vadd.f32 %v1731_v36, %v7378_v60  ;;  %v1733_v26 = vpop.f32.mrb[55].mxu1  ;;  %v7467_v11 = vmul.f32 %v7236_v14, %v7136_v32  ;;  %v7484_v32 = vmul.f32 %v7236_v14, %v7168_v43 }
 0x3fc   : > { %v7452_v6 = vadd.f32 %v1813_v31, %v1730_v5  ;;  %v1734_v39 = vadd.f32 %v1733_v26, %v7381_v61  ;;  %v5979_v9 = vpop.eup %5978  ;;  %v7471_v31 = vmul.f32 %v7233_v23, %v7163_v12 }
 0x3fd   : > { %v1876_v42 = vmin.f32 %v7445_v29, 0.0  ;;  %v7456_v59 = vadd.f32 %v1814_v51, %v1732_v2  ;;  %v2064_v48 = vadd.f32 1.0, %v5979_v9  ;;  %vm1908_vm7 = vcmp.gt.f32.partialorder %v7445_v29, 0.0 }
 0x3fe   : > { %v1877_v1 = vmin.f32 %v7452_v6, 0.0  ;;  %v7459_v37 = vadd.f32 %v1815_v38, %v1734_v39  ;;  %v5981_v30 = vpop.eup %5980  ;;  %vm1909_vm8 = vcmp.gt.f32.partialorder %v7452_v6, 0.0 }
 0x3ff   : > { %v1940_v54 = vmul.f32 0.5, %v1876_v42  ;;  %v1878_v51 = vmin.f32 %v7456_v59, 0.0  ;;  %v2008_v50 = vmul.f32 1.442695, %v1876_v42  ;;  %v2066_v43 = vadd.f32 1.0, %v5981_v30  ;;  %v5983_v53 = vpop.eup %5982 }
 0x400   : > { %v1737_v38 = vpop.f32.mrb[56].mxu1  ;;  %v1879_v12 = vmin.f32 %v7459_v37, 0.0  ;;  %v1941_v49 = vmul.f32 0.5, %v1877_v1  ;;  %v2010_v21 = vmul.f32 1.442695, %v1877_v1  ;;  %v5985_v42 = vpop.eup %5984  ;;  %vm1910_vm9 = vcmp.gt.f32.partialorder %v7456_v59, 0.0 }
 0x401   : > { %v1739_v10 = vpop.f32.mrb[57].mxu1  ;;  %5994 = vtanh.f32 %v1940_v54  ;;  %v1738_v5 = vadd.f32 %v1737_v38, %v7378_v60  ;;  %v1942_v2 = vmul.f32 0.5, %v1878_v51  ;;  %v2012_v39 = vmul.f32 1.442695, %v1878_v51  ;;  %v5987_v54 = vpop.eup %5986 }
 0x402   : > { %v1741_v41 = vpop.f32.mrb[58].mxu1  ;;  %v1740_v26 = vadd.f32 %v1739_v10, %v7381_v61  ;;  %5996 = vpow2.f32 %v2008_v50  ;;  %v1943_v56 = vmul.f32 0.5, %v1879_v12  ;;  %v2098_v38 = vmul.f32 %v5985_v42, %v2066_v43 }
 0x403   : > { %v1743_v36 = vpop.f32.mrb[59].mxu1  ;;  %v1742_v0 = vadd.f32 %v1741_v41, %v7378_v60  ;;  %v7500_v24 = vadd.f32 %v7416_v58, %v1738_v5  ;;  %5998 = vtanh.f32 %v1941_v49  ;;  %v2014_v50 = vmul.f32 1.442695, %v1879_v12  ;;  %v5989_v41 = vpop.eup %5988 }
 0x404   : > { %v1744_v23 = vadd.f32 %v1743_v36, %v7381_v61  ;;  %v7503_v52 = vadd.f32 %v7420_v20, %v1740_v26  ;;  %6000 = vpow2.f32 %v2010_v21  ;;  %v2096_v10 = vmul.f32 %v5983_v53, %v2064_v48  ;;  %v5991_v5 = vpop.eup %5990 }
 0x405   : > { %v7506_v1 = vadd.f32 %v7424_v62, %v1742_v0  ;;  %v1880_v51 = vmin.f32 %v7500_v24, 0.0  ;;  %6002 = vtanh.f32 %v1942_v2  ;;  %v2065_v21 = vadd.f32 1.0, %v5987_v54 }
 0x406   : > { %v7509_v9 = vadd.f32 %v7430_v18, %v1744_v23  ;;  %v1881_v58 = vmin.f32 %v7503_v52, 0.0  ;;  %6004 = vpow2.f32 %v2012_v39  ;;  %v7520_v36 = vsel %vm1906_vm3, %v7400_v25, %v2098_v38  ;;  %v5993_v23 = vpop.eup %5992 }
 0x407   : > { %v1944_v62 = vmul.f32 0.5, %v1880_v51  ;;  %v2016_v30 = vmul.f32 1.442695, %v1880_v51  ;;  %v1882_v18 = vmin.f32 %v7506_v1, 0.0  ;;  %6006 = vtanh.f32 %v1943_v56  ;;  %9250 = vst [vmem:[#allocation17_spill] sm:$0xff] %v7520_v36 }
 0x408   : > { %v1747_v20 = vpop.f32.mrb[60].mxu1  ;;  %v1945_v12 = vmul.f32 0.5, %v1881_v58  ;;  %v1883_v43 = vmin.f32 %v7509_v9, 0.0  ;;  %6008 = vpow2.f32 %v2014_v50  ;;  %v2018_v2 = vmul.f32 1.442695, %v1881_v58 }
 0x409   : > { %v1749_v49 = vpop.f32.mrb[61].mxu1  ;;  %v1748_v26 = vadd.f32 %v1747_v20, %v7378_v60  ;;  %6010 = vtanh.f32 %v1944_v62  ;;  %v1946_v53 = vmul.f32 0.5, %v1882_v18  ;;  %v2020_v39 = vmul.f32 1.442695, %v1882_v18 }
 0x40a   : > { %v1751_v48 = vpop.f32.mrb[62].mxu1  ;;  %v1750_v56 = vadd.f32 %v1749_v49, %v7381_v61  ;;  %6012 = vpow2.f32 %v2016_v30  ;;  %v1947_v50 = vmul.f32 0.5, %v1883_v43  ;;  %v2022_v51 = vmul.f32 1.442695, %v1883_v43 }
 0x40b   : > { %v1753_v0 = vpop.f32.mrb[63].mxu1  ;;  %v7524_v42 = vpop.eup %5994  ;;  %v7527_v54 = vadd.f32 %v7435_v19, %v1748_v26  ;;  %v1752_v25 = vadd.f32 %v1751_v48, %v7378_v60  ;;  %6014 = vtanh.f32 %v1945_v12  ;;  %v2067_v19 = vadd.f32 1.0, %v5993_v23 }
 0x40c   : > { %v1754_v38 = vadd.f32 %v1753_v0, %v7381_v61  ;;  %v7532_v58 = vadd.f32 %v7439_v44, %v1750_v56  ;;  %v7534_v20 = vpop.eup %5996  ;;  %6016 = vpow2.f32 %v2018_v2  ;;  %v2097_v43 = vmul.f32 %v5989_v41, %v2065_v21 }
 0x40d   : > { %v1884_v62 = vmin.f32 %v7527_v54, 0.0  ;;  %v7538_v30 = vadd.f32 %v7443_v7, %v1752_v25  ;;  %v7540_v18 = vpop.eup %5998  ;;  %6018 = vtanh.f32 %v1946_v53  ;;  %v7552_v23 = vsel %vm1904_vm4, %v7389_v63, %v2096_v10 }
 0x40e   : > { %v1885_v49 = vmin.f32 %v7532_v58, 0.0  ;;  %v7544_v12 = vadd.f32 %v7450_v28, %v1754_v38  ;;  %v6001_v48 = vpop.eup %6000  ;;  %6020 = vpow2.f32 %v2020_v39  ;;  %9251 = vst [vmem:[#allocation21_spill] sm:$0xff] %v7552_v23  ;;  %v2193_v53 = vpack.c.bf16 %v7520_v36, %v7552_v23 }
 0x40f   : > { %v1948_v26 = vmul.f32 0.5, %v1884_v62  ;;  %v2024_v2 = vmul.f32 1.442695, %v1884_v62  ;;  %v1886_v0 = vmin.f32 %v7538_v30, 0.0  ;;  %v7547_v7 = vpop.eup %6002  ;;  %6022 = vtanh.f32 %v1947_v50 }
 0x410   : > { %v1757_v44 = vpop.f32.mrb[64].mxu1  ;;  %v1949_v28 = vmul.f32 0.5, %v1885_v49  ;;  %v7555_v21 = vpop.eup %6004  ;;  %6024 = vpow2.f32 %v2022_v51  ;;  %v1887_v39 = vmin.f32 %v7544_v12, 0.0  ;;  %v2026_v63 = vmul.f32 1.442695, %v1885_v49 }
 0x411   : > { %v1759_v56 = vpop.f32.mrb[65].mxu1  ;;  %v7561_v38 = vpop.eup %6006  ;;  %6026 = vtanh.f32 %v1948_v26  ;;  %v1950_v10 = vmul.f32 0.5, %v1886_v0  ;;  %v2099_v62 = vmul.f32 %v5991_v5, %v2067_v19  ;;  %v2028_v33 = vmul.f32 1.442695, %v1886_v0 }
 0x412   : > { %v1761_v41 = vpop.f32.mrb[66].mxu1  ;;  %v6009_v50 = vpop.eup %6008  ;;  %6028 = vpow2.f32 %v2024_v2  ;;  %v7566_v17 = vsel %vm1905_vm5, %v7394_v47, %v2097_v43  ;;  %v1758_v36 = vadd.f32 %v1757_v44, %v7378_v60  ;;  %v1760_v5 = vadd.f32 %v1759_v56, %v7381_v61 }
 0x413   : > { %v1763_v25 = vpop.f32.mrb[67].mxu1  ;;  %9252 = vst [vmem:[#allocation15_spill] sm:$0xff] %v7566_v17  ;;  %v7569_v51 = vpop.eup %6010  ;;  %6030 = vtanh.f32 %v1949_v28  ;;  %v7574_v26 = vsel %vm1907_vm6, %v7402_v13, %v2099_v62  ;;  %v1762_v19 = vadd.f32 %v1761_v41, %v7378_v60  ;;  %v1951_v2 = vmul.f32 0.5, %v1887_v39 }
 0x414   : > { %9253 = vst [vmem:[#allocation20_spill] sm:$0xff] %v7574_v26  ;;  %v7578_v49 = vpop.eup %6012  ;;  %v2194_v47 = vpack.c.bf16 %v7574_v26, %v7566_v17  ;;  %v7583_v43 = vadd.f32 %v7463_v8, %v1758_v36  ;;  %v1764_v44 = vadd.f32 %v1763_v25, %v7381_v61  ;;  %6032 = vpow2.f32 %v2026_v63 }
 0x415   : > { %v7586_v0 = vpop.eup %6014  ;;  %v2030_v13 = vmul.f32 1.442695, %v1887_v39  ;;  %v7589_v28 = vadd.f32 %v7467_v11, %v1760_v5  ;;  %v7592_v56 = vadd.f32 %v7471_v31, %v1762_v19  ;;  %6034 = vtanh.f32 %v1950_v10 }
 0x416   : > { %v7594_v62 = vpop.eup %6016  ;;  %2345 = vmatprep.mubr.bf16.mxu0 %v2194_v47  ;;  %v1888_v8 = vmin.f32 %v7583_v43, 0.0  ;;  %v7598_v36 = vadd.f32 %v7475_v40, %v1764_v44  ;;  %v7602_v39 = vmul.f32 %v7236_v14, %v7202_v35  ;;  %6036 = vpow2.f32 %v2028_v33 }
 0x417   : > { %9254 = vst [vmem:[#allocation23_spill] sm:$0xff] %v7589_v28  ;;  %9255 = vst [vmem:[#allocation22_spill] sm:$0xff] %v7592_v56  ;;  %v7604_v11 = vpop.eup %6018  ;;  %2346 = vmatmul.mubr.bf16.vlgmr.msra.gmra.mrb[48].mxu0 %v2193_v53  ;;  %v1889_v31 = vmin.f32 %v7589_v28, 0.0  ;;  %v1890_v63 = vmin.f32 %v7592_v56, 0.0  ;;  %v2069_v10 = vadd.f32 1.0, %v6001_v48  ;;  %6038 = vtanh.f32 %v1951_v2 }
 0x418   : > { %v1767_v41 = vpop.f32.mrb[68].mxu1  ;;  %9256 = vst [vmem:[#allocation26_spill] sm:$0xff] %v7598_v36  ;;  %v7609_v19 = vpop.eup %6020  ;;  %v1952_v40 = vmul.f32 0.5, %v1888_v8  ;;  %v1891_v35 = vmin.f32 %v7598_v36, 0.0  ;;  %vm1911_vm10 = vcmp.gt.f32.partialorder %v7459_v37, 0.0  ;;  %6040 = vpow2.f32 %v2030_v13 }
 0x419   : > { %v1769_v25 = vpop.f32.mrb[69].mxu1  ;;  %v7613_v44 = vpop.eup %6022  ;;  %v2032_v33 = vmul.f32 1.442695, %v1888_v8  ;;  %v1953_v48 = vmul.f32 0.5, %v1889_v31  ;;  %v2034_v26 = vmul.f32 1.442695, %v1889_v31  ;;  %v2101_v45 = vmul.f32 %v7540_v18, %v2069_v10 }
 0x41a   : > { %v1771_v5 = vpop.f32.mrb[70].mxu1  ;;  %v6025_v53 = vpop.eup %6024  ;;  %v1954_v17 = vmul.f32 0.5, %v1890_v63  ;;  %v2036_v23 = vmul.f32 1.442695, %v1890_v63  ;;  %6042 = vtanh.f32 %v1952_v40  ;;  %v2071_v2 = vadd.f32 1.0, %v6009_v50 }
 0x41b   : > { %v1773_v47 = vpop.f32.mrb[71].mxu1  ;;  %v7617_v4 = vpop.eup %6026  ;;  %v2068_v36 = vadd.f32 1.0, %v7534_v20  ;;  %v1955_v3 = vmul.f32 0.5, %v1891_v35  ;;  %v2070_v28 = vadd.f32 1.0, %v7555_v21  ;;  %v1768_v13 = vadd.f32 %v1767_v41, %v7378_v60 }
 0x41c   : > { %v7621_v56 = vpop.eup %6028  ;;  %v1770_v8 = vadd.f32 %v1769_v25, %v7381_v61  ;;  %6044 = vpow2.f32 %v2032_v33  ;;  %v2038_v63 = vmul.f32 1.442695, %v1891_v35  ;;  %v2103_v40 = vmul.f32 %v7561_v38, %v2071_v2 }
 0x41d   : > { %v7626_v31 = vpop.eup %6030  ;;  %v2100_v50 = vmul.f32 %v7524_v42, %v2068_v36  ;;  %6046 = vtanh.f32 %v1953_v48  ;;  %v2102_v20 = vmul.f32 %v7547_v7, %v2070_v28  ;;  %v7634_v10 = vadd.f32 %v7480_v16, %v1768_v13 }
 0x41e   : > { %v7637_v21 = vadd.f32 %v7484_v32, %v1770_v8  ;;  %v7641_v25 = vpop.eup %6032  ;;  %6048 = vpow2.f32 %v2034_v26  ;;  %v7646_v42 = vsel %vm1909_vm8, %v7452_v6, %v2101_v45  ;;  %v7651_v7 = vsel %vm1911_vm10, %v7459_v37, %v2103_v40 }
 0x41f   : > { %v1772_v16 = vadd.f32 %v1771_v5, %v7378_v60  ;;  %v7656_v32 = vpop.eup %6034  ;;  %v2196_v28 = vpack.c.bf16 %v7651_v7, %v7646_v42  ;;  %v7663_v26 = vsel %vm1908_vm7, %v7445_v29, %v2100_v50  ;;  %v7668_v45 = vsel %vm1910_vm9, %v7456_v59, %v2102_v20 }
 0x420   : > { %v7630_v18 = vpop.f32.mrb[72].mxu1  ;;  %v1892_v6 = vmin.f32 %v7634_v10, 0.0  ;;  %v7671_v36 = vpop.eup %6036  ;;  %6050 = vtanh.f32 %v1954_v17  ;;  %v2195_v5 = vpack.c.bf16 %v7668_v45, %v7663_v26  ;;  %v1893_v35 = vmin.f32 %v7637_v21, 0.0 }
 0x421   : > { %v7639_v41 = vpop.f32.mrb[73].mxu1  ;;  %v7678_v29 = vmul.f32 %v7236_v14, %v7207_v34  ;;  %v7680_v33 = vpop.eup %6038  ;;  %6052 = vpow2.f32 %v2036_v23  ;;  %2353 = vmatprep.mubr.bf16.mxu0 %v2196_v28  ;;  %v7683_v2 = vadd.f32 %v7489_v27, %v1772_v16  ;;  %vm1912_vm11 = vcmp.gt.f32.partialorder %v7500_v24, 0.0 }
 0x422   : > { %v7654_v38 = vpop.f32.mrb[74].mxu1  ;;  %v1956_v59 = vmul.f32 0.5, %v1892_v6  ;;  %v2040_v48 = vmul.f32 1.442695, %v1892_v6  ;;  %v7685_v13 = vpop.eup %6040  ;;  %6054 = vtanh.f32 %v1955_v3  ;;  %2354 = vmatmul.mubr.bf16.gmra.mrb[52].mxu0 %v2195_v5  ;;  %v1957_v17 = vmul.f32 0.5, %v1893_v35 }
 0x423   : > { %v1783_v37 = vpop.f32.mrb[75].mxu1  ;;  %v1774_v8 = vadd.f32 %v1773_v47, %v7381_v61  ;;  %v2073_v34 = vadd.f32 1.0, %v7594_v62  ;;  %6056 = vpow2.f32 %v2038_v63  ;;  %v2042_v14 = vmul.f32 1.442695, %v1893_v35 }
 0x424   : > { %v1894_v23 = vmin.f32 %v7683_v2, 0.0  ;;  %v2075_v40 = vadd.f32 1.0, %v6025_v53  ;;  %v7691_v50 = vpop.eup %6042  ;;  %6058 = vtanh.f32 %v1956_v59  ;;  %v2072_v3 = vadd.f32 1.0, %v7578_v49 }
 0x425   : > { %v7694_v27 = vadd.f32 %v7493_v57, %v1774_v8  ;;  %v2105_v20 = vmul.f32 %v7586_v0, %v2073_v34  ;;  %vm1913_vm12 = vcmp.gt.f32.partialorder %v7503_v52, 0.0  ;;  %6060 = vpow2.f32 %v2040_v48 }
 0x426   : > { %v1958_v62 = vmul.f32 0.5, %v1894_v23  ;;  %v2107_v47 = vmul.f32 %v7613_v44, %v2075_v40  ;;  %v7704_v53 = vpop.eup %6044  ;;  %vm1915_vm13 = vcmp.gt.f32.partialorder %v7509_v9, 0.0  ;;  %6062 = vtanh.f32 %v1957_v17 }
 0x427   : > { %v2044_v57 = vmul.f32 1.442695, %v1894_v23  ;;  %v1895_v0 = vmin.f32 %v7694_v27, 0.0  ;;  %v7710_v49 = vpop.eup %6046  ;;  %v7713_v6 = vsel %vm1913_vm12, %v7503_v52, %v2105_v20  ;;  %v2074_v44 = vadd.f32 1.0, %v7609_v19 }
 0x428   : > { %v7698_v16 = vpop.f32.mrb[76].mxu1  ;;  %v7716_v5 = vsel %vm1915_vm13, %v7509_v9, %v2107_v47  ;;  %v2104_v35 = vmul.f32 %v7569_v51, %v2072_v3  ;;  %v7722_v48 = vpop.eup %6048  ;;  %vm1914_vm14 = vcmp.gt.f32.partialorder %v7506_v1, 0.0  ;;  %6064 = vpow2.f32 %v2042_v14 }
 0x429   : > { %v7702_v63 = vpop.f32.mrb[77].mxu1  ;;  %9257 = vst [vmem:[#allocation16_spill] sm:$0xff] %v7716_v5  ;;  %v1959_v17 = vmul.f32 0.5, %v1895_v0  ;;  %v2198_v8 = vpack.c.bf16 %v7716_v5, %v7713_v6  ;;  %6066 = vtanh.f32 %v1958_v62  ;;  %v2106_v52 = vmul.f32 %v7604_v11, %v2074_v44 }
 0x42a   : > { %v7708_v28 = vpop.f32.mrb[78].mxu1  ;;  %v1778_v9 = vadd.f32 %v7630_v18, %v7378_v60  ;;  %v1780_v51 = vadd.f32 %v7639_v41, %v7381_v61  ;;  %v7732_v19 = vpop.eup %6050  ;;  %vm1917_vm0 = vcmp.gt.f32.partialorder %v7532_v58, 0.0  ;;  %6068 = vpow2.f32 %v2044_v57 }
 0x42b   : > { %v7720_v59 = vpop.f32.mrb[79].mxu1  ;;  %v2046_v34 = vmul.f32 1.442695, %v1895_v0  ;;  %2361 = vmatprep.mubr.bf16.mxu0 %v2198_v8  ;;  %v1782_v14 = vadd.f32 %v7654_v38, %v7378_v60  ;;  %v1784_v23 = vadd.f32 %v1783_v37, %v7381_v61  ;;  %v7738_v40 = vpop.eup %6052  ;;  %v7743_v11 = vsel %vm1912_vm11, %v7500_v24, %v2104_v35 }
 0x42c   : > { %v7748_v18 = vsel %vm1914_vm14, %v7506_v1, %v2106_v52  ;;  %v7751_v41 = vadd.f32 %v7239_v46, %v1778_v9  ;;  %v7754_v20 = vadd.f32 %v7602_v39, %v1780_v51  ;;  %v7756_v38 = vpop.eup %6054  ;;  %6070 = vtanh.f32 %v1959_v17 }
 0x42d   : > { %v2197_v37 = vpack.c.bf16 %v7748_v18, %v7743_v11  ;;  %v7761_v24 = vadd.f32 %v7242_v55, %v1782_v14  ;;  %v7764_v3 = vadd.f32 %v7678_v29, %v1784_v23  ;;  %v7766_v1 = vpop.eup %6056  ;;  %vm1916_vm2 = vcmp.gt.f32.partialorder %v7527_v54, 0.0 }
 0x42e   : > { %v1896_v46 = vmin.f32 %v7751_v41, 0.0  ;;  %v1897_v39 = vmin.f32 %v7754_v20, 0.0  ;;  %v2077_v62 = vadd.f32 1.0, %v7641_v25  ;;  %v2079_v47 = vadd.f32 1.0, %v7685_v13  ;;  %v7773_v57 = vpop.eup %6058 }
 0x42f   : > { %vm1919_vm15 = vcmp.gt.f32.partialorder %v7544_v12, 0.0  ;;  %6072 = vpow2.f32 %v2046_v34  ;;  %2362 = vmatmul.mubr.bf16.gmra.mrb[56].mxu0 %v2197_v37  ;;  %v1898_v55 = vmin.f32 %v7761_v24, 0.0  ;;  %v1899_v29 = vmin.f32 %v7764_v3, 0.0  ;;  %v7778_v0 = vpop.eup %6060 }
 0x430   : > { %v1960_v44 = vmul.f32 0.5, %v1896_v46  ;;  %v2048_v35 = vmul.f32 1.442695, %v1896_v46  ;;  %v1961_v17 = vmul.f32 0.5, %v1897_v39  ;;  %v2050_v8 = vmul.f32 1.442695, %v1897_v39  ;;  %v7780_v52 = vpop.eup %6062 }
 0x431   : > { %v1962_v25 = vmul.f32 0.5, %v1898_v55  ;;  %v2052_v13 = vmul.f32 1.442695, %v1898_v55  ;;  %v1963_v9 = vmul.f32 0.5, %v1899_v29  ;;  %v2054_v51 = vmul.f32 1.442695, %v1899_v29 }
 0x432   : > { %6074 = vtanh.f32 %v1960_v44  ;;  %v2109_v34 = vmul.f32 %v7626_v31, %v2077_v62  ;;  %v2111_v14 = vmul.f32 %v7680_v33, %v2079_v47  ;;  %v2076_v23 = vadd.f32 1.0, %v7621_v56  ;;  %v7785_v37 = vpop.eup %6064 }
 0x433   : > { %6076 = vpow2.f32 %v2048_v35  ;;  %v2078_v46 = vadd.f32 1.0, %v7671_v36  ;;  %v1788_v39 = vadd.f32 %v7698_v16, %v7378_v60  ;;  %v1790_v55 = vadd.f32 %v7702_v63, %v7381_v61  ;;  %v7792_v5 = vpop.eup %6066  ;;  %v9259_v35 = vld [vmem:[#allocation13_spill] sm:$0xff] }
 0x434   : > { %6078 = vtanh.f32 %v1961_v17  ;;  %v7797_v31 = vsel %vm1917_vm0, %v7532_v58, %v2109_v34  ;;  %v7802_v56 = vsel %vm1919_vm15, %v7544_v12, %v2111_v14  ;;  %v2108_v36 = vmul.f32 %v7617_v4, %v2076_v23  ;;  %v7805_v33 = vpop.eup %6068  ;;  %v9261_v34 = vld [vmem:[#allocation26_spill] sm:$0xff] }
 0x435   : > { %6080 = vpow2.f32 %v2050_v8  ;;  %v2200_v16 = vpack.c.bf16 %v7802_v56, %v7797_v31  ;;  %v2110_v63 = vmul.f32 %v7656_v32, %v2078_v46  ;;  %v7811_v62 = vadd.f32 %v7245_v15, %v1788_v39  ;;  %v9262_v46 = vld [vmem:[#allocation12_spill] sm:$0xff] }
 0x436   : > { %vm1918_vm1 = vcmp.gt.f32.partialorder %v7538_v30, 0.0  ;;  %6082 = vtanh.f32 %v1962_v25  ;;  %v7815_v58 = vadd.f32 %v7248_v22, %v1790_v55  ;;  %v1792_v4 = vadd.f32 %v7708_v28, %v7378_v60  ;;  %v7819_v12 = vpop.eup %6070  ;;  %v9258_v22 = vld [vmem:[#allocation23_spill] sm:$0xff] }
 0x437   : > { %6084 = vpow2.f32 %v2052_v13  ;;  %2369 = vmatprep.mubr.bf16.mxu0 %v2200_v16  ;;  %v7824_v32 = vsel %vm1916_vm2, %v7527_v54, %v2108_v36  ;;  %v7827_v15 = vsel %vm1918_vm1, %v7538_v30, %v2110_v63  ;;  %v1900_v47 = vmin.f32 %v7811_v62, 0.0  ;;  %v9260_v30 = vld [vmem:[#allocation22_spill] sm:$0xff] }
 0x438   : > { %vm1920_vm3 = vcmp.gt.f32.partialorder %v7583_v43, 0.0  ;;  %vm1921_vm4 = vcmp.gt.f32.partialorder %v9258_v22, 0.0  ;;  %6086 = vtanh.f32 %v1963_v9  ;;  %v2199_v60 = vpack.c.bf16 %v7827_v15, %v7824_v32 }
 0x439   : > { %v1901_v28 = vmin.f32 %v7815_v58, 0.0  ;;  %v6073_v29 = vpop.eup %6072  ;;  %6088 = vpow2.f32 %v2054_v51  ;;  %v1964_v44 = vmul.f32 0.5, %v1900_v47  ;;  %v2056_v54 = vmul.f32 1.442695, %v1900_v47 }
 0x43a   : > { %v7836_v17 = vadd.f32 %v9259_v35, %v1792_v4  ;;  %vm1922_vm5 = vcmp.gt.f32.partialorder %v9260_v30, 0.0  ;;  %2370 = vmatmul.mubr.bf16.gmra.mrb[60].mxu0 %v2199_v60  ;;  %v1794_v13 = vadd.f32 %v7720_v59, %v7381_v61  ;;  %v2081_v9 = vadd.f32 1.0, %v7722_v48 }
 0x43b   : > { %v1965_v8 = vmul.f32 0.5, %v1901_v28  ;;  %v2058_v25 = vmul.f32 1.442695, %v1901_v28  ;;  %vm1923_vm6 = vcmp.gt.f32.partialorder %v9261_v34, 0.0  ;;  %6090 = vtanh.f32 %v1964_v44 }
 0x43c   : > { %v1902_v51 = vmin.f32 %v7836_v17, 0.0  ;;  %v2083_v14 = vadd.f32 1.0, %v7766_v1  ;;  %v7845_v23 = vpop.eup %6074  ;;  %vm1925_vm7 = vcmp.gt.f32.partialorder %v7637_v21, 0.0  ;;  %6092 = vpow2.f32 %v2056_v54 }
 0x43d   : > { %v7849_v39 = vadd.f32 %v9262_v46, %v1794_v13  ;;  %v2113_v55 = vmul.f32 %v7710_v49, %v2081_v9  ;;  %v2080_v61 = vadd.f32 1.0, %v7704_v53  ;;  %v6077_v59 = vpop.eup %6076  ;;  %vm1924_vm8 = vcmp.gt.f32.partialorder %v7634_v10, 0.0 }
 0x43e   : > { %vm1926_vm9 = vcmp.gt.f32.partialorder %v7683_v2, 0.0  ;;  %6094 = vtanh.f32 %v1965_v8  ;;  %v1966_v48 = vmul.f32 0.5, %v1902_v51  ;;  %v2060_v1 = vmul.f32 1.442695, %v1902_v51  ;;  %v6079_v16 = vpop.eup %6078 }
 0x43f   : > { %v2115_v36 = vmul.f32 %v7756_v38, %v2083_v14  ;;  %vm1927_vm10 = vcmp.gt.f32.partialorder %v7694_v27, 0.0  ;;  %6096 = vpow2.f32 %v2058_v25  ;;  %v1903_v63 = vmin.f32 %v7849_v39, 0.0  ;;  %v6081_v49 = vpop.eup %6080 }
 0x440   : > { %v7861_v53 = vsel %vm1921_vm4, %v9258_v22, %v2113_v55  ;;  %vm1929_vm11 = vcmp.gt.f32.partialorder %v7754_v20, 0.0  ;;  %6098 = vtanh.f32 %v1966_v48  ;;  %v2082_v38 = vadd.f32 1.0, %v7738_v40  ;;  %v6083_v60 = vpop.eup %6082 }
 0x441   : > { %v7867_v4 = vsel %vm1923_vm6, %v9261_v34, %v2115_v36  ;;  %v2112_v47 = vmul.f32 %v7691_v50, %v2080_v61  ;;  %6100 = vpow2.f32 %v2060_v1  ;;  %v1967_v28 = vmul.f32 0.5, %v1903_v63  ;;  %v6085_v54 = vpop.eup %6084 }
 0x442   : > { %v2062_v44 = vmul.f32 1.442695, %v1903_v63  ;;  %v2202_v22 = vpack.c.bf16 %v7867_v4, %v7861_v53  ;;  %v2114_v35 = vmul.f32 %v7732_v19, %v2082_v38  ;;  %v2085_v25 = vadd.f32 1.0, %v7785_v37  ;;  %v6087_v13 = vpop.eup %6086 }
 0x443   : > { %v7877_v8 = vsel %vm1920_vm3, %v7583_v43, %v2112_v47  ;;  %v2087_v40 = vadd.f32 1.0, %v6073_v29  ;;  %6102 = vtanh.f32 %v1967_v28  ;;  %v2084_v50 = vadd.f32 1.0, %v7778_v0  ;;  %v6089_v51 = vpop.eup %6088 }
 0x444   : > { %2377 = vmatprep.mubr.bf16.mxu0 %v2202_v22  ;;  %v2086_v9 = vadd.f32 1.0, %v7805_v33  ;;  %v2089_v34 = vadd.f32 1.0, %v6081_v49  ;;  %6104 = vpow2.f32 %v2062_v44  ;;  %v7885_v19 = vsel %vm1922_vm5, %v9260_v30, %v2114_v35 }
 0x445   : > { %v2117_v43 = vmul.f32 %v7780_v52, %v2085_v25  ;;  %v2119_v37 = vmul.f32 %v7819_v12, %v2087_v40  ;;  %v2201_v29 = vpack.c.bf16 %v7885_v19, %v7877_v8  ;;  %v2116_v14 = vmul.f32 %v7773_v57, %v2084_v50  ;;  %v6091_v46 = vpop.eup %6090 }
 0x446   : > { %v2118_v0 = vmul.f32 %v7792_v5, %v2086_v9  ;;  %v2091_v33 = vadd.f32 1.0, %v6089_v51  ;;  %v2121_v12 = vmul.f32 %v6079_v16, %v2089_v34  ;;  %v2088_v30 = vadd.f32 1.0, %v6077_v59  ;;  %v6093_v61 = vpop.eup %6092  ;;  %v9263_v9 = vld [vmem:[#allocation8_spill] sm:$0xff] }
 0x447   : > { %v7896_v55 = vsel %vm1925_vm7, %v7637_v21, %v2117_v43  ;;  %v7901_v52 = vsel %vm1927_vm10, %v7694_v27, %v2119_v37  ;;  %2378 = vmatmul.mubr.bf16.gmra.mrb[64].mxu0 %v2201_v29  ;;  %v2148_v5 = vsel %vm1924_vm8, %v7634_v10, %v2116_v14  ;;  %vm1931_vm12 = vcmp.gt.f32.partialorder %v7764_v3, 0.0  ;;  %v9264_v29 = vld [vmem:[#allocation9_spill] sm:$0xff] }
 0x448   : > { %v2204_v57 = vpack.c.bf16 %v7901_v52, %v7896_v55  ;;  %v2150_v21 = vsel %vm1926_vm9, %v7683_v2, %v2118_v0  ;;  %v2123_v48 = vmul.f32 %v6087_v13, %v2091_v33  ;;  %v6095_v1 = vpop.eup %6094  ;;  %v2090_v36 = vadd.f32 1.0, %v6085_v54 }
 0x449   : > { %v2203_v27 = vpack.c.bf16 %v2150_v21, %v2148_v5  ;;  %v2120_v59 = vmul.f32 %v7845_v23, %v2088_v30  ;;  %v6097_v16 = vpop.eup %6096  ;;  %v2153_v63 = vsel %vm1929_vm11, %v7754_v20, %v2121_v12  ;;  %v2092_v49 = vadd.f32 1.0, %v6093_v61 }
 0x44a   : > { %2385 = vmatprep.mubr.bf16.mxu0 %v2204_v57  ;;  %v2155_v10 = vsel %vm1931_vm12, %v7764_v3, %v2123_v48  ;;  %v6099_v38 = vpop.eup %6098  ;;  %v2122_v2 = vmul.f32 %v6083_v60, %v2090_v36  ;;  %v2093_v28 = vadd.f32 1.0, %v6097_v16  ;;  %vm1928_vm13 = vcmp.gt.f32.partialorder %v7751_v41, 0.0  ;;  %v5151_v3 = vld [vmem:[%s9141_s9 + $0x2] sm:$0x3]  ;;  %v5697_v48 = vld [vmem:[#allocation2 + $0xf4] ss:$8 sps:$4 sm:$0xff]  }
 0x44b   : > { %v2206_v47 = vpack.c.bf16 %v2155_v10, %v2153_v63  ;;  %v6101_v44 = vpop.eup %6100  ;;  %vm1930_vm14 = vcmp.gt.f32.partialorder %v7761_v24, 0.0  ;;  %v2152_v23 = vsel %vm1928_vm13, %v7751_v41, %v2120_v59  ;;  %v2124_v35 = vmul.f32 %v6091_v46, %v2092_v49  ;;  %2558 = vmatprep.subr.bf16.mxu1 %v5697_v48  ;;  %v5703_v36 = vld [vmem:[#allocation4 + $0x114] ss:$8 sps:$4 sm:$0xff]   ;;  %v5701_v59 = vld [vmem:[#allocation4 + $0x110] ss:$8 sps:$4 sm:$0xff]  }
 0x44c   : > { %v2154_v22 = vsel %vm1930_vm14, %v7761_v24, %v2122_v2  ;;  %v2094_v54 = vadd.f32 1.0, %v6101_v44  ;;  %v2125_v60 = vmul.f32 %v6095_v1, %v2093_v28  ;;  %vm1932_vm0 = vcmp.gt.f32.partialorder %v7811_v62, 0.0  ;;  %v5698_v1 = vld [vmem:[#allocation4 + $0x100] ss:$8 sps:$4 sm:$0xff]   ;;  %v5706_v16 = vld [vmem:[#allocation4 + $0x124] ss:$8 sps:$4 sm:$0xff]  }
 0x44d   : > { %v6103_v25 = vpop.eup %6102  ;;  %v2205_v20 = vpack.c.bf16 %v2154_v22, %v2152_v23  ;;  %vm1934_vm2 = vcmp.gt.f32.partialorder %v7836_v17, 0.0  ;;  %v2156_v41 = vsel %vm1932_vm0, %v7811_v62, %v2124_v35  ;;  %v7929_v34 = vrot.slane %v5151_v3, %v9263_v9  ;;  %v5707_v49 = vld [vmem:[#allocation4 + $0x130] ss:$8 sps:$4 sm:$0xff]   ;;  %v5715_v2 = vld [vmem:[#allocation4 + $0x154] ss:$8 sps:$4 sm:$0xff]  }
 0x44e   : > { %v6105_v40 = vpop.eup %6104  ;;  %v2126_v13 = vmul.f32 %v6099_v38, %v2094_v54  ;;  %vm1933_vm15 = vcmp.gt.f32.partialorder %v7815_v58, 0.0  ;;  %vm1935_vm1 = vcmp.gt.f32.partialorder %v7849_v39, 0.0  ;;  %v7935_v14 = vrot.slane %v5151_v3, %v9264_v29  ;;  %v5712_v38 = vld [vmem:[#allocation4 + $0x144] ss:$8 sps:$4 sm:$0xff]   ;;  %v5713_v28 = vld [vmem:[#allocation4 + $0x150] ss:$8 sps:$4 sm:$0xff]  }
 0x44f   : > { %2386 = vmatmul.mubr.bf16.gmra.mrb[68].mxu0 %v2203_v27  ;;  %v2095_v50 = vadd.f32 1.0, %v6105_v40  ;;  %v2157_v37 = vsel %vm1933_vm15, %v7815_v58, %v2125_v60  ;;  %v7938_v0 = vmul.f32 %v7929_v34, %v2148_v5  ;;  %v7945_v33 = vmul.f32 %v7929_v34, %v2152_v23  ;;  %v5700_v27 = vld [vmem:[#allocation4 + $0x104] ss:$8 sps:$4 sm:$0xff]   ;;  %v5716_v23 = vld [vmem:[#allocation4 + $0x160] ss:$8 sps:$4 sm:$0xff]  }
 0x450   : > { %2393 = vmatprep.mubr.bf16.mxu0 %v2206_v47  ;;  %v2158_v24 = vsel %vm1934_vm2, %v7836_v17, %v2126_v13  ;;  %v7942_v17 = vmul.f32 %v7929_v34, %v2150_v21  ;;  %v7948_v12 = vmul.f32 %v7935_v14, %v2153_v63  ;;  %v7951_v58 = vmul.f32 %v7929_v34, %v2154_v22  ;;  %v5695_v21 = vld [vmem:[#allocation2 + $0xf0] ss:$8 sps:$4 sm:$0xff]   ;;  %v5704_v63 = vld [vmem:[#allocation4 + $0x120] ss:$8 sps:$4 sm:$0xff]   ;;  %v5718_v44 = vld [vmem:[#allocation4 + $0x164] ss:$8 sps:$4 sm:$0xff]  }
 0x451   : > { %v2127_v51 = vmul.f32 %v6103_v25, %v2095_v50  ;;  %v2207_v43 = vpack.c.bf16 %v2158_v24, %v2156_v41  ;;  %v7954_v30 = vmul.f32 %v7935_v14, %v2155_v10  ;;  %v7957_v61 = vmul.f32 %v7929_v34, %v2156_v41  ;;  %2559 = vmatpush1.bf16.msra.mxu1 %v5695_v21  ;;  %v5709_v10 = vld [vmem:[#allocation4 + $0x134] ss:$8 sps:$4 sm:$0xff]   ;;  %v5710_v47 = vld [vmem:[#allocation4 + $0x140] ss:$8 sps:$4 sm:$0xff]   ;;  %v5719_v54 = vld [vmem:[#allocation4 + $0x170] ss:$8 sps:$4 sm:$0xff]  }
 0x452   : > { %v7963_v57 = vmul.f32 %v7929_v34, %v2158_v24  ;;  %2911 = vmatprep.subr.bf16.mxu0 %v5700_v27  ;;  %v5721_v22 = vld [vmem:[#allocation4 + $0x174] ss:$8 sps:$4 sm:$0xff]   ;;  %v5724_v35 = vld [vmem:[#allocation4 + $0x184] ss:$8 sps:$4 sm:$0xff]   ;;  %v5722_v25 = vld [vmem:[#allocation4 + $0x180] ss:$8 sps:$4 sm:$0xff]  }
 0x453   : > { %v2159_v62 = vsel %vm1935_vm1, %v7849_v39, %v2127_v51  ;;  %v7960_v39 = vmul.f32 %v7935_v14, %v2157_v37  ;;  %2912 = vmatpush1.bf16.msra.mxu0 %v5698_v1  ;;  %v5725_v3 = vld [vmem:[#allocation4 + $0x190] ss:$8 sps:$4 sm:$0xff]   ;;  %v5730_v40 = vld [vmem:[#allocation4 + $0x1a4] ss:$8 sps:$4 sm:$0xff]   ;;  %v5728_v60 = vld [vmem:[#allocation4 + $0x1a0] ss:$8 sps:$4 sm:$0xff]  }
 0x454   : > { %v2208_v46 = vpack.c.bf16 %v2159_v62, %v2157_v37  ;;  %v7966_v5 = vmul.f32 %v7935_v14, %v2159_v62  ;;  %2913 = vmatprep.subr.bf16.mxu0 %v5703_v36  ;;  %v5733_v13 = vld [vmem:[#allocation4 + $0x1b4] ss:$8 sps:$4 sm:$0xff]   ;;  %v5731_v50 = vld [vmem:[#allocation4 + $0x1b0] ss:$8 sps:$4 sm:$0xff]   ;;  %v5736_v41 = vld [vmem:[#allocation4 + $0x1c4] ss:$8 sps:$4 sm:$0xff]  }
 0x455   : > { %v7971_v51 = vld [vmem:[%s9136_s4 + $0x1] ss:$0 sm:$0xff]  ;;  %v5739_v48 = vld [vmem:[#allocation4 + $0x1d4] ss:$8 sps:$4 sm:$0xff]  }
 0x457   : > { %2394 = vmatmul.mubr.bf16.gmra.mrb[72].mxu0 %v2205_v20  ;;  %v5727_v20 = vld [vmem:[#allocation4 + $0x194] ss:$8 sps:$4 sm:$0xff]  }
 0x458   : > { %2401 = vmatprep.mubr.bf16.mxu0 %v2208_v46  ;;  %2914 = vmatpush1.bf16.msra.mxu0 %v5701_v59  ;;  %v5734_v46 = vld [vmem:[#allocation4 + $0x1c0] ss:$8 sps:$4 sm:$0xff]   ;;  %v5737_v59 = vld [vmem:[#allocation4 + $0x1d0] ss:$8 sps:$4 sm:$0xff]  }
 0x459   : > { %2915 = vmatprep.subr.bf16.mxu0 %v5706_v16 }
 0x45c   : > { %2916 = vmatpush1.bf16.msra.mxu0 %v5704_v63 }
 0x45d   : > { %2917 = vmatprep.subr.bf16.mxu0 %v5709_v10 }
 0x45f   : > { %2402 = vmatmul.mubr.bf16.gmra.mrb[76].mxu0 %v2207_v43 }
 0x460   : > { %2918 = vmatpush1.bf16.msra.mxu0 %v5707_v49 }
 0x461   : > { %2919 = vmatprep.subr.bf16.mxu0 %v5712_v38 }
 0x464   : > { %2920 = vmatpush1.bf16.msra.mxu0 %v5710_v47  ;;  %v9265_v47 = vmov 0  }
 0x465   : > { %2921 = vmatprep.subr.bf16.mxu0 %v5715_v2 }
 0x468   : > { %2922 = vmatpush1.bf16.msra.mxu0 %v5713_v28 }
 0x469   : > { %2923 = vmatprep.subr.bf16.mxu0 %v5718_v44 }
 0x46c   : > { %2924 = vmatpush1.bf16.msra.mxu0 %v5716_v23 }
 0x46d   : > { %2925 = vmatprep.subr.bf16.mxu0 %v5721_v22 }
 0x470   : > { %2926 = vmatpush1.bf16.msra.mxu0 %v5719_v54 }
 0x471   : > { %2927 = vmatprep.subr.bf16.mxu0 %v5724_v35 }
 0x474   : > { %2928 = vmatpush1.bf16.msra.mxu0 %v5722_v25 }
 0x475   : > { %2929 = vmatprep.subr.bf16.mxu0 %v5727_v20 }
 0x478   : > { %2930 = vmatpush1.bf16.msra.mxu0 %v5725_v3 }
 0x479   : > { %2931 = vmatprep.subr.bf16.mxu0 %v5730_v40 }
 0x47c   : > { %2932 = vmatpush1.bf16.msra.mxu0 %v5728_v60 }
 0x47d   : > { %2933 = vmatprep.subr.bf16.mxu0 %v5733_v13 }
 0x480   : > { %2934 = vmatpush1.bf16.msra.mxu0 %v5731_v50 }
 0x481   : > { %2935 = vmatprep.subr.bf16.mxu0 %v5736_v41 }
 0x484   : > { %2936 = vmatpush1.bf16.msra.mxu0 %v5734_v46 }
 0x485   : > { %2937 = vmatprep.subr.bf16.mxu0 %v5739_v48 }
 0x488   : > { %2938 = vmatpush1.bf16.msra.mxu0 %v5737_v59 }
 0x4ea   : > { %v5352_v24 = vpop.f32.mrb[48].mxu0 }
 0x4eb   : > { %v5353_v43 = vpop.f32.mrb[49].mxu0 }
 0x4ec   : > { %v5354_v37 = vadd.f32 %v5353_v43, %v5352_v24  ;;  %v5355_v62 = vpop.f32.mrb[50].mxu0 }
 0x4ed   : > { %v5356_v21 = vpop.f32.mrb[51].mxu0 }
 0x4ee   : > { %v2348_v1 = vadd.f32 %v5354_v37, %v7971_v51  ;;  %v5357_v27 = vadd.f32 %v5356_v21, %v5355_v62 }
 0x4f0   : > { %v2351_v36 = vadd.f32 %v5357_v27, %v7971_v51  ;;  %v2410_v16 = vmax.f32 %v2348_v1, 0.0 }
 0x4f2   : > { %v2411_v63 = vmax.f32 %v2351_v36, 0.0 }
 0x4f4   : > { %v2443_v10 = vpack.c.bf16 %v2411_v63, %v2410_v16 }
 0x4f5   : > { %v5358_v49 = vpop.f32.mrb[52].mxu0 }
 0x4f6   : > { %2577 = vmatmul.mubr.bf16.vlgmr.msra.gmra.mrb[80].mxu1 %v2443_v10  ;;  %v5359_v38 = vpop.f32.mrb[53].mxu0 }
 0x4f7   : > { %2586 = vmatprep.mubr.bf16.mxu1 %v9265_v47  ;;  %v5360_v2 = vadd.f32 %v5359_v38, %v5358_v49  ;;  %v5361_v28 = vpop.f32.mrb[54].mxu0 }
 0x4f8   : > { %v5362_v44 = vpop.f32.mrb[55].mxu0 }
 0x4f9   : > { %v2356_v23 = vadd.f32 %v5360_v2, %v7971_v51  ;;  %v5363_v22 = vadd.f32 %v5362_v44, %v5361_v28 }
 0x4fb   : > { %v2359_v54 = vadd.f32 %v5363_v22, %v7971_v51  ;;  %v2412_v35 = vmax.f32 %v2356_v23, 0.0 }
 0x4fd   : > { %v2413_v25 = vmax.f32 %v2359_v54, 0.0 }
 0x4ff   : > { %v2444_v20 = vpack.c.bf16 %v2413_v25, %v2412_v35 }
 0x501   : > { %2587 = vmatmul.mubr.bf16.gmra.mrb[84].mxu1 %v2444_v20 }
 0x502   : > { %v5364_v3 = vpop.f32.mrb[56].mxu0  ;;  %2596 = vmatprep.mubr.bf16.mxu1 %v9265_v47 }
 0x503   : > { %v5365_v40 = vpop.f32.mrb[57].mxu0 }
 0x504   : > { %v5366_v60 = vadd.f32 %v5365_v40, %v5364_v3  ;;  %v5367_v13 = vpop.f32.mrb[58].mxu0 }
 0x505   : > { %v5368_v50 = vpop.f32.mrb[59].mxu0 }
 0x506   : > { %v2364_v41 = vadd.f32 %v5366_v60, %v7971_v51  ;;  %v5369_v24 = vadd.f32 %v5368_v50, %v5367_v13 }
 0x508   : > { %v2367_v43 = vadd.f32 %v5369_v24, %v7971_v51  ;;  %v2414_v37 = vmax.f32 %v2364_v41, 0.0 }
 0x50a   : > { %v2415_v62 = vmax.f32 %v2367_v43, 0.0 }
 0x50c   : > { %v2445_v46 = vpack.c.bf16 %v2415_v62, %v2414_v37 }
 0x50d   : > { %v5370_v21 = vpop.f32.mrb[60].mxu0 }
 0x50e   : > { %v5371_v48 = vpop.f32.mrb[61].mxu0  ;;  %2597 = vmatmul.mubr.bf16.gmra.mrb[88].mxu1 %v2445_v46 }
 0x50f   : > { %v5372_v1 = vadd.f32 %v5371_v48, %v5370_v21  ;;  %v5373_v27 = vpop.f32.mrb[62].mxu0  ;;  %2606 = vmatprep.mubr.bf16.mxu1 %v9265_v47 }
 0x510   : > { %v5374_v36 = vpop.f32.mrb[63].mxu0 }
 0x511   : > { %v2372_v59 = vadd.f32 %v5372_v1, %v7971_v51  ;;  %v5375_v16 = vadd.f32 %v5374_v36, %v5373_v27 }
 0x513   : > { %v2375_v63 = vadd.f32 %v5375_v16, %v7971_v51  ;;  %v2416_v10 = vmax.f32 %v2372_v59, 0.0 }
 0x515   : > { %v2417_v49 = vmax.f32 %v2375_v63, 0.0 }
 0x517   : > { %v2446_v38 = vpack.c.bf16 %v2417_v49, %v2416_v10 }
 0x519   : > { %2607 = vmatmul.mubr.bf16.gmra.mrb[92].mxu1 %v2446_v38 }
 0x51a   : > { %v5376_v2 = vpop.f32.mrb[64].mxu0  ;;  %2616 = vmatprep.mubr.bf16.mxu1 %v9265_v47 }
 0x51b   : > { %v5377_v28 = vpop.f32.mrb[65].mxu0 }
 0x51c   : > { %v5378_v44 = vadd.f32 %v5377_v28, %v5376_v2  ;;  %v5379_v23 = vpop.f32.mrb[66].mxu0 }
 0x51d   : > { %v5380_v22 = vpop.f32.mrb[67].mxu0 }
 0x51e   : > { %v2380_v54 = vadd.f32 %v5378_v44, %v7971_v51  ;;  %v5381_v35 = vadd.f32 %v5380_v22, %v5379_v23 }
 0x520   : > { %v2383_v25 = vadd.f32 %v5381_v35, %v7971_v51  ;;  %v2418_v20 = vmax.f32 %v2380_v54, 0.0 }
 0x522   : > { %v2419_v3 = vmax.f32 %v2383_v25, 0.0  ;;  %v5382_v40 = vpop.f32.mrb[68].mxu0 }
 0x523   : > { %v5383_v60 = vpop.f32.mrb[69].mxu0 }
 0x524   : > { %v5384_v13 = vadd.f32 %v5383_v60, %v5382_v40  ;;  %v5385_v50 = vpop.f32.mrb[70].mxu0  ;;  %v2447_v41 = vpack.c.bf16 %v2419_v3, %v2418_v20 }
 0x525   : > { %v5386_v24 = vpop.f32.mrb[71].mxu0 }
 0x526   : > { %v2388_v43 = vadd.f32 %v5384_v13, %v7971_v51  ;;  %v5387_v37 = vadd.f32 %v5386_v24, %v5385_v50  ;;  %2617 = vmatmul.mubr.bf16.gmra.mrb[96].mxu1 %v2447_v41  ;;  %v5740_v50 = vld [vmem:[#allocation4 + $0x1e0] ss:$8 sps:$4 sm:$0xff]   ;;  %v5742_v41 = vld [vmem:[#allocation4 + $0x1e4] ss:$8 sps:$4 sm:$0xff]   ;;  %v5745_v24 = vld [vmem:[#allocation4 + $0x1f4] ss:$8 sps:$4 sm:$0xff]  }
 0x527   : > { %2626 = vmatprep.mubr.bf16.mxu1 %v9265_v47  ;;  %2939 = vmatprep.subr.bf16.mxu0 %v5742_v41 }
 0x528   : > { %v2391_v62 = vadd.f32 %v5387_v37, %v7971_v51  ;;  %v2420_v46 = vmax.f32 %v2388_v43, 0.0  ;;  %2940 = vmatpush1.bf16.msra.mxu0 %v5740_v50  ;;  %v5743_v43 = vld [vmem:[#allocation4 + $0x1f0] ss:$8 sps:$4 sm:$0xff]   ;;  %v5746_v37 = vld [vmem:[%s9135_s3 + $0x140] sm:$0xff]  }
 0x529   : > { %2941 = vmatprep.subr.bf16.mxu0 %v5745_v24  ;;  %5400 = vmatprep.subr.bf16.mxu1 %v5746_v37 }
 0x52a   : > { %v2421_v21 = vmax.f32 %v2391_v62, 0.0  ;;  %v5388_v48 = vpop.f32.mrb[72].mxu0  ;;  %v5748_v62 = vld [vmem:[%s9135_s3 + $0x148] sm:$0xff]  }
 0x52b   : > { %v5389_v1 = vpop.f32.mrb[73].mxu0 }
 0x52c   : > { %v5390_v27 = vadd.f32 %v5389_v1, %v5388_v48  ;;  %v5391_v36 = vpop.f32.mrb[74].mxu0  ;;  %v2448_v59 = vpack.c.bf16 %v2421_v21, %v2420_v46  ;;  %2942 = vmatpush1.bf16.msra.mxu0 %v5743_v43  ;;  %v5749_v46 = vld [vmem:[%s9135_s3 + $0x108] sm:$0xff]   ;;  %v5750_v21 = vld [vmem:[%s9135_s3 + $0x150] sm:$0xff]   ;;  %v5752_v1 = vld [vmem:[%s9135_s3 + $0x158] sm:$0xff]  }
 0x52d   : > { %v5392_v16 = vpop.f32.mrb[75].mxu0  ;;  %v5751_v48 = vld [vmem:[%s9135_s3 + $0x110] sm:$0xff]  }
 0x52e   : > { %v2396_v63 = vadd.f32 %v5390_v27, %v7971_v51  ;;  %v5393_v10 = vadd.f32 %v5392_v16, %v5391_v36  ;;  %2627 = vmatmul.mubr.bf16.gmra.mrb[100].mxu1 %v2448_v59  ;;  %v5753_v27 = vld [vmem:[%s9135_s3 + $0x118] sm:$0xff]   ;;  %v5754_v36 = vld [vmem:[%s9135_s3 + $0x160] sm:$0xff]  }
 0x52f   : > { %2636 = vmatprep.mubr.bf16.mxu1 %v9265_v47  ;;  %v5755_v59 = vld [vmem:[%s9135_s3 + $0x120] sm:$0xff]  }
 0x530   : > { %v2399_v49 = vadd.f32 %v5393_v10, %v7971_v51  ;;  %v2422_v38 = vmax.f32 %v2396_v63, 0.0  ;;  %v5101_v16 = vld [vmem:[%s9138_s6 + $0x2] sm:$0x3] }
 0x531   : > { %v8030_v63 = vrot.slane %v5101_v16, %v9263_v9  ;;  %v8033_v10 = vrot.slane %v5101_v16, %v9264_v29 }
 0x532   : > { %v2423_v2 = vmax.f32 %v2399_v49, 0.0  ;;  %v5394_v28 = vpop.f32.mrb[76].mxu0 }
 0x533   : > { %v5395_v44 = vpop.f32.mrb[77].mxu0 }
 0x534   : > { %v5396_v23 = vadd.f32 %v5395_v44, %v5394_v28  ;;  %v5397_v22 = vpop.f32.mrb[78].mxu0  ;;  %v2449_v54 = vpack.c.bf16 %v2423_v2, %v2422_v38 }
 0x535   : > { %v5398_v35 = vpop.f32.mrb[79].mxu0 }
 0x536   : > { %v2404_v25 = vadd.f32 %v5396_v23, %v7971_v51  ;;  %v5399_v20 = vadd.f32 %v5398_v35, %v5397_v22  ;;  %2637 = vmatmul.mubr.bf16.gmra.mrb[104].mxu1 %v2449_v54 }
 0x537   : > { %2646 = vmatprep.mubr.bf16.mxu1 %v9265_v47 }
 0x538   : > { %v2407_v3 = vadd.f32 %v5399_v20, %v7971_v51  ;;  %v2424_v40 = vmax.f32 %v2404_v25, 0.0  ;;  %v5747_v51 = vld [vmem:[%s9135_s3 + $0x100] sm:$0xff]  }
 0x539   : > { %5401 = vmatpush3.bf16.msra.mxu1 %v5747_v51 }
 0x53a   : > { %v2425_v60 = vmax.f32 %v2407_v3, 0.0  ;;  %5402 = vmatprep.subr.bf16.mxu1 %v5748_v62 }
 0x53c   : > { %v2450_v13 = vpack.c.bf16 %v2425_v60, %v2424_v40 }
 0x53d   : > { %5403 = vmatpush3.bf16.msra.mxu1 %v5749_v46 }
 0x53e   : > { %2647 = vmatmul.mubr.bf16.gmra.mrb[108].mxu1 %v2450_v13  ;;  %5404 = vmatprep.subr.bf16.mxu1 %v5750_v21 }
 0x541   : > { %5405 = vmatpush3.bf16.msra.mxu1 %v5751_v48 }
 0x542   : > { %5406 = vmatprep.subr.bf16.mxu1 %v5752_v1 }
 0x545   : > { %5407 = vmatpush3.bf16.msra.mxu1 %v5753_v27 }
 0x546   : > { %5408 = vmatprep.subr.bf16.mxu1 %v5754_v36 }
 0x549   : > { %5409 = vmatpush3.bf16.msra.mxu1 %v5755_v59 }
 0x5c9   : > { %v2578_v49 = vpop.f32.mrb[80].mxu1 }
 0x5ca   : > { %v2579_v38 = vadd.f32 %v2578_v49, %v8030_v63  ;;  %v2580_v2 = vpop.f32.mrb[81].mxu1 }
 0x5cb   : > { %v2581_v28 = vadd.f32 %v2580_v2, %v8033_v10  ;;  %v2582_v44 = vpop.f32.mrb[82].mxu1 }
 0x5cc   : > { %v2583_v23 = vadd.f32 %v2582_v44, %v8030_v63  ;;  %v2584_v22 = vpop.f32.mrb[83].mxu1  ;;  %v2657_v35 = vmax.f32 %v2579_v38, 0.0 }
 0x5cd   : > { %v2585_v54 = vadd.f32 %v2584_v22, %v8033_v10  ;;  %v2658_v20 = vmax.f32 %v2581_v28, 0.0 }
 0x5ce   : > { %v2659_v25 = vmax.f32 %v2583_v23, 0.0 }
 0x5cf   : > { %v2660_v3 = vmax.f32 %v2585_v54, 0.0 }
 0x5d0   : > { %v2722_v40 = vpack.c.bf16 %v2659_v25, %v2657_v35 }
 0x5d1   : > { %v2723_v60 = vpack.c.bf16 %v2660_v3, %v2658_v20 }
 0x5d3   : > { %2943 = vmatprep.mubr.bf16.mxu0 %v2723_v60 }
 0x5d4   : > { %2944 = vmatmul.mubr.bf16.vlgmr.msra.gmra.mrb[80].mxu0 %v2722_v40  ;;  %v2588_v13 = vpop.f32.mrb[84].mxu1 }
 0x5d5   : > { %v2589_v50 = vadd.f32 %v2588_v13, %v8030_v63  ;;  %v2590_v41 = vpop.f32.mrb[85].mxu1 }
 0x5d6   : > { %v2591_v24 = vadd.f32 %v2590_v41, %v8033_v10  ;;  %v2592_v43 = vpop.f32.mrb[86].mxu1 }
 0x5d7   : > { %v2593_v37 = vadd.f32 %v2592_v43, %v8030_v63  ;;  %v2594_v51 = vpop.f32.mrb[87].mxu1  ;;  %v2661_v46 = vmax.f32 %v2589_v50, 0.0 }
 0x5d8   : > { %v2595_v62 = vadd.f32 %v2594_v51, %v8033_v10  ;;  %v2662_v48 = vmax.f32 %v2591_v24, 0.0 }
 0x5d9   : > { %v2663_v21 = vmax.f32 %v2593_v37, 0.0 }
 0x5da   : > { %v2664_v1 = vmax.f32 %v2595_v62, 0.0 }
 0x5db   : > { %v2724_v27 = vpack.c.bf16 %v2663_v21, %v2661_v46 }
 0x5dc   : > { %v2725_v36 = vpack.c.bf16 %v2664_v1, %v2662_v48 }
 0x5de   : > { %2953 = vmatprep.mubr.bf16.mxu0 %v2725_v36 }
 0x5df   : > { %2954 = vmatmul.mubr.bf16.gmra.mrb[84].mxu0 %v2724_v27 }
 0x5e1   : > { %v2598_v59 = vpop.f32.mrb[88].mxu1 }
 0x5e2   : > { %v2599_v16 = vadd.f32 %v2598_v59, %v8030_v63  ;;  %v2600_v49 = vpop.f32.mrb[89].mxu1 }
 0x5e3   : > { %v2601_v38 = vadd.f32 %v2600_v49, %v8033_v10  ;;  %v2602_v2 = vpop.f32.mrb[90].mxu1 }
 0x5e4   : > { %v2603_v28 = vadd.f32 %v2602_v2, %v8030_v63  ;;  %v2604_v44 = vpop.f32.mrb[91].mxu1  ;;  %v2665_v22 = vmax.f32 %v2599_v16, 0.0 }
 0x5e5   : > { %v2605_v23 = vadd.f32 %v2604_v44, %v8033_v10  ;;  %v2666_v35 = vmax.f32 %v2601_v38, 0.0 }
 0x5e6   : > { %v2667_v54 = vmax.f32 %v2603_v28, 0.0 }
 0x5e7   : > { %v2668_v25 = vmax.f32 %v2605_v23, 0.0 }
 0x5e8   : > { %v2726_v20 = vpack.c.bf16 %v2667_v54, %v2665_v22 }
 0x5e9   : > { %v2727_v3 = vpack.c.bf16 %v2668_v25, %v2666_v35 }
 0x5eb   : > { %2963 = vmatprep.mubr.bf16.mxu0 %v2727_v3 }
 0x5ec   : > { %v2608_v40 = vpop.f32.mrb[92].mxu1  ;;  %2964 = vmatmul.mubr.bf16.gmra.mrb[88].mxu0 %v2726_v20 }
 0x5ed   : > { %v2609_v60 = vadd.f32 %v2608_v40, %v8030_v63  ;;  %v2610_v13 = vpop.f32.mrb[93].mxu1 }
 0x5ee   : > { %v2611_v50 = vadd.f32 %v2610_v13, %v8033_v10  ;;  %v2612_v41 = vpop.f32.mrb[94].mxu1 }
 0x5ef   : > { %v2613_v24 = vadd.f32 %v2612_v41, %v8030_v63  ;;  %v2614_v43 = vpop.f32.mrb[95].mxu1  ;;  %v2669_v51 = vmax.f32 %v2609_v60, 0.0 }
 0x5f0   : > { %v2615_v37 = vadd.f32 %v2614_v43, %v8033_v10  ;;  %v2670_v46 = vmax.f32 %v2611_v50, 0.0 }
 0x5f1   : > { %v2671_v62 = vmax.f32 %v2613_v24, 0.0 }
 0x5f2   : > { %v2672_v21 = vmax.f32 %v2615_v37, 0.0 }
 0x5f3   : > { %v2728_v48 = vpack.c.bf16 %v2671_v62, %v2669_v51 }
 0x5f4   : > { %v2729_v1 = vpack.c.bf16 %v2672_v21, %v2670_v46 }
 0x5f6   : > { %2973 = vmatprep.mubr.bf16.mxu0 %v2729_v1 }
 0x5f7   : > { %2974 = vmatmul.mubr.bf16.gmra.mrb[92].mxu0 %v2728_v48 }
 0x5f9   : > { %v2618_v27 = vpop.f32.mrb[96].mxu1 }
 0x5fa   : > { %v2619_v36 = vadd.f32 %v2618_v27, %v8030_v63  ;;  %v2620_v59 = vpop.f32.mrb[97].mxu1 }
 0x5fb   : > { %v2621_v16 = vadd.f32 %v2620_v59, %v8033_v10  ;;  %v2622_v49 = vpop.f32.mrb[98].mxu1 }
 0x5fc   : > { %v2623_v38 = vadd.f32 %v2622_v49, %v8030_v63  ;;  %v2624_v2 = vpop.f32.mrb[99].mxu1  ;;  %v2673_v44 = vmax.f32 %v2619_v36, 0.0 }
 0x5fd   : > { %v2625_v28 = vadd.f32 %v2624_v2, %v8033_v10  ;;  %v2674_v22 = vmax.f32 %v2621_v16, 0.0 }
 0x5fe   : > { %v2675_v23 = vmax.f32 %v2623_v38, 0.0 }
 0x5ff   : > { %v2676_v54 = vmax.f32 %v2625_v28, 0.0 }
 0x600   : > { %v2730_v35 = vpack.c.bf16 %v2675_v23, %v2673_v44 }
 0x601   : > { %v2731_v25 = vpack.c.bf16 %v2676_v54, %v2674_v22  ;;  %v2628_v20 = vpop.f32.mrb[100].mxu1 }
 0x602   : > { %v2629_v3 = vadd.f32 %v2628_v20, %v8030_v63  ;;  %v2630_v40 = vpop.f32.mrb[101].mxu1 }
 0x603   : > { %v2631_v60 = vadd.f32 %v2630_v40, %v8033_v10  ;;  %v2632_v13 = vpop.f32.mrb[102].mxu1  ;;  %2983 = vmatprep.mubr.bf16.mxu0 %v2731_v25 }
 0x604   : > { %v2633_v50 = vadd.f32 %v2632_v13, %v8030_v63  ;;  %v2634_v41 = vpop.f32.mrb[103].mxu1  ;;  %2984 = vmatmul.mubr.bf16.gmra.mrb[96].mxu0 %v2730_v35  ;;  %v2677_v43 = vmax.f32 %v2629_v3, 0.0 }
 0x605   : > { %v2635_v24 = vadd.f32 %v2634_v41, %v8033_v10  ;;  %v2678_v51 = vmax.f32 %v2631_v60, 0.0 }
 0x606   : > { %v2679_v37 = vmax.f32 %v2633_v50, 0.0 }
 0x607   : > { %v2680_v62 = vmax.f32 %v2635_v24, 0.0 }
 0x608   : > { %v2732_v46 = vpack.c.bf16 %v2679_v37, %v2677_v43 }
 0x609   : > { %v2733_v21 = vpack.c.bf16 %v2680_v62, %v2678_v51  ;;  %v2638_v48 = vpop.f32.mrb[104].mxu1 }
 0x60a   : > { %v2639_v1 = vadd.f32 %v2638_v48, %v8030_v63  ;;  %v2640_v27 = vpop.f32.mrb[105].mxu1  ;;  %v5760_v48 = vld [vmem:[%s9135_s3 + $0x178] sm:$0xff]  }
 0x60b   : > { %v2641_v36 = vadd.f32 %v2640_v27, %v8033_v10  ;;  %v2642_v59 = vpop.f32.mrb[106].mxu1  ;;  %2993 = vmatprep.mubr.bf16.mxu0 %v2733_v21  ;;  %v5759_v21 = vld [vmem:[%s9135_s3 + $0x130] sm:$0xff]   ;;  %v5762_v27 = vld [vmem:[#allocation2 + $0x100] ss:$8 sps:$4 sm:$0xff]  }
 0x60c   : > { %v2643_v16 = vadd.f32 %v2642_v59, %v8030_v63  ;;  %v2644_v49 = vpop.f32.mrb[107].mxu1  ;;  %2994 = vmatmul.mubr.bf16.gmra.mrb[100].mxu0 %v2732_v46  ;;  %v2681_v2 = vmax.f32 %v2639_v1, 0.0  ;;  %v5756_v46 = vld [vmem:[%s9135_s3 + $0x168] sm:$0xff]   ;;  %v5761_v1 = vld [vmem:[%s9135_s3 + $0x138] sm:$0xff]  }
 0x60d   : > { %v2645_v38 = vadd.f32 %v2644_v49, %v8033_v10  ;;  %v2682_v44 = vmax.f32 %v2641_v36, 0.0  ;;  %5410 = vmatprep.subr.bf16.mxu1 %v5756_v46  ;;  %v5764_v36 = vld [vmem:[#allocation2 + $0x104] ss:$8 sps:$4 sm:$0xff]   ;;  %v5767_v59 = vld [vmem:[#allocation2 + $0x114] ss:$8 sps:$4 sm:$0xff]  }
 0x60e   : > { %v2683_v28 = vmax.f32 %v2643_v16, 0.0  ;;  %3773 = vmatprep.subr.bf16.mxu0 %v5764_v36  ;;  %v5118_v16 = vld [vmem:[%s9140_s8 + $0x2] sm:$0x3]  ;;  %v5765_v49 = vld [vmem:[#allocation2 + $0x110] ss:$8 sps:$4 sm:$0xff]  }
 0x60f   : > { %v2684_v23 = vmax.f32 %v2645_v38, 0.0  ;;  %3774 = vmatpush1.bf16.msra.mxu0 %v5762_v27  ;;  %v5770_v38 = vld [vmem:[#allocation2 + $0x124] ss:$8 sps:$4 sm:$0xff]  }
 0x610   : > { %v2734_v22 = vpack.c.bf16 %v2683_v28, %v2681_v2  ;;  %3775 = vmatprep.subr.bf16.mxu0 %v5767_v59  ;;  %v8090_v2 = vrot.slane %v5118_v16, %v9263_v9  ;;  %v8093_v28 = vrot.slane %v5118_v16, %v9264_v29  ;;  %v5774_v59 = vld [vmem:[#allocation2 + $0x140] ss:$8 sps:$4 sm:$0xff]  }
 0x611   : > { %v2735_v54 = vpack.c.bf16 %v2684_v23, %v2682_v44  ;;  %v2648_v35 = vpop.f32.mrb[108].mxu1  ;;  %v5768_v44 = vld [vmem:[#allocation2 + $0x120] ss:$8 sps:$4 sm:$0xff]   ;;  %v5773_v23 = vld [vmem:[#allocation2 + $0x134] ss:$8 sps:$4 sm:$0xff]  }
 0x612   : > { %v2649_v25 = vadd.f32 %v2648_v35, %v8030_v63  ;;  %v2650_v20 = vpop.f32.mrb[109].mxu1  ;;  %v9266_v35 = vld [vmem:[#allocation21_spill] sm:$0xff] }
 0x613   : > { %v2651_v3 = vadd.f32 %v2650_v20, %v8033_v10  ;;  %v2652_v40 = vpop.f32.mrb[110].mxu1  ;;  %3003 = vmatprep.mubr.bf16.mxu0 %v2735_v54  ;;  %3776 = vmatpush1.bf16.msra.mxu0 %v5765_v49 }
 0x614   : > { %v2653_v60 = vadd.f32 %v2652_v40, %v8030_v63  ;;  %v2654_v13 = vpop.f32.mrb[111].mxu1  ;;  %3004 = vmatmul.mubr.bf16.gmra.mrb[104].mxu0 %v2734_v22  ;;  %v2685_v41 = vmax.f32 %v2649_v25, 0.0  ;;  %v5757_v63 = vld [vmem:[%s9135_s3 + $0x128] sm:$0xff]   ;;  %3777 = vmatprep.subr.bf16.mxu0 %v5770_v38  ;;  %v3037_v25 = vmul.f32 %v7929_v34, %v9266_v35  ;;  %v9267_v40 = vld [vmem:[#allocation15_spill] sm:$0xff] }
 0x615   : > { %v2655_v50 = vadd.f32 %v2654_v13, %v8033_v10  ;;  %v2686_v43 = vmax.f32 %v2651_v3, 0.0  ;;  %v5758_v10 = vld [vmem:[%s9135_s3 + $0x170] sm:$0xff]   ;;  %5411 = vmatpush3.bf16.msra.mxu1 %v5757_v63 }
 0x616   : > { %v2687_v24 = vmax.f32 %v2653_v60, 0.0  ;;  %5412 = vmatprep.subr.bf16.mxu1 %v5758_v10  ;;  %v3038_v60 = vmul.f32 %v7935_v14, %v9267_v40  ;;  %v9269_v10 = vld [vmem:[#allocation20_spill] sm:$0xff]  ;;  %v5779_v38 = vld [vmem:[#allocation2 + $0x154] ss:$8 sps:$4 sm:$0xff]   ;;  %v5777_v35 = vld [vmem:[#allocation2 + $0x150] ss:$8 sps:$4 sm:$0xff]  }
 0x617   : > { %v2688_v37 = vmax.f32 %v2655_v50, 0.0  ;;  %3778 = vmatpush1.bf16.msra.mxu0 %v5768_v44  ;;  %v5771_v50 = vld [vmem:[#allocation2 + $0x130] ss:$8 sps:$4 sm:$0xff]  }
 0x618   : > { %v2736_v51 = vpack.c.bf16 %v2687_v24, %v2685_v41  ;;  %3779 = vmatprep.subr.bf16.mxu0 %v5773_v23 }
 0x619   : > { %v2737_v62 = vpack.c.bf16 %v2688_v37, %v2686_v43  ;;  %5413 = vmatpush3.bf16.msra.mxu1 %v5759_v21  ;;  %v9268_v43 = vld [vmem:[#allocation17_spill] sm:$0xff]  ;;  %v3040_v21 = vmul.f32 %v7935_v14, %v9269_v10 }
 0x61a   : > { %5414 = vmatprep.subr.bf16.mxu1 %v5760_v48  ;;  %v3039_v37 = vmul.f32 %v7929_v34, %v9268_v43  ;;  %v3042_v43 = vmul.f32 %v7935_v14, %v7646_v42 }
 0x61b   : > { %3013 = vmatprep.mubr.bf16.mxu0 %v2737_v62  ;;  %v5776_v62 = vld [vmem:[#allocation2 + $0x144] ss:$8 sps:$4 sm:$0xff]   ;;  %3780 = vmatpush1.bf16.msra.mxu0 %v5771_v50 }
 0x61c   : > { %3014 = vmatmul.mubr.bf16.gmra.mrb[108].mxu0 %v2736_v51  ;;  %3781 = vmatprep.subr.bf16.mxu0 %v5776_v62  ;;  %v5780_v62 = vld [vmem:[#allocation2 + $0x160] ss:$8 sps:$4 sm:$0xff]  }
 0x61d   : > { %3805 = vmatprep.mubr.bf16.mxu0 %v9265_v47  ;;  %5415 = vmatpush3.bf16.msra.mxu1 %v5761_v1 }
 0x61f   : > { %3782 = vmatpush1.bf16.msra.mxu0 %v5774_v59 }
 0x620   : > { %3783 = vmatprep.subr.bf16.mxu0 %v5779_v38 }
 0x623   : > { %3784 = vmatpush1.bf16.msra.mxu0 %v5777_v35 }
 0x6a7   : > { %v2945_v22 = vpop.f32.mrb[80].mxu0 }
 0x6a8   : > { %v2946_v54 = vadd.f32 %v2945_v22, %v8090_v2  ;;  %v2947_v20 = vpop.f32.mrb[81].mxu0 }
 0x6a9   : > { %v2948_v3 = vadd.f32 %v2947_v20, %v8093_v28  ;;  %v2949_v13 = vpop.f32.mrb[82].mxu0  ;;  %v5782_v20 = vld [vmem:[#allocation2 + $0x164] ss:$8 sps:$4 sm:$0xff]  }
 0x6aa   : > { %v8101_v41 = vadd.f32 %v3037_v25, %v2946_v54  ;;  %v2950_v24 = vadd.f32 %v2949_v13, %v8090_v2  ;;  %v2951_v51 = vpop.f32.mrb[83].mxu0  ;;  %v3041_v13 = vmul.f32 %v7929_v34, %v7663_v26  ;;  %v3044_v26 = vmul.f32 %v7935_v14, %v7651_v7  ;;  %3785 = vmatprep.subr.bf16.mxu0 %v5782_v20  ;;  %v9270_v20 = vld [vmem:[#allocation16_spill] sm:$0xff] }
 0x6ab   : > { %v8106_v46 = vadd.f32 %v3038_v60, %v2948_v3  ;;  %v2952_v63 = vadd.f32 %v2951_v51, %v8093_v28  ;;  %v3043_v51 = vmul.f32 %v7929_v34, %v7668_v45  ;;  %3786 = vmatpush1.bf16.msra.mxu0 %v5780_v62  ;;  %v3045_v7 = vmul.f32 %v7929_v34, %v7743_v11 }
 0x6ac   : > { %v3101_v48 = vmin.f32 %v8101_v41, 0.0  ;;  %v8112_v1 = vadd.f32 %v3039_v37, %v2950_v24  ;;  %vm3133_vm3 = vcmp.gt.f32.partialorder %v8101_v41, 0.0 }
 0x6ad   : > { %v3102_v27 = vmin.f32 %v8106_v46, 0.0  ;;  %v8115_v36 = vadd.f32 %v3040_v21, %v2952_v63  ;;  %vm3134_vm5 = vcmp.gt.f32.partialorder %v8106_v46, 0.0 }
 0x6ae   : > { %v3229_v16 = vmul.f32 1.442695, %v3101_v48  ;;  %v3103_v49 = vmin.f32 %v8112_v1, 0.0  ;;  %v3165_v44 = vmul.f32 0.5, %v3101_v48  ;;  %vm3135_vm4 = vcmp.gt.f32.partialorder %v8112_v1, 0.0 }
 0x6af   : > { %v3104_v23 = vmin.f32 %v8115_v36, 0.0  ;;  %v3231_v22 = vmul.f32 1.442695, %v3102_v27  ;;  %v3166_v48 = vmul.f32 0.5, %v3102_v27  ;;  %v3046_v27 = vmul.f32 %v7935_v14, %v7713_v6 }
 0x6b0   : > { %6106 = vpow2.f32 %v3229_v16  ;;  %v3233_v54 = vmul.f32 1.442695, %v3103_v49  ;;  %v3167_v25 = vmul.f32 0.5, %v3103_v49  ;;  %v8157_v6 = vmul.f32 %v7935_v14, %v7797_v31 }
 0x6b1   : > { %6108 = vtanh.f32 %v3165_v44  ;;  %v3235_v3 = vmul.f32 1.442695, %v3104_v23  ;;  %v3168_v49 = vmul.f32 0.5, %v3104_v23  ;;  %v8171_v31 = vmul.f32 %v7929_v34, %v7877_v8 }
 0x6b2   : > { %v2955_v40 = vpop.f32.mrb[84].mxu0  ;;  %6110 = vpow2.f32 %v3231_v22  ;;  %vm3136_vm6 = vcmp.gt.f32.partialorder %v8115_v36, 0.0 }
 0x6b3   : > { %v2956_v60 = vadd.f32 %v2955_v40, %v8090_v2  ;;  %v2957_v50 = vpop.f32.mrb[85].mxu0  ;;  %6112 = vpow2.f32 %v3233_v54  ;;  %v3047_v54 = vmul.f32 %v7929_v34, %v7748_v18 }
 0x6b4   : > { %v2958_v24 = vadd.f32 %v2957_v50, %v8093_v28  ;;  %v2959_v37 = vpop.f32.mrb[86].mxu0  ;;  %6114 = vtanh.f32 %v3167_v25  ;;  %v8161_v50 = vmul.f32 %v7929_v34, %v7827_v15 }
 0x6b5   : > { %v8127_v63 = vadd.f32 %v3041_v13, %v2956_v60  ;;  %v2960_v10 = vadd.f32 %v2959_v37, %v8090_v2  ;;  %v2961_v21 = vpop.f32.mrb[87].mxu0  ;;  %6116 = vpow2.f32 %v3235_v3  ;;  %v3048_v3 = vmul.f32 %v7935_v14, %v9270_v20 }
 0x6b6   : > { %v8132_v59 = vadd.f32 %v3042_v43, %v2958_v24  ;;  %v2962_v42 = vadd.f32 %v2961_v21, %v8093_v28  ;;  %6118 = vtanh.f32 %v3166_v48  ;;  %v8153_v13 = vmul.f32 %v7929_v34, %v7824_v32 }
 0x6b7   : > { %v3105_v45 = vmin.f32 %v8127_v63, 0.0  ;;  %v8136_v16 = vadd.f32 %v3043_v51, %v2960_v10  ;;  %6120 = vtanh.f32 %v3168_v49  ;;  %v8165_v24 = vmul.f32 %v7935_v14, %v7802_v56 }
 0x6b8   : > { %v3106_v38 = vmin.f32 %v8132_v59, 0.0  ;;  %v8139_v44 = vadd.f32 %v3044_v26, %v2962_v42  ;;  %vm3137_vm7 = vcmp.gt.f32.partialorder %v8127_v63, 0.0  ;;  %vm3138_vm8 = vcmp.gt.f32.partialorder %v8132_v59, 0.0 }
 0x6b9   : > { %v3107_v22 = vmin.f32 %v8136_v16, 0.0  ;;  %v3237_v60 = vmul.f32 1.442695, %v3105_v45  ;;  %v3169_v62 = vmul.f32 0.5, %v3105_v45  ;;  %vm3139_vm9 = vcmp.gt.f32.partialorder %v8136_v16, 0.0 }
 0x6ba   : > { %v6107_v35 = vpop.eup %6106  ;;  %v3239_v25 = vmul.f32 1.442695, %v3106_v38  ;;  %v3108_v23 = vmin.f32 %v8139_v44, 0.0  ;;  %v3170_v18 = vmul.f32 0.5, %v3106_v38  ;;  %vm3140_vm10 = vcmp.gt.f32.partialorder %v8139_v44, 0.0 }
 0x6bb   : > { %v3293_v40 = vadd.f32 1.0, %v6107_v35  ;;  %v6109_v11 = vpop.eup %6108  ;;  %v3241_v32 = vmul.f32 1.442695, %v3107_v22  ;;  %v3171_v56 = vmul.f32 0.5, %v3107_v22 }
 0x6bc   : > { %v6111_v43 = vpop.eup %6110  ;;  %6122 = vpow2.f32 %v3239_v25  ;;  %v3243_v15 = vmul.f32 1.442695, %v3108_v23  ;;  %v3172_v38 = vmul.f32 0.5, %v3108_v23 }
 0x6bd   : > { %v6113_v37 = vpop.eup %6112  ;;  %v3325_v51 = vmul.f32 %v6109_v11, %v3293_v40  ;;  %6124 = vpow2.f32 %v3237_v60  ;;  %v3294_v20 = vadd.f32 1.0, %v6111_v43 }
 0x6be   : > { %v6115_v21 = vpop.eup %6114  ;;  %v3295_v26 = vadd.f32 1.0, %v6113_v37  ;;  %6126 = vtanh.f32 %v3170_v18 }
 0x6bf   : > { %v2965_v10 = vpop.f32.mrb[88].mxu0  ;;  %v6117_v49 = vpop.eup %6116  ;;  %6128 = vpow2.f32 %v3241_v32  ;;  %v8181_v22 = vsel %vm3133_vm3, %v8101_v41, %v3325_v51 }
 0x6c0   : > { %v2966_v48 = vadd.f32 %v2965_v10, %v8090_v2  ;;  %v2967_v42 = vpop.f32.mrb[89].mxu0  ;;  %v3327_v29 = vmul.f32 %v6115_v21, %v3295_v26  ;;  %6130 = vpow2.f32 %v3243_v15  ;;  %v3296_v43 = vadd.f32 1.0, %v6117_v49  ;;  %v6119_v32 = vpop.eup %6118 }
 0x6c1   : > { %v2968_v35 = vadd.f32 %v2967_v42, %v8093_v28  ;;  %v2969_v8 = vpop.f32.mrb[90].mxu0  ;;  %6132 = vtanh.f32 %v3172_v38  ;;  %v3326_v15 = vmul.f32 %v6119_v32, %v3294_v20  ;;  %v8210_v26 = vmul.f32 %v7935_v14, %v7867_v4 }
 0x6c2   : > { %v8175_v45 = vadd.f32 %v3045_v7, %v2966_v48  ;;  %v2970_v25 = vadd.f32 %v2969_v8, %v8090_v2  ;;  %v2971_v40 = vpop.f32.mrb[91].mxu0  ;;  %v8189_v11 = vsel %vm3135_vm4, %v8112_v1, %v3327_v29  ;;  %v8201_v29 = vmul.f32 %v7935_v14, %v7861_v53 }
 0x6c3   : > { %v8183_v60 = vadd.f32 %v3046_v27, %v2968_v35  ;;  %v2972_v23 = vadd.f32 %v2971_v40, %v8093_v28  ;;  %v3422_v41 = vpack.c.bf16 %v8189_v11, %v8181_v22  ;;  %v8205_v1 = vmul.f32 %v7929_v34, %v7885_v19 }
 0x6c4   : > { %v3109_v7 = vmin.f32 %v8175_v45, 0.0  ;;  %v8192_v18 = vadd.f32 %v3047_v54, %v2970_v25  ;;  %v6121_v54 = vpop.eup %6120  ;;  %6134 = vtanh.f32 %v3169_v62  ;;  %v8219_v19 = vmul.f32 %v7935_v14, %v7901_v52 }
 0x6c5   : > { %v3110_v27 = vmin.f32 %v8183_v60, 0.0  ;;  %v8197_v37 = vadd.f32 %v3048_v3, %v2972_v23  ;;  %v8214_v3 = vmul.f32 %v7935_v14, %v7896_v55  ;;  %v3328_v48 = vmul.f32 %v6121_v54, %v3296_v43 }
 0x6c6   : > { %v3173_v51 = vmul.f32 0.5, %v3109_v7  ;;  %v3111_v53 = vmin.f32 %v8192_v18, 0.0  ;;  %v6123_v34 = vpop.eup %6122  ;;  %6136 = vtanh.f32 %v3171_v56  ;;  %v3245_v4 = vmul.f32 1.442695, %v3109_v7 }
 0x6c7   : > { %v3247_v10 = vmul.f32 1.442695, %v3110_v27  ;;  %v3112_v21 = vmin.f32 %v8197_v37, 0.0  ;;  %v6125_v42 = vpop.eup %6124  ;;  %v3174_v49 = vmul.f32 0.5, %v3110_v27  ;;  %v8224_v62 = vsel %vm3134_vm5, %v8106_v46, %v3326_v15 }
 0x6c8   : > { %6138 = vtanh.f32 %v3173_v51  ;;  %v8227_v38 = vsel %vm3136_vm6, %v8115_v36, %v3328_v48  ;;  %v6127_v35 = vpop.eup %6126  ;;  %v3175_v25 = vmul.f32 0.5, %v3111_v53  ;;  %v3249_v40 = vmul.f32 1.442695, %v3111_v53 }
 0x6c9   : > { %9271 = vst [vmem:[#allocation19_spill] sm:$0xff] %v8227_v38  ;;  %6140 = vpow2.f32 %v3247_v10  ;;  %v3251_v52 = vmul.f32 1.442695, %v3112_v21  ;;  %v3423_v56 = vpack.c.bf16 %v8227_v38, %v8224_v62  ;;  %v6129_v20 = vpop.eup %6128  ;;  %v3298_v46 = vadd.f32 1.0, %v6123_v34 }
 0x6ca   : > { %v2975_v55 = vpop.f32.mrb[92].mxu0  ;;  %v6131_v43 = vpop.eup %6130  ;;  %6142 = vpow2.f32 %v3245_v4  ;;  %v3176_v36 = vmul.f32 0.5, %v3112_v21  ;;  %vm3142_vm11 = vcmp.gt.f32.partialorder %v8183_v60, 0.0  ;;  %vm3144_vm12 = vcmp.gt.f32.partialorder %v8197_v37, 0.0 }
 0x6cb   : > { %v2976_v14 = vadd.f32 %v2975_v55, %v8090_v2  ;;  %v2977_v8 = vpop.f32.mrb[93].mxu0  ;;  %3574 = vmatprep.mubr.bf16.mxu1 %v3423_v56  ;;  %6144 = vtanh.f32 %v3174_v49  ;;  %v3300_v10 = vadd.f32 1.0, %v6131_v43  ;;  %v6133_v53 = vpop.eup %6132  ;;  %v3330_v49 = vmul.f32 %v6127_v35, %v3298_v46 }
 0x6cc   : > { %v2978_v23 = vadd.f32 %v2977_v8, %v8093_v28  ;;  %v2979_v7 = vpop.f32.mrb[94].mxu0  ;;  %3575 = vmatmul.mubr.bf16.vlgmr.msra.gmra.mrb[112].mxu1 %v3422_v41  ;;  %6146 = vpow2.f32 %v3251_v52  ;;  %v3299_v55 = vadd.f32 1.0, %v6129_v20  ;;  %vm3141_vm13 = vcmp.gt.f32.partialorder %v8175_v45, 0.0 }
 0x6cd   : > { %v8234_v32 = vadd.f32 %v8153_v13, %v2976_v14  ;;  %v2980_v27 = vadd.f32 %v2979_v7, %v8090_v2  ;;  %v2981_v51 = vpop.f32.mrb[95].mxu0  ;;  %v3297_v13 = vadd.f32 1.0, %v6125_v42  ;;  %6148 = vtanh.f32 %v3175_v25 }
 0x6ce   : > { %v8238_v15 = vadd.f32 %v8157_v6, %v2978_v23  ;;  %v2982_v54 = vadd.f32 %v2981_v51, %v8093_v28  ;;  %v3332_v6 = vmul.f32 %v6133_v53, %v3300_v10  ;;  %v6135_v14 = vpop.eup %6134  ;;  %6150 = vtanh.f32 %v3176_v36 }
 0x6cf   : > { %v3113_v48 = vmin.f32 %v8234_v32, 0.0  ;;  %v8243_v21 = vadd.f32 %v8161_v50, %v2980_v27  ;;  %6152 = vpow2.f32 %v3249_v40  ;;  %v8258_v20 = vsel %vm3138_vm8, %v8132_v59, %v3330_v49 }
 0x6d0   : > { %v3114_v34 = vmin.f32 %v8238_v15, 0.0  ;;  %v8247_v4 = vadd.f32 %v8165_v24, %v2982_v54  ;;  %v6137_v42 = vpop.eup %6136  ;;  %v3329_v24 = vmul.f32 %v6135_v14, %v3297_v13  ;;  %9272 = vst [vmem:[#allocation24_spill] sm:$0xff] %v8258_v20  ;;  %v8261_v25 = vsel %vm3140_vm10, %v8139_v44, %v3332_v6 }
 0x6d1   : > { %v3177_v41 = vmul.f32 0.5, %v3113_v48  ;;  %v3253_v52 = vmul.f32 1.442695, %v3113_v48  ;;  %v3115_v50 = vmin.f32 %v8243_v21, 0.0  ;;  %9273 = vst [vmem:[#allocation14_spill] sm:$0xff] %v8261_v25  ;;  %v3425_v46 = vpack.c.bf16 %v8261_v25, %v8258_v20 }
 0x6d2   : > { %v8254_v35 = vpop.eup %6138  ;;  %v3178_v8 = vmul.f32 0.5, %v3114_v34  ;;  %v3116_v56 = vmin.f32 %v8247_v4, 0.0  ;;  %v3255_v7 = vmul.f32 1.442695, %v3114_v34  ;;  %v3331_v43 = vmul.f32 %v6137_v42, %v3299_v55 }
 0x6d3   : > { %v6141_v23 = vpop.eup %6140  ;;  %6154 = vtanh.f32 %v3177_v41  ;;  %v3179_v40 = vmul.f32 0.5, %v3115_v50  ;;  %v3257_v36 = vmul.f32 1.442695, %v3115_v50  ;;  %3582 = vmatprep.mubr.bf16.mxu1 %v3425_v46  ;;  %v8270_v44 = vsel %vm3137_vm7, %v8127_v63, %v3329_v24 }
 0x6d4   : > { %6156 = vpow2.f32 %v3253_v52  ;;  %v6143_v51 = vpop.eup %6142  ;;  %9274 = vst [vmem:[#allocation27_spill] sm:$0xff] %v8270_v44  ;;  %v8275_v10 = vsel %vm3139_vm9, %v8136_v16, %v3331_v43  ;;  %v3302_v53 = vadd.f32 1.0, %v6141_v23  ;;  %v3180_v13 = vmul.f32 0.5, %v3116_v56 }
 0x6d5   : > { %9275 = vst [vmem:[#allocation18_spill] sm:$0xff] %v8275_v10  ;;  %v6145_v48 = vpop.eup %6144  ;;  %6158 = vtanh.f32 %v3178_v8  ;;  %v3424_v6 = vpack.c.bf16 %v8275_v10, %v8270_v44  ;;  %v3259_v55 = vmul.f32 1.442695, %v3116_v56  ;;  %vm3143_vm14 = vcmp.gt.f32.partialorder %v8192_v18, 0.0 }
 0x6d6   : > { %v6147_v41 = vpop.eup %6146  ;;  %6160 = vpow2.f32 %v3255_v7  ;;  %vm3146_vm0 = vcmp.gt.f32.partialorder %v8238_v15, 0.0  ;;  %vm3145_vm2 = vcmp.gt.f32.partialorder %v8234_v32, 0.0  ;;  %vm3147_vm15 = vcmp.gt.f32.partialorder %v8243_v21, 0.0 }
 0x6d7   : > { %v2985_v27 = vpop.f32.mrb[96].mxu0  ;;  %6162 = vtanh.f32 %v3179_v40  ;;  %3583 = vmatmul.mubr.bf16.gmra.mrb[116].mxu1 %v3424_v6  ;;  %v3304_v42 = vadd.f32 1.0, %v6147_v41  ;;  %v8288_v24 = vpop.eup %6148  ;;  %vm3148_vm1 = vcmp.gt.f32.partialorder %v8247_v4, 0.0 }
 0x6d8   : > { %v2986_v59 = vadd.f32 %v2985_v27, %v8090_v2  ;;  %v2987_v54 = vpop.f32.mrb[97].mxu0  ;;  %6164 = vpow2.f32 %v3257_v36  ;;  %v6151_v23 = vpop.eup %6150 }
 0x6d9   : > { %v2988_v34 = vadd.f32 %v2987_v54, %v8093_v28  ;;  %v2989_v49 = vpop.f32.mrb[98].mxu0  ;;  %6166 = vtanh.f32 %v3180_v13  ;;  %v6153_v46 = vpop.eup %6152  ;;  %v3336_v27 = vmul.f32 %v6151_v23, %v3304_v42 }
 0x6da   : > { %v8281_v63 = vadd.f32 %v8171_v31, %v2986_v59  ;;  %v2990_v14 = vadd.f32 %v2989_v49, %v8090_v2  ;;  %v2991_v16 = vpop.f32.mrb[99].mxu0  ;;  %v3334_v31 = vmul.f32 %v6145_v48, %v3302_v53  ;;  %6168 = vpow2.f32 %v3259_v55 }
 0x6db   : > { %v8285_v52 = vadd.f32 %v8201_v29, %v2988_v34  ;;  %v2992_v50 = vadd.f32 %v2991_v16, %v8093_v28  ;;  %v3301_v53 = vadd.f32 1.0, %v6143_v51 }
 0x6dc   : > { %v3117_v8 = vmin.f32 %v8281_v63, 0.0  ;;  %v8292_v56 = vadd.f32 %v8205_v1, %v2990_v14  ;;  %v8307_v49 = vsel %vm3142_vm11, %v8183_v60, %v3334_v31  ;;  %v8319_v60 = vsel %vm3144_vm12, %v8197_v37, %v3336_v27 }
 0x6dd   : > { %v3118_v29 = vmin.f32 %v8285_v52, 0.0  ;;  %v8297_v7 = vadd.f32 %v8210_v26, %v2992_v50  ;;  %v8301_v48 = vpop.eup %6154  ;;  %9276 = vst [vmem:[#allocation25_spill] sm:$0xff] %v8307_v49  ;;  %9277 = vst [vmem:[#allocation28_spill] sm:$0xff] %v8319_v60  ;;  %vm3150_vm3 = vcmp.gt.f32.partialorder %v8285_v52, 0.0  ;;  %vm3149_vm4 = vcmp.gt.f32.partialorder %v8281_v63, 0.0 }
 0x6de   : > { %v3181_v43 = vmul.f32 0.5, %v3117_v8  ;;  %v3261_v40 = vmul.f32 1.442695, %v3117_v8  ;;  %v3119_v36 = vmin.f32 %v8292_v56, 0.0  ;;  %v8309_v6 = vpop.eup %6156  ;;  %vm3151_vm6 = vcmp.gt.f32.partialorder %v8292_v56, 0.0 }
 0x6df   : > { %v3182_v59 = vmul.f32 0.5, %v3118_v29  ;;  %v3120_v1 = vmin.f32 %v8297_v7, 0.0  ;;  %v2995_v54 = vpop.f32.mrb[100].mxu0  ;;  %v3263_v13 = vmul.f32 1.442695, %v3118_v29  ;;  %v8321_v31 = vpop.eup %6158  ;;  %v3305_v44 = vadd.f32 1.0, %v8309_v6 }
 0x6e0   : > { %6170 = vtanh.f32 %v3181_v43  ;;  %v2996_v34 = vadd.f32 %v2995_v54, %v8090_v2  ;;  %v2997_v26 = vpop.f32.mrb[101].mxu0  ;;  %v3183_v41 = vmul.f32 0.5, %v3119_v36  ;;  %v3265_v55 = vmul.f32 1.442695, %v3119_v36  ;;  %v6161_v43 = vpop.eup %6160 }
 0x6e1   : > { %6172 = vpow2.f32 %v3261_v40  ;;  %v2998_v14 = vadd.f32 %v2997_v26, %v8093_v28  ;;  %v2999_v51 = vpop.f32.mrb[102].mxu0  ;;  %v3184_v16 = vmul.f32 0.5, %v3120_v1  ;;  %v3267_v40 = vmul.f32 1.442695, %v3120_v1  ;;  %v8333_v37 = vpop.eup %6162 }
 0x6e2   : > { %v8313_v50 = vadd.f32 %v7938_v0, %v2996_v34  ;;  %v3000_v42 = vadd.f32 %v2999_v51, %v8090_v2  ;;  %v3001_v8 = vpop.f32.mrb[103].mxu0  ;;  %6174 = vtanh.f32 %v3182_v59  ;;  %v3427_v0 = vpack.c.bf16 %v8319_v60, %v8307_v49  ;;  %v8339_v34 = vpop.eup %6164 }
 0x6e3   : > { %v8324_v23 = vadd.f32 %v8214_v3, %v2998_v14  ;;  %v3002_v29 = vadd.f32 %v3001_v8, %v8093_v28  ;;  %6176 = vpow2.f32 %v3263_v13  ;;  %v3303_v59 = vadd.f32 1.0, %v6153_v46  ;;  %v8342_v14 = vpop.eup %6166 }
 0x6e4   : > { %v3121_v36 = vmin.f32 %v8313_v50, 0.0  ;;  %v8331_v54 = vadd.f32 %v7942_v17, %v3000_v42  ;;  %6178 = vtanh.f32 %v3183_v41  ;;  %3590 = vmatprep.mubr.bf16.mxu1 %v3427_v0  ;;  %v6169_v41 = vpop.eup %6168  ;;  %v3333_v42 = vmul.f32 %v8254_v35, %v3301_v53 }
 0x6e5   : > { %v3122_v27 = vmin.f32 %v8324_v23, 0.0  ;;  %v8337_v3 = vadd.f32 %v8219_v19, %v3002_v29  ;;  %6180 = vpow2.f32 %v3265_v55  ;;  %v3335_v8 = vmul.f32 %v8288_v24, %v3303_v59 }
 0x6e6   : > { %v3185_v13 = vmul.f32 0.5, %v3121_v36  ;;  %v3269_v1 = vmul.f32 1.442695, %v3121_v36  ;;  %v3123_v26 = vmin.f32 %v8331_v54, 0.0  ;;  %6182 = vtanh.f32 %v3184_v16 }
 0x6e7   : > { %v3186_v17 = vmul.f32 0.5, %v3122_v27  ;;  %v3005_v51 = vpop.f32.mrb[104].mxu0  ;;  %6184 = vpow2.f32 %v3267_v40  ;;  %v3124_v19 = vmin.f32 %v8337_v3, 0.0  ;;  %v3271_v55 = vmul.f32 1.442695, %v3122_v27 }
 0x6e8   : > { %v3007_v46 = vpop.f32.mrb[105].mxu0  ;;  %6186 = vtanh.f32 %v3185_v13  ;;  %v3187_v16 = vmul.f32 0.5, %v3123_v26  ;;  %v3273_v36 = vmul.f32 1.442695, %v3123_v26  ;;  %v3006_v60 = vadd.f32 %v3005_v51, %v8090_v2 }
 0x6e9   : > { %v3009_v29 = vpop.f32.mrb[106].mxu0  ;;  %6188 = vpow2.f32 %v3269_v1  ;;  %v8357_v27 = vsel %vm3141_vm13, %v8175_v45, %v3333_v42  ;;  %v8362_v35 = vsel %vm3143_vm14, %v8192_v18, %v3335_v8  ;;  %v3008_v24 = vadd.f32 %v3007_v46, %v8093_v28 }
 0x6ea   : > { %v8349_v0 = vpop.eup %6170  ;;  %v3011_v49 = vpop.f32.mrb[107].mxu0  ;;  %6190 = vtanh.f32 %v3186_v17  ;;  %9278 = vst [vmem:[#allocation10_spill] sm:$0xff] %v8357_v27  ;;  %9279 = vst [vmem:[#allocation29_spill] sm:$0xff] %v8362_v35  ;;  %v3188_v53 = vmul.f32 0.5, %v3124_v19  ;;  %v3426_v59 = vpack.c.bf16 %v8362_v35, %v8357_v27  ;;  %v8368_v13 = vadd.f32 %v7945_v33, %v3006_v60 }
 0x6eb   : > { %v8352_v40 = vpop.eup %6172  ;;  %v3010_v1 = vadd.f32 %v3009_v29, %v8090_v2  ;;  %6192 = vpow2.f32 %v3271_v55  ;;  %v3275_v45 = vmul.f32 1.442695, %v3124_v19  ;;  %v8374_v17 = vadd.f32 %v7948_v12, %v3008_v24 }
 0x6ec   : > { %v8371_v26 = vpop.eup %6174  ;;  %v3012_v18 = vadd.f32 %v3011_v49, %v8093_v28  ;;  %6194 = vtanh.f32 %v3187_v16  ;;  %3591 = vmatmul.mubr.bf16.gmra.mrb[120].mxu1 %v3426_v59  ;;  %v3125_v33 = vmin.f32 %v8368_v13, 0.0  ;;  %v3306_v19 = vadd.f32 1.0, %v6161_v43 }
 0x6ed   : > { %v8377_v51 = vpop.eup %6176  ;;  %v8382_v60 = vadd.f32 %v7951_v58, %v3010_v1  ;;  %6196 = vpow2.f32 %v3273_v36  ;;  %v3126_v12 = vmin.f32 %v8374_v17, 0.0  ;;  %v3307_v38 = vadd.f32 1.0, %v8339_v34 }
 0x6ee   : > { %v8384_v46 = vpop.eup %6178  ;;  %v8389_v49 = vadd.f32 %v7954_v30, %v3012_v18  ;;  %6198 = vtanh.f32 %v3188_v53  ;;  %v3189_v8 = vmul.f32 0.5, %v3125_v33  ;;  %v3277_v29 = vmul.f32 1.442695, %v3125_v33 }
 0x6ef   : > { %v3015_v55 = vpop.f32.mrb[108].mxu0  ;;  %v8391_v42 = vpop.eup %6180  ;;  %v3127_v58 = vmin.f32 %v8382_v60, 0.0  ;;  %6200 = vpow2.f32 %v3275_v45  ;;  %v3190_v36 = vmul.f32 0.5, %v3126_v12  ;;  %v3279_v43 = vmul.f32 1.442695, %v3126_v12 }
 0x6f0   : > { %v3017_v16 = vpop.f32.mrb[109].mxu0  ;;  %v8394_v24 = vpop.eup %6182  ;;  %v3128_v59 = vmin.f32 %v8389_v49, 0.0  ;;  %6202 = vtanh.f32 %v3189_v8  ;;  %v3308_v53 = vadd.f32 1.0, %v6169_v41  ;;  %v3338_v25 = vmul.f32 %v8321_v31, %v3306_v19 }
 0x6f1   : > { %v3019_v30 = vpop.f32.mrb[110].mxu0  ;;  %v6185_v1 = vpop.eup %6184  ;;  %6204 = vpow2.f32 %v3277_v29  ;;  %v3191_v35 = vmul.f32 0.5, %v3127_v58  ;;  %v3281_v27 = vmul.f32 1.442695, %v3127_v58  ;;  %v3016_v12 = vadd.f32 %v3015_v55, %v8090_v2 }
 0x6f2   : > { %v3021_v18 = vpop.f32.mrb[111].mxu0  ;;  %v8399_v33 = vpop.eup %6186  ;;  %v3192_v45 = vmul.f32 0.5, %v3128_v59  ;;  %v3340_v20 = vmul.f32 %v8342_v14, %v3308_v53  ;;  %6206 = vtanh.f32 %v3190_v36  ;;  %v3283_v41 = vmul.f32 1.442695, %v3128_v59 }
 0x6f3   : > { %v8402_v10 = vpop.eup %6188  ;;  %v3018_v29 = vadd.f32 %v3017_v16, %v8093_v28  ;;  %v8415_v31 = vsel %vm3146_vm0, %v8238_v15, %v3338_v25  ;;  %v3337_v34 = vmul.f32 %v8301_v48, %v3305_v44  ;;  %v3339_v14 = vmul.f32 %v8333_v37, %v3307_v38 }
 0x6f4   : > { %v8407_v8 = vpop.eup %6190  ;;  %v8420_v6 = vsel %vm3148_vm1, %v8247_v4, %v3340_v20  ;;  %6208 = vpow2.f32 %v3279_v43  ;;  %v8429_v58 = vadd.f32 %v7957_v61, %v3016_v12  ;;  %v3020_v20 = vadd.f32 %v3019_v30, %v8090_v2 }
 0x6f5   : > { %v8424_v19 = vpop.eup %6192  ;;  %v3429_v55 = vpack.c.bf16 %v8420_v6, %v8415_v31  ;;  %v8432_v15 = vadd.f32 %v7960_v39, %v3018_v29  ;;  %6210 = vtanh.f32 %v3191_v35  ;;  %v8439_v4 = vsel %vm3145_vm2, %v8234_v32, %v3337_v34 }
 0x6f6   : > { %v8434_v25 = vpop.eup %6194  ;;  %v8444_v38 = vsel %vm3147_vm15, %v8243_v21, %v3339_v14  ;;  %vm3152_vm5 = vcmp.gt.f32.partialorder %v8297_v7, 0.0  ;;  %6212 = vpow2.f32 %v3283_v41  ;;  %v3129_v32 = vmin.f32 %v8429_v58, 0.0 }
 0x6f7   : > { %v6197_v61 = vpop.eup %6196  ;;  %3598 = vmatprep.mubr.bf16.mxu1 %v3429_v55  ;;  %v3428_v39 = vpack.c.bf16 %v8444_v38, %v8439_v4  ;;  %6214 = vpow2.f32 %v3281_v27  ;;  %v3130_v48 = vmin.f32 %v8432_v15, 0.0  ;;  %v8454_v21 = vadd.f32 %v7963_v57, %v3020_v20 }
 0x6f8   : > { %v6199_v44 = vpop.eup %6198  ;;  %v3022_v2 = vadd.f32 %v3021_v18, %v8093_v28  ;;  %v3193_v35 = vmul.f32 0.5, %v3129_v32  ;;  %v3285_v16 = vmul.f32 1.442695, %v3129_v32  ;;  %v3310_v36 = vadd.f32 1.0, %v8377_v51 }
 0x6f9   : > { %v6201_v37 = vpop.eup %6200  ;;  %3599 = vmatmul.mubr.bf16.gmra.mrb[124].mxu1 %v3428_v39  ;;  %v3312_v59 = vadd.f32 1.0, %v6185_v1  ;;  %6216 = vtanh.f32 %v3192_v45  ;;  %v3194_v27 = vmul.f32 0.5, %v3130_v48  ;;  %v3287_v43 = vmul.f32 1.442695, %v3130_v48 }
 0x6fa   : > { %v8459_v30 = vpop.eup %6202  ;;  %v3131_v53 = vmin.f32 %v8454_v21, 0.0  ;;  %vm3154_vm7 = vcmp.gt.f32.partialorder %v8324_v23, 0.0  ;;  %6218 = vtanh.f32 %v3193_v35  ;;  %v8464_v28 = vadd.f32 %v7966_v5, %v3022_v2 }
 0x6fb   : > { %v6205_v57 = vpop.eup %6204  ;;  %v3342_v18 = vmul.f32 %v8371_v26, %v3310_v36  ;;  %v3344_v41 = vmul.f32 %v8394_v24, %v3312_v59  ;;  %vm3153_vm8 = vcmp.gt.f32.partialorder %v8313_v50, 0.0  ;;  %vm3155_vm9 = vcmp.gt.f32.partialorder %v8331_v54, 0.0 }
 0x6fc   : > { %6220 = vpow2.f32 %v3285_v16  ;;  %v3195_v51 = vmul.f32 0.5, %v3131_v53  ;;  %v3289_v1 = vmul.f32 1.442695, %v3131_v53  ;;  %v3309_v45 = vadd.f32 1.0, %v8352_v40  ;;  %v6207_v12 = vpop.eup %6206 }
 0x6fd   : > { %vm3156_vm10 = vcmp.gt.f32.partialorder %v8337_v3, 0.0  ;;  %6222 = vtanh.f32 %v3194_v27  ;;  %v3132_v5 = vmin.f32 %v8464_v28, 0.0  ;;  %v8476_v26 = vsel %vm3150_vm3, %v8285_v52, %v3342_v18 }
 0x6fe   : > { %6224 = vpow2.f32 %v3287_v43  ;;  %v8481_v24 = vsel %vm3152_vm5, %v8297_v7, %v3344_v41  ;;  %v3311_v29 = vadd.f32 1.0, %v8391_v42  ;;  %v3341_v40 = vmul.f32 %v8349_v0, %v3309_v45  ;;  %v6209_v34 = vpop.eup %6208 }
 0x6ff   : > { %6226 = vtanh.f32 %v3195_v51  ;;  %v3196_v14 = vmul.f32 0.5, %v3132_v5  ;;  %v3291_v55 = vmul.f32 1.442695, %v3132_v5  ;;  %v3431_v20 = vpack.c.bf16 %v8481_v24, %v8476_v26  ;;  %v6211_v39 = vpop.eup %6210 }
 0x700   : > { %6228 = vpow2.f32 %v3289_v1  ;;  %v3343_v52 = vmul.f32 %v8384_v46, %v3311_v29  ;;  %v8491_v7 = vsel %vm3149_vm4, %v8281_v63, %v3341_v40  ;;  %v3314_v42 = vadd.f32 1.0, %v8424_v19  ;;  %v6213_v32 = vpop.eup %6212 }
 0x701   : > { %6230 = vtanh.f32 %v3196_v14  ;;  %3606 = vmatprep.mubr.bf16.mxu1 %v3431_v20  ;;  %v3316_v0 = vadd.f32 1.0, %v6201_v37  ;;  %v3313_v48 = vadd.f32 1.0, %v8402_v10  ;;  %v3315_v2 = vadd.f32 1.0, %v6197_v61  ;;  %v6215_v35 = vpop.eup %6214 }
 0x702   : > { %6232 = vpow2.f32 %v3291_v55  ;;  %v8498_v46 = vsel %vm3151_vm6, %v8292_v56, %v3343_v52  ;;  %v3346_v16 = vmul.f32 %v8407_v8, %v3314_v42  ;;  %v3318_v63 = vadd.f32 1.0, %v6209_v34 }
 0x703   : > { %v3430_v19 = vpack.c.bf16 %v8498_v46, %v8491_v7  ;;  %v3348_v36 = vmul.f32 %v6199_v44, %v3316_v0  ;;  %v3345_v59 = vmul.f32 %v8399_v33, %v3313_v48  ;;  %v3347_v37 = vmul.f32 %v8434_v25, %v3315_v2  ;;  %v6217_v10 = vpop.eup %6216 }
 0x704   : > { %v8508_v61 = vsel %vm3154_vm7, %v8324_v23, %v3346_v16  ;;  %v3320_v27 = vadd.f32 1.0, %v6213_v32  ;;  %v3350_v56 = vmul.f32 %v6207_v12, %v3318_v63  ;;  %v3317_v43 = vadd.f32 1.0, %v6205_v57  ;;  %v6219_v53 = vpop.eup %6218  ;;  %v5785_v16 = vld [vmem:[#allocation2 + $0x174] ss:$8 sps:$4 sm:$0xff]   ;;  %v5786_v63 = vld [vmem:[#allocation4 + $0x200] ss:$8 sps:$4 sm:$0xff]  }
 0x705   : > { %3607 = vmatmul.mubr.bf16.gmra.mrb[128].mxu1 %v3430_v19  ;;  %v8513_v8 = vsel %vm3156_vm10, %v8337_v3, %v3348_v36  ;;  %v8518_v33 = vsel %vm3153_vm8, %v8313_v50, %v3345_v59  ;;  %v8523_v23 = vsel %vm3155_vm9, %v8331_v54, %v3347_v37  ;;  %v3319_v25 = vadd.f32 1.0, %v6215_v35  ;;  %3787 = vmatprep.subr.bf16.mxu0 %v5785_v16  ;;  %v5788_v19 = vld [vmem:[#allocation4 + $0x204] ss:$8 sps:$4 sm:$0xff]   ;;  %v5791_v36 = vld [vmem:[#allocation4 + $0x214] ss:$8 sps:$4 sm:$0xff]  }
 0x706   : > { %v6221_v44 = vpop.eup %6220  ;;  %vm3158_vm11 = vcmp.gt.f32.partialorder %v8374_v17, 0.0  ;;  %v3433_v57 = vpack.c.bf16 %v8513_v8, %v8508_v61  ;;  %v3432_v3 = vpack.c.bf16 %v8523_v23, %v8518_v33  ;;  %v3352_v18 = vmul.f32 %v6217_v10, %v3320_v27  ;;  %4140 = vmatprep.subr.bf16.mxu1 %v5788_v19  ;;  %v5794_v59 = vld [vmem:[#allocation4 + $0x224] ss:$8 sps:$4 sm:$0xff]   ;;  %v5797_v37 = vld [vmem:[#allocation4 + $0x234] ss:$8 sps:$4 sm:$0xff]  }
 0x707   : > { %v6223_v41 = vpop.eup %6222  ;;  %vm3160_vm12 = vcmp.gt.f32.partialorder %v8389_v49, 0.0  ;;  %v3349_v50 = vmul.f32 %v8459_v30, %v3317_v43  ;;  %v3351_v51 = vmul.f32 %v6211_v39, %v3319_v25  ;;  %v3321_v1 = vadd.f32 1.0, %v6221_v44  ;;  %4141 = vmatpush1.bf16.msra.mxu1 %v5786_v63  ;;  %v5795_v10 = vld [vmem:[#allocation4 + $0x230] ss:$8 sps:$4 sm:$0xff]   ;;  %v5800_v27 = vld [vmem:[#allocation4 + $0x244] ss:$8 sps:$4 sm:$0xff]  }
 0x708   : > { %v6225_v54 = vpop.eup %6224  ;;  %vm3157_vm13 = vcmp.gt.f32.partialorder %v8368_v13, 0.0  ;;  %vm3159_vm14 = vcmp.gt.f32.partialorder %v8382_v60, 0.0  ;;  %3614 = vmatprep.mubr.bf16.mxu1 %v3433_v57  ;;  %v8535_v45 = vsel %vm3158_vm11, %v8374_v17, %v3350_v56  ;;  %v8538_v12 = vsel %vm3160_vm12, %v8389_v49, %v3352_v18  ;;  %4142 = vmatprep.subr.bf16.mxu1 %v5791_v36  ;;  %v5798_v56 = vld [vmem:[#allocation4 + $0x240] ss:$8 sps:$4 sm:$0xff]   ;;  %v5803_v43 = vld [vmem:[#allocation4 + $0x254] ss:$8 sps:$4 sm:$0xff]  }
 0x709   : > { %v6227_v5 = vpop.eup %6226  ;;  %v3435_v29 = vpack.c.bf16 %v8538_v12, %v8535_v45  ;;  %v8543_v30 = vsel %vm3157_vm13, %v8368_v13, %v3349_v50  ;;  %v8546_v40 = vsel %vm3159_vm14, %v8382_v60, %v3351_v51  ;;  %v3322_v34 = vadd.f32 1.0, %v6225_v54  ;;  %v5806_v25 = vld [vmem:[#allocation4 + $0x264] ss:$8 sps:$4 sm:$0xff]   ;;  %v5804_v44 = vld [vmem:[#allocation4 + $0x260] ss:$8 sps:$4 sm:$0xff]  }
 0x70a   : > { %v6229_v14 = vpop.eup %6228  ;;  %v3434_v55 = vpack.c.bf16 %v8546_v40, %v8543_v30  ;;  %v3353_v39 = vmul.f32 %v6219_v53, %v3321_v1  ;;  %vm3161_vm0 = vcmp.gt.f32.partialorder %v8429_v58, 0.0  ;;  %vm3163_vm2 = vcmp.gt.f32.partialorder %v8454_v21, 0.0  ;;  %v5801_v53 = vld [vmem:[#allocation4 + $0x250] ss:$8 sps:$4 sm:$0xff]   ;;  %v5809_v57 = vld [vmem:[#allocation4 + $0x274] ss:$8 sps:$4 sm:$0xff]  }
 0x70b   : > { %v6231_v17 = vpop.eup %6230  ;;  %v3323_v20 = vadd.f32 1.0, %v6229_v14  ;;  %v3354_v42 = vmul.f32 %v6223_v41, %v3322_v34  ;;  %vm3162_vm15 = vcmp.gt.f32.partialorder %v8432_v15, 0.0  ;;  %vm3164_vm1 = vcmp.gt.f32.partialorder %v8464_v28, 0.0  ;;  %v5812_v18 = vld [vmem:[#allocation4 + $0x284] ss:$8 sps:$4 sm:$0xff]  }
 0x70c   : > { %v6233_v49 = vpop.eup %6232  ;;  %v8553_v60 = vsel %vm3161_vm0, %v8429_v58, %v3353_v39  ;;  %v5810_v41 = vld [vmem:[#allocation4 + $0x280] ss:$8 sps:$4 sm:$0xff]   ;;  %v5815_v50 = vld [vmem:[#allocation4 + $0x294] ss:$8 sps:$4 sm:$0xff]   ;;  %v5813_v51 = vld [vmem:[#allocation4 + $0x290] ss:$8 sps:$4 sm:$0xff]  }
 0x70d   : > { %3615 = vmatmul.mubr.bf16.gmra.mrb[132].mxu1 %v3432_v3  ;;  %v3324_v52 = vadd.f32 1.0, %v6233_v49  ;;  %v3355_v32 = vmul.f32 %v6227_v5, %v3323_v20  ;;  %v8563_v2 = vsel %vm3162_vm15, %v8432_v15, %v3354_v42  ;;  %v5789_v15 = vld [vmem:[#allocation4 + $0x210] ss:$8 sps:$4 sm:$0xff]   ;;  %v5818_v54 = vld [vmem:[#allocation4 + $0x2a4] ss:$8 sps:$4 sm:$0xff]  }
 0x70e   : > { %3622 = vmatprep.mubr.bf16.mxu1 %v3435_v29  ;;  %4143 = vmatpush1.bf16.msra.mxu1 %v5789_v15  ;;  %v5807_v3 = vld [vmem:[#allocation4 + $0x270] ss:$8 sps:$4 sm:$0xff]   ;;  %v8573_v5 = vld [vmem:[%s9136_s4 + $0x2] ss:$0 sm:$0xff]  ;;  %v5821_v49 = vld [vmem:[#allocation4 + $0x2b4] ss:$8 sps:$4 sm:$0xff]  }
 0x70f   : > { %v3356_v13 = vmul.f32 %v6231_v17, %v3324_v52  ;;  %v8556_v0 = vsel %vm3163_vm2, %v8454_v21, %v3355_v32  ;;  %v5783_v21 = vld [vmem:[#allocation2 + $0x170] ss:$8 sps:$4 sm:$0xff]   ;;  %4144 = vmatprep.subr.bf16.mxu1 %v5794_v59  ;;  %v5816_v17 = vld [vmem:[#allocation4 + $0x2a0] ss:$8 sps:$4 sm:$0xff]   ;;  %v5827_v63 = vld [vmem:[#allocation4 + $0x2d4] ss:$8 sps:$4 sm:$0xff]  }
 0x710   : > { %v3436_v48 = vpack.c.bf16 %v8556_v0, %v8553_v60  ;;  %3788 = vmatpush1.bf16.msra.mxu0 %v5783_v21  ;;  %v5819_v42 = vld [vmem:[#allocation4 + $0x2b0] ss:$8 sps:$4 sm:$0xff]   ;;  %v5822_v21 = vld [vmem:[#allocation4 + $0x2c0] ss:$8 sps:$4 sm:$0xff]  }
 0x711   : > { %v8566_v35 = vsel %vm3164_vm1, %v8464_v28, %v3356_v13  ;;  %v5792_v28 = vld [vmem:[#allocation4 + $0x220] ss:$8 sps:$4 sm:$0xff]  }
 0x712   : > { %v3437_v58 = vpack.c.bf16 %v8566_v35, %v8563_v2  ;;  %4145 = vmatpush1.bf16.msra.mxu1 %v5792_v28  ;;  %v5825_v28 = vld [vmem:[#allocation4 + $0x2d0] ss:$8 sps:$4 sm:$0xff]  }
 0x713   : > { %4146 = vmatprep.subr.bf16.mxu1 %v5797_v37 }
 0x715   : > { %3623 = vmatmul.mubr.bf16.gmra.mrb[136].mxu1 %v3434_v55 }
 0x716   : > { %3630 = vmatprep.mubr.bf16.mxu1 %v3437_v58  ;;  %4147 = vmatpush1.bf16.msra.mxu1 %v5795_v10 }
 0x717   : > { %4148 = vmatprep.subr.bf16.mxu1 %v5800_v27 }
 0x71a   : > { %4149 = vmatpush1.bf16.msra.mxu1 %v5798_v56 }
 0x71b   : > { %4150 = vmatprep.subr.bf16.mxu1 %v5803_v43 }
 0x71d   : > { %3631 = vmatmul.mubr.bf16.gmra.mrb[140].mxu1 %v3436_v48  ;;  %v5824_v48 = vld [vmem:[#allocation4 + $0x2c4] ss:$8 sps:$4 sm:$0xff]  }
 0x71e   : > { %4151 = vmatpush1.bf16.msra.mxu1 %v5801_v53 }
 0x71f   : > { %4152 = vmatprep.subr.bf16.mxu1 %v5806_v25 }
 0x722   : > { %4153 = vmatpush1.bf16.msra.mxu1 %v5804_v44 }
 0x723   : > { %4154 = vmatprep.subr.bf16.mxu1 %v5809_v57 }
 0x726   : > { %4155 = vmatpush1.bf16.msra.mxu1 %v5807_v3 }
 0x727   : > { %4156 = vmatprep.subr.bf16.mxu1 %v5812_v18 }
 0x72a   : > { %4157 = vmatpush1.bf16.msra.mxu1 %v5810_v41 }
 0x72b   : > { %4158 = vmatprep.subr.bf16.mxu1 %v5815_v50 }
 0x72e   : > { %4159 = vmatpush1.bf16.msra.mxu1 %v5813_v51 }
 0x72f   : > { %4160 = vmatprep.subr.bf16.mxu1 %v5818_v54 }
 0x732   : > { %4161 = vmatpush1.bf16.msra.mxu1 %v5816_v17 }
 0x733   : > { %4162 = vmatprep.subr.bf16.mxu1 %v5821_v49 }
 0x736   : > { %4163 = vmatpush1.bf16.msra.mxu1 %v5819_v42 }
 0x737   : > { %4164 = vmatprep.subr.bf16.mxu1 %v5824_v48 }
 0x73a   : > { %4165 = vmatpush1.bf16.msra.mxu1 %v5822_v21 }
 0x73b   : > { %4166 = vmatprep.subr.bf16.mxu1 %v5827_v63 }
 0x73e   : > { %4167 = vmatpush1.bf16.msra.mxu1 %v5825_v28 }
 0x79f   : > { %v5416_v1 = vpop.f32.mrb[112].mxu1 }
 0x7a0   : > { %v5417_v29 = vpop.f32.mrb[113].mxu1 }
 0x7a1   : > { %v5418_v34 = vadd.f32 %v5417_v29, %v5416_v1  ;;  %v5419_v14 = vpop.f32.mrb[114].mxu1 }
 0x7a2   : > { %v5420_v55 = vpop.f32.mrb[115].mxu1 }
 0x7a3   : > { %v3577_v20 = vadd.f32 %v5418_v34, %v8573_v5  ;;  %v5421_v39 = vadd.f32 %v5420_v55, %v5419_v14 }
 0x7a5   : > { %v3580_v52 = vadd.f32 %v5421_v39, %v8573_v5  ;;  %v3639_v32 = vmax.f32 %v3577_v20, 0.0 }
 0x7a7   : > { %v3640_v13 = vmax.f32 %v3580_v52, 0.0 }
 0x7a9   : > { %v3672_v58 = vpack.c.bf16 %v3640_v13, %v3639_v32 }
 0x7aa   : > { %v5422_v16 = vpop.f32.mrb[116].mxu1 }
 0x7ab   : > { %3806 = vmatmul.mubr.bf16.vlgmr.msra.gmra.mrb[112].mxu0 %v3672_v58  ;;  %v5423_v19 = vpop.f32.mrb[117].mxu1 }
 0x7ac   : > { %3815 = vmatprep.mubr.bf16.mxu0 %v9265_v47  ;;  %v5424_v36 = vadd.f32 %v5423_v19, %v5422_v16  ;;  %v5425_v15 = vpop.f32.mrb[118].mxu1 }
 0x7ad   : > { %v5426_v59 = vpop.f32.mrb[119].mxu1 }
 0x7ae   : > { %v3585_v37 = vadd.f32 %v5424_v36, %v8573_v5  ;;  %v5427_v10 = vadd.f32 %v5426_v59, %v5425_v15 }
 0x7b0   : > { %v3588_v27 = vadd.f32 %v5427_v10, %v8573_v5  ;;  %v3641_v56 = vmax.f32 %v3585_v37, 0.0 }
 0x7b2   : > { %v3642_v43 = vmax.f32 %v3588_v27, 0.0 }
 0x7b4   : > { %v3673_v53 = vpack.c.bf16 %v3642_v43, %v3641_v56 }
 0x7b6   : > { %3816 = vmatmul.mubr.bf16.gmra.mrb[116].mxu0 %v3673_v53 }
 0x7b7   : > { %3825 = vmatprep.mubr.bf16.mxu0 %v9265_v47 }
 0x7bf   : > { %v5428_v25 = vpop.f32.mrb[120].mxu1 }
 0x7c0   : > { %v5429_v44 = vpop.f32.mrb[121].mxu1 }
 0x7c1   : > { %v5430_v57 = vadd.f32 %v5429_v44, %v5428_v25  ;;  %v5431_v3 = vpop.f32.mrb[122].mxu1 }
 0x7c2   : > { %v5432_v18 = vpop.f32.mrb[123].mxu1 }
 0x7c3   : > { %v3593_v41 = vadd.f32 %v5430_v57, %v8573_v5  ;;  %v5433_v50 = vadd.f32 %v5432_v18, %v5431_v3 }
 0x7c5   : > { %v3596_v51 = vadd.f32 %v5433_v50, %v8573_v5  ;;  %v3643_v1 = vmax.f32 %v3593_v41, 0.0 }
 0x7c7   : > { %v3644_v54 = vmax.f32 %v3596_v51, 0.0 }
 0x7c9   : > { %v3674_v29 = vpack.c.bf16 %v3644_v54, %v3643_v1 }
 0x7cb   : > { %3826 = vmatmul.mubr.bf16.gmra.mrb[120].mxu0 %v3674_v29 }
 0x7cc   : > { %v5434_v34 = vpop.f32.mrb[124].mxu1  ;;  %3835 = vmatprep.mubr.bf16.mxu0 %v9265_v47 }
 0x7cd   : > { %v5435_v14 = vpop.f32.mrb[125].mxu1 }
 0x7ce   : > { %v5436_v55 = vadd.f32 %v5435_v14, %v5434_v34  ;;  %v5437_v17 = vpop.f32.mrb[126].mxu1 }
 0x7cf   : > { %v5438_v20 = vpop.f32.mrb[127].mxu1 }
 0x7d0   : > { %v3601_v39 = vadd.f32 %v5436_v55, %v8573_v5  ;;  %v5439_v49 = vadd.f32 %v5438_v20, %v5437_v17 }
 0x7d2   : > { %v3604_v52 = vadd.f32 %v5439_v49, %v8573_v5  ;;  %v3645_v42 = vmax.f32 %v3601_v39, 0.0 }
 0x7d4   : > { %v3646_v32 = vmax.f32 %v3604_v52, 0.0 }
 0x7d6   : > { %v3675_v13 = vpack.c.bf16 %v3646_v32, %v3645_v42 }
 0x7d8   : > { %v5440_v48 = vpop.f32.mrb[128].mxu1  ;;  %3836 = vmatmul.mubr.bf16.gmra.mrb[124].mxu0 %v3675_v13 }
 0x7d9   : > { %v5441_v58 = vpop.f32.mrb[129].mxu1  ;;  %3845 = vmatprep.mubr.bf16.mxu0 %v9265_v47 }
 0x7da   : > { %v5442_v21 = vadd.f32 %v5441_v58, %v5440_v48  ;;  %v5443_v16 = vpop.f32.mrb[130].mxu1 }
 0x7db   : > { %v5444_v63 = vpop.f32.mrb[131].mxu1 }
 0x7dc   : > { %v3609_v19 = vadd.f32 %v5442_v21, %v8573_v5  ;;  %v5445_v36 = vadd.f32 %v5444_v63, %v5443_v16 }
 0x7de   : > { %v3612_v15 = vadd.f32 %v5445_v36, %v8573_v5  ;;  %v3647_v59 = vmax.f32 %v3609_v19, 0.0  ;;  %v5828_v36 = vld [vmem:[#allocation4 + $0x2e0] ss:$8 sps:$4 sm:$0xff]  }
 0x7e0   : > { %v3648_v28 = vmax.f32 %v3612_v15, 0.0  ;;  %v5446_v37 = vpop.f32.mrb[132].mxu1  ;;  %v5830_v15 = vld [vmem:[#allocation4 + $0x2e4] ss:$8 sps:$4 sm:$0xff]  }
 0x7e1   : > { %v5447_v10 = vpop.f32.mrb[133].mxu1  ;;  %4168 = vmatprep.subr.bf16.mxu1 %v5830_v15 }
 0x7e2   : > { %v5448_v27 = vadd.f32 %v5447_v10, %v5446_v37  ;;  %v5449_v56 = vpop.f32.mrb[134].mxu1  ;;  %v3676_v43 = vpack.c.bf16 %v3648_v28, %v3647_v59  ;;  %v5833_v59 = vld [vmem:[#allocation4 + $0x2f4] ss:$8 sps:$4 sm:$0xff]   ;;  %4169 = vmatpush1.bf16.msra.mxu1 %v5828_v36  ;;  %v5831_v28 = vld [vmem:[#allocation4 + $0x2f0] ss:$8 sps:$4 sm:$0xff]   ;;  %v5834_v37 = vld [vmem:[%s9142_s10 + $0x40] sm:$0xff]  }
 0x7e3   : > { %v5450_v53 = vpop.f32.mrb[135].mxu1  ;;  %4170 = vmatprep.subr.bf16.mxu1 %v5833_v59  ;;  %5464 = vmatprep.subr.bf16.mxu0 %v5834_v37  ;;  %v5837_v10 = vld [vmem:[%s9142_s10 + $0x8] sm:$0xff]  }
 0x7e4   : > { %v3617_v25 = vadd.f32 %v5448_v27, %v8573_v5  ;;  %v5451_v44 = vadd.f32 %v5450_v53, %v5449_v56  ;;  %3846 = vmatmul.mubr.bf16.gmra.mrb[128].mxu0 %v3676_v43  ;;  %v5838_v27 = vld [vmem:[%s9142_s10 + $0x50] sm:$0xff]   ;;  %v5840_v43 = vld [vmem:[%s9142_s10 + $0x58] sm:$0xff]  }
 0x7e5   : > { %3855 = vmatprep.mubr.bf16.mxu0 %v9265_v47  ;;  %v5839_v56 = vld [vmem:[%s9142_s10 + $0x10] sm:$0xff]   ;;  %v5841_v53 = vld [vmem:[%s9142_s10 + $0x18] sm:$0xff]  }
 0x7e6   : > { %v3620_v57 = vadd.f32 %v5451_v44, %v8573_v5  ;;  %v3649_v3 = vmax.f32 %v3617_v25, 0.0  ;;  %4171 = vmatpush1.bf16.msra.mxu1 %v5831_v28  ;;  %v5842_v25 = vld [vmem:[%s9142_s10 + $0x60] sm:$0xff]  }
 0x7e7   : > { %v5843_v44 = vld [vmem:[%s9142_s10 + $0x20] sm:$0xff]  }
 0x7e8   : > { %v3650_v18 = vmax.f32 %v3620_v57, 0.0  ;;  %v5452_v41 = vpop.f32.mrb[136].mxu1  ;;  %v5202_v57 = vld [vmem:[%s9138_s6 + $0x4] sm:$0x3] }
 0x7e9   : > { %v5453_v50 = vpop.f32.mrb[137].mxu1 }
 0x7ea   : > { %v5454_v51 = vadd.f32 %v5453_v50, %v5452_v41  ;;  %v5455_v1 = vpop.f32.mrb[138].mxu1  ;;  %v3677_v54 = vpack.c.bf16 %v3650_v18, %v3649_v3  ;;  %v8632_v3 = vrot.slane %v5202_v57, %v9263_v9  ;;  %v9280_v18 = vld [vmem:[#allocation9_spill] sm:$0xff] }
 0x7eb   : > { %v5456_v29 = vpop.f32.mrb[139].mxu1  ;;  %v8635_v41 = vrot.slane %v5202_v57, %v9280_v18 }
 0x7ec   : > { %v3625_v34 = vadd.f32 %v5454_v51, %v8573_v5  ;;  %v5457_v14 = vadd.f32 %v5456_v29, %v5455_v1  ;;  %3856 = vmatmul.mubr.bf16.gmra.mrb[132].mxu0 %v3677_v54 }
 0x7ed   : > { %3865 = vmatprep.mubr.bf16.mxu0 %v9265_v47 }
 0x7ee   : > { %v3628_v55 = vadd.f32 %v5457_v14, %v8573_v5  ;;  %v3651_v17 = vmax.f32 %v3625_v34, 0.0 }
 0x7f0   : > { %v3652_v20 = vmax.f32 %v3628_v55, 0.0  ;;  %v5458_v39 = vpop.f32.mrb[140].mxu1 }
 0x7f1   : > { %v5459_v49 = vpop.f32.mrb[141].mxu1 }
 0x7f2   : > { %v5460_v52 = vadd.f32 %v5459_v49, %v5458_v39  ;;  %v5461_v42 = vpop.f32.mrb[142].mxu1  ;;  %v3678_v32 = vpack.c.bf16 %v3652_v20, %v3651_v17 }
 0x7f3   : > { %v5462_v13 = vpop.f32.mrb[143].mxu1 }
 0x7f4   : > { %v3633_v48 = vadd.f32 %v5460_v52, %v8573_v5  ;;  %v5463_v58 = vadd.f32 %v5462_v13, %v5461_v42  ;;  %3866 = vmatmul.mubr.bf16.gmra.mrb[136].mxu0 %v3678_v32 }
 0x7f5   : > { %3875 = vmatprep.mubr.bf16.mxu0 %v9265_v47  ;;  %v5835_v47 = vld [vmem:[%s9142_s10] sm:$0xff]  }
 0x7f6   : > { %v3636_v21 = vadd.f32 %v5463_v58, %v8573_v5  ;;  %v3653_v16 = vmax.f32 %v3633_v48, 0.0  ;;  %v5836_v5 = vld [vmem:[%s9142_s10 + $0x48] sm:$0xff]   ;;  %5465 = vmatpush3.bf16.msra.mxu0 %v5835_v47 }
 0x7f7   : > { %5466 = vmatprep.subr.bf16.mxu0 %v5836_v5 }
 0x7f8   : > { %v3654_v63 = vmax.f32 %v3636_v21, 0.0 }
 0x7fa   : > { %v3679_v19 = vpack.c.bf16 %v3654_v63, %v3653_v16  ;;  %5467 = vmatpush3.bf16.msra.mxu0 %v5837_v10 }
 0x7fb   : > { %5468 = vmatprep.subr.bf16.mxu0 %v5838_v27 }
 0x7fc   : > { %3876 = vmatmul.mubr.bf16.gmra.mrb[140].mxu0 %v3679_v19 }
 0x7fe   : > { %5469 = vmatpush3.bf16.msra.mxu0 %v5839_v56 }
 0x7ff   : > { %5470 = vmatprep.subr.bf16.mxu0 %v5840_v43 }
 0x802   : > { %5471 = vmatpush3.bf16.msra.mxu0 %v5841_v53 }
 0x803   : > { %5472 = vmatprep.subr.bf16.mxu0 %v5842_v25 }
 0x806   : > { %5473 = vmatpush3.bf16.msra.mxu0 %v5843_v44 }
 0x87e   : > { %v3807_v50 = vpop.f32.mrb[112].mxu0 }
 0x87f   : > { %v3808_v51 = vadd.f32 %v3807_v50, %v8632_v3  ;;  %v3809_v1 = vpop.f32.mrb[113].mxu0 }
 0x880   : > { %v3810_v54 = vadd.f32 %v3809_v1, %v8635_v41  ;;  %v3811_v29 = vpop.f32.mrb[114].mxu0 }
 0x881   : > { %v3812_v34 = vadd.f32 %v3811_v29, %v8632_v3  ;;  %v3813_v14 = vpop.f32.mrb[115].mxu0  ;;  %v3886_v17 = vmax.f32 %v3808_v51, 0.0 }
 0x882   : > { %v3814_v55 = vadd.f32 %v3813_v14, %v8635_v41  ;;  %v3887_v39 = vmax.f32 %v3810_v54, 0.0 }
 0x883   : > { %v3888_v20 = vmax.f32 %v3812_v34, 0.0 }
 0x884   : > { %v3889_v49 = vmax.f32 %v3814_v55, 0.0 }
 0x885   : > { %v3951_v52 = vpack.c.bf16 %v3888_v20, %v3886_v17 }
 0x886   : > { %v3952_v42 = vpack.c.bf16 %v3889_v49, %v3887_v39 }
 0x888   : > { %4172 = vmatprep.mubr.bf16.mxu1 %v3952_v42 }
 0x889   : > { %4173 = vmatmul.mubr.bf16.vlgmr.msra.gmra.mrb[144].mxu1 %v3951_v52  ;;  %v3817_v32 = vpop.f32.mrb[116].mxu0 }
 0x88a   : > { %v3818_v13 = vadd.f32 %v3817_v32, %v8632_v3  ;;  %v3819_v48 = vpop.f32.mrb[117].mxu0 }
 0x88b   : > { %v3820_v58 = vadd.f32 %v3819_v48, %v8635_v41  ;;  %v3821_v21 = vpop.f32.mrb[118].mxu0 }
 0x88c   : > { %v3822_v16 = vadd.f32 %v3821_v21, %v8632_v3  ;;  %v3823_v63 = vpop.f32.mrb[119].mxu0  ;;  %v3890_v36 = vmax.f32 %v3818_v13, 0.0 }
 0x88d   : > { %v3824_v19 = vadd.f32 %v3823_v63, %v8635_v41  ;;  %v3891_v59 = vmax.f32 %v3820_v58, 0.0 }
 0x88e   : > { %v3892_v15 = vmax.f32 %v3822_v16, 0.0 }
 0x88f   : > { %v3893_v28 = vmax.f32 %v3824_v19, 0.0 }
 0x890   : > { %v3953_v37 = vpack.c.bf16 %v3892_v15, %v3890_v36 }
 0x891   : > { %v3954_v47 = vpack.c.bf16 %v3893_v28, %v3891_v59 }
 0x893   : > { %4182 = vmatprep.mubr.bf16.mxu1 %v3954_v47 }
 0x894   : > { %4183 = vmatmul.mubr.bf16.gmra.mrb[148].mxu1 %v3953_v37 }
 0x89e   : > { %v3827_v5 = vpop.f32.mrb[120].mxu0 }
 0x89f   : > { %v3828_v10 = vadd.f32 %v3827_v5, %v8632_v3  ;;  %v3829_v27 = vpop.f32.mrb[121].mxu0 }
 0x8a0   : > { %v3830_v56 = vadd.f32 %v3829_v27, %v8635_v41  ;;  %v3831_v43 = vpop.f32.mrb[122].mxu0 }
 0x8a1   : > { %v3832_v53 = vadd.f32 %v3831_v43, %v8632_v3  ;;  %v3833_v25 = vpop.f32.mrb[123].mxu0  ;;  %v3894_v57 = vmax.f32 %v3828_v10, 0.0 }
 0x8a2   : > { %v3834_v44 = vadd.f32 %v3833_v25, %v8635_v41  ;;  %v3895_v51 = vmax.f32 %v3830_v56, 0.0 }
 0x8a3   : > { %v3896_v50 = vmax.f32 %v3832_v53, 0.0 }
 0x8a4   : > { %v3897_v1 = vmax.f32 %v3834_v44, 0.0 }
 0x8a5   : > { %v3955_v54 = vpack.c.bf16 %v3896_v50, %v3894_v57 }
 0x8a6   : > { %v3956_v29 = vpack.c.bf16 %v3897_v1, %v3895_v51 }
 0x8a8   : > { %4192 = vmatprep.mubr.bf16.mxu1 %v3956_v29 }
 0x8a9   : > { %4193 = vmatmul.mubr.bf16.gmra.mrb[152].mxu1 %v3955_v54 }
 0x8ab   : > { %v3837_v34 = vpop.f32.mrb[124].mxu0 }
 0x8ac   : > { %v3838_v14 = vadd.f32 %v3837_v34, %v8632_v3  ;;  %v3839_v55 = vpop.f32.mrb[125].mxu0 }
 0x8ad   : > { %v3840_v17 = vadd.f32 %v3839_v55, %v8635_v41  ;;  %v3841_v20 = vpop.f32.mrb[126].mxu0 }
 0x8ae   : > { %v3842_v39 = vadd.f32 %v3841_v20, %v8632_v3  ;;  %v3843_v49 = vpop.f32.mrb[127].mxu0  ;;  %v3898_v42 = vmax.f32 %v3838_v14, 0.0 }
 0x8af   : > { %v3844_v52 = vadd.f32 %v3843_v49, %v8635_v41  ;;  %v3899_v13 = vmax.f32 %v3840_v17, 0.0 }
 0x8b0   : > { %v3900_v32 = vmax.f32 %v3842_v39, 0.0 }
 0x8b1   : > { %v3901_v48 = vmax.f32 %v3844_v52, 0.0 }
 0x8b2   : > { %v3957_v58 = vpack.c.bf16 %v3900_v32, %v3898_v42 }
 0x8b3   : > { %v3958_v21 = vpack.c.bf16 %v3901_v48, %v3899_v13 }
 0x8b5   : > { %4202 = vmatprep.mubr.bf16.mxu1 %v3958_v21 }
 0x8b6   : > { %4203 = vmatmul.mubr.bf16.gmra.mrb[156].mxu1 %v3957_v58 }
 0x8b7   : > { %v3847_v16 = vpop.f32.mrb[128].mxu0 }
 0x8b8   : > { %v3848_v63 = vadd.f32 %v3847_v16, %v8632_v3  ;;  %v3849_v19 = vpop.f32.mrb[129].mxu0 }
 0x8b9   : > { %v3850_v36 = vadd.f32 %v3849_v19, %v8635_v41  ;;  %v3851_v15 = vpop.f32.mrb[130].mxu0 }
 0x8ba   : > { %v3852_v59 = vadd.f32 %v3851_v15, %v8632_v3  ;;  %v3853_v28 = vpop.f32.mrb[131].mxu0  ;;  %v3902_v47 = vmax.f32 %v3848_v63, 0.0 }
 0x8bb   : > { %v3854_v37 = vadd.f32 %v3853_v28, %v8635_v41  ;;  %v3903_v10 = vmax.f32 %v3850_v36, 0.0 }
 0x8bc   : > { %v3904_v5 = vmax.f32 %v3852_v59, 0.0 }
 0x8bd   : > { %v3905_v27 = vmax.f32 %v3854_v37, 0.0 }
 0x8be   : > { %v3959_v56 = vpack.c.bf16 %v3904_v5, %v3902_v47 }
 0x8bf   : > { %v3960_v43 = vpack.c.bf16 %v3905_v27, %v3903_v10  ;;  %v3857_v53 = vpop.f32.mrb[132].mxu0 }
 0x8c0   : > { %v3858_v25 = vadd.f32 %v3857_v53, %v8632_v3  ;;  %v3859_v44 = vpop.f32.mrb[133].mxu0 }
 0x8c1   : > { %v3860_v57 = vadd.f32 %v3859_v44, %v8635_v41  ;;  %v3861_v50 = vpop.f32.mrb[134].mxu0  ;;  %4212 = vmatprep.mubr.bf16.mxu1 %v3960_v43 }
 0x8c2   : > { %v3862_v51 = vadd.f32 %v3861_v50, %v8632_v3  ;;  %v3863_v1 = vpop.f32.mrb[135].mxu0  ;;  %4213 = vmatmul.mubr.bf16.gmra.mrb[160].mxu1 %v3959_v56  ;;  %v3906_v29 = vmax.f32 %v3858_v25, 0.0 }
 0x8c3   : > { %v3864_v54 = vadd.f32 %v3863_v1, %v8635_v41  ;;  %v3907_v14 = vmax.f32 %v3860_v57, 0.0  ;;  %v5847_v1 = vld [vmem:[%s9142_s10 + $0x30] sm:$0xff]  }
 0x8c4   : > { %v3908_v34 = vmax.f32 %v3862_v51, 0.0  ;;  %v5844_v51 = vld [vmem:[%s9142_s10 + $0x68] sm:$0xff]  }
 0x8c5   : > { %v3909_v55 = vmax.f32 %v3864_v54, 0.0  ;;  %5474 = vmatprep.subr.bf16.mxu0 %v5844_v51  ;;  %v5848_v54 = vld [vmem:[%s9142_s10 + $0x78] sm:$0xff]  }
 0x8c6   : > { %v3961_v17 = vpack.c.bf16 %v3908_v34, %v3906_v29  ;;  %v5849_v29 = vld [vmem:[%s9142_s10 + $0x38] sm:$0xff]   ;;  %v5219_v34 = vld [vmem:[%s9140_s8 + $0x4] sm:$0x3] }
 0x8c7   : > { %v3962_v20 = vpack.c.bf16 %v3909_v55, %v3907_v14  ;;  %v3867_v39 = vpop.f32.mrb[136].mxu0  ;;  %v5252_v14 = vld [vmem:[%s9141_s9 + $0x4] sm:$0x3]  ;;  %v8694_v55 = vrot.slane %v5219_v34, %v9263_v9 }
 0x8c8   : > { %v3868_v49 = vadd.f32 %v3867_v39, %v8632_v3  ;;  %v3869_v52 = vpop.f32.mrb[137].mxu0  ;;  %v8703_v39 = vrot.slane %v5252_v14, %v9280_v18 }
 0x8c9   : > { %v3870_v42 = vadd.f32 %v3869_v52, %v8635_v41  ;;  %v3871_v32 = vpop.f32.mrb[138].mxu0  ;;  %4222 = vmatprep.mubr.bf16.mxu1 %v3962_v20  ;;  %v8700_v20 = vrot.slane %v5219_v34, %v9280_v18 }
 0x8ca   : > { %v3872_v13 = vadd.f32 %v3871_v32, %v8632_v3  ;;  %v3873_v48 = vpop.f32.mrb[139].mxu0  ;;  %4223 = vmatmul.mubr.bf16.gmra.mrb[164].mxu1 %v3961_v17  ;;  %v3910_v21 = vmax.f32 %v3868_v49, 0.0  ;;  %v8697_v17 = vrot.slane %v5252_v14, %v9263_v9 }
 0x8cb   : > { %v3874_v58 = vadd.f32 %v3873_v48, %v8635_v41  ;;  %v3911_v63 = vmax.f32 %v3870_v42, 0.0  ;;  %v4267_v48 = vmul.f32 %v8703_v39, %v8224_v62 }
 0x8cc   : > { %v3912_v16 = vmax.f32 %v3872_v13, 0.0  ;;  %v4266_v42 = vmul.f32 %v8697_v17, %v8181_v22  ;;  %v4268_v18 = vmul.f32 %v8697_v17, %v8189_v11  ;;  %v9281_v22 = vld [vmem:[#allocation19_spill] sm:$0xff] }
 0x8cd   : > { %v3913_v19 = vmax.f32 %v3874_v58, 0.0 }
 0x8ce   : > { %v3963_v36 = vpack.c.bf16 %v3912_v16, %v3910_v21 }
 0x8cf   : > { %v3964_v15 = vpack.c.bf16 %v3913_v19, %v3911_v63  ;;  %v3877_v59 = vpop.f32.mrb[140].mxu0 }
 0x8d0   : > { %v3878_v28 = vadd.f32 %v3877_v59, %v8632_v3  ;;  %v3879_v37 = vpop.f32.mrb[141].mxu0 }
 0x8d1   : > { %v3880_v47 = vadd.f32 %v3879_v37, %v8635_v41  ;;  %v3881_v5 = vpop.f32.mrb[142].mxu0  ;;  %4232 = vmatprep.mubr.bf16.mxu1 %v3964_v15 }
 0x8d2   : > { %v3882_v10 = vadd.f32 %v3881_v5, %v8632_v3  ;;  %v3883_v27 = vpop.f32.mrb[143].mxu0  ;;  %4233 = vmatmul.mubr.bf16.gmra.mrb[168].mxu1 %v3963_v36  ;;  %v3914_v43 = vmax.f32 %v3878_v28, 0.0  ;;  %v5845_v3 = vld [vmem:[%s9142_s10 + $0x28] sm:$0xff]   ;;  %v4269_v36 = vmul.f32 %v8703_v39, %v9281_v22 }
 0x8d3   : > { %v3884_v56 = vadd.f32 %v3883_v27, %v8635_v41  ;;  %v3915_v25 = vmax.f32 %v3880_v47, 0.0  ;;  %v5846_v41 = vld [vmem:[%s9142_s10 + $0x70] sm:$0xff]   ;;  %5475 = vmatpush3.bf16.msra.mxu0 %v5845_v3 }
 0x8d4   : > { %v3916_v53 = vmax.f32 %v3882_v10, 0.0  ;;  %5476 = vmatprep.subr.bf16.mxu0 %v5846_v41 }
 0x8d5   : > { %v3917_v44 = vmax.f32 %v3884_v56, 0.0 }
 0x8d6   : > { %v3965_v57 = vpack.c.bf16 %v3916_v53, %v3914_v43 }
 0x8d7   : > { %v3966_v50 = vpack.c.bf16 %v3917_v44, %v3915_v25  ;;  %5477 = vmatpush3.bf16.msra.mxu0 %v5847_v1  ;;  %v9283_v1 = vld [vmem:[#allocation24_spill] sm:$0xff] }
 0x8d8   : > { %5478 = vmatprep.subr.bf16.mxu0 %v5848_v54  ;;  %v4271_v54 = vmul.f32 %v8703_v39, %v9283_v1 }
 0x8d9   : > { %4242 = vmatprep.mubr.bf16.mxu1 %v3966_v50 }
 0x8da   : > { %4243 = vmatmul.mubr.bf16.gmra.mrb[172].mxu1 %v3965_v57  ;;  %v9282_v57 = vld [vmem:[#allocation27_spill] sm:$0xff] }
 0x8db   : > { %5479 = vmatpush3.bf16.msra.mxu0 %v5849_v29  ;;  %v4270_v50 = vmul.f32 %v8697_v17, %v9282_v57 }
 0x95c   : > { %v4174_v49 = vpop.f32.mrb[144].mxu1 }
 0x95d   : > { %v4175_v52 = vadd.f32 %v4174_v49, %v8694_v55  ;;  %v4176_v32 = vpop.f32.mrb[145].mxu1  ;;  %v9284_v49 = vld [vmem:[#allocation18_spill] sm:$0xff] }
 0x95e   : > { %v4177_v13 = vadd.f32 %v4176_v32, %v8700_v20  ;;  %v4178_v9 = vpop.f32.mrb[146].mxu1 }
 0x95f   : > { %v8711_v58 = vadd.f32 %v4266_v42, %v4175_v52  ;;  %v4179_v21 = vadd.f32 %v4178_v9, %v8694_v55  ;;  %v4180_v16 = vpop.f32.mrb[147].mxu1  ;;  %v4272_v52 = vmul.f32 %v8697_v17, %v9284_v49 }
 0x960   : > { %v8716_v63 = vadd.f32 %v4267_v48, %v4177_v13  ;;  %v4181_v19 = vadd.f32 %v4180_v16, %v8700_v20  ;;  %v9285_v48 = vld [vmem:[#allocation14_spill] sm:$0xff] }
 0x961   : > { %v4330_v15 = vmin.f32 %v8711_v58, 0.0  ;;  %v8722_v59 = vadd.f32 %v4268_v18, %v4179_v21  ;;  %v4273_v9 = vmul.f32 %v8703_v39, %v9285_v48  ;;  %vm4362_vm3 = vcmp.gt.f32.partialorder %v8711_v58, 0.0 }
 0x962   : > { %v4331_v62 = vmin.f32 %v8716_v63, 0.0  ;;  %v8725_v28 = vadd.f32 %v4269_v36, %v4181_v19  ;;  %vm4363_vm5 = vcmp.gt.f32.partialorder %v8716_v63, 0.0 }
 0x963   : > { %v4394_v37 = vmul.f32 0.5, %v4330_v15  ;;  %v4458_v47 = vmul.f32 1.442695, %v4330_v15  ;;  %v4332_v11 = vmin.f32 %v8722_v59, 0.0  ;;  %vm4364_vm4 = vcmp.gt.f32.partialorder %v8722_v59, 0.0 }
 0x964   : > { %v4460_v5 = vmul.f32 1.442695, %v4331_v62  ;;  %v4333_v10 = vmin.f32 %v8725_v28, 0.0  ;;  %v4395_v27 = vmul.f32 0.5, %v4331_v62  ;;  %vm4365_vm6 = vcmp.gt.f32.partialorder %v8725_v28, 0.0 }
 0x965   : > { %6234 = vpow2.f32 %v4458_v47  ;;  %v4462_v56 = vmul.f32 1.442695, %v4332_v11  ;;  %v4396_v43 = vmul.f32 0.5, %v4332_v11 }
 0x966   : > { %6236 = vtanh.f32 %v4394_v37  ;;  %v4464_v53 = vmul.f32 1.442695, %v4333_v10  ;;  %v4397_v3 = vmul.f32 0.5, %v4333_v10 }
 0x967   : > { %6238 = vpow2.f32 %v4460_v5  ;;  %v4184_v25 = vpop.f32.mrb[148].mxu1 }
 0x968   : > { %6240 = vtanh.f32 %v4395_v27  ;;  %v4185_v44 = vadd.f32 %v4184_v25, %v8694_v55  ;;  %v4186_v51 = vpop.f32.mrb[149].mxu1 }
 0x969   : > { %6242 = vpow2.f32 %v4462_v56  ;;  %v4187_v41 = vadd.f32 %v4186_v51, %v8700_v20  ;;  %v4188_v29 = vpop.f32.mrb[150].mxu1 }
 0x96a   : > { %6244 = vtanh.f32 %v4396_v43  ;;  %v8735_v34 = vadd.f32 %v4270_v50, %v4185_v44  ;;  %v4189_v14 = vadd.f32 %v4188_v29, %v8694_v55  ;;  %v4190_v42 = vpop.f32.mrb[151].mxu1 }
 0x96b   : > { %6246 = vpow2.f32 %v4464_v53  ;;  %v8740_v32 = vadd.f32 %v4271_v54, %v4187_v41  ;;  %v4191_v13 = vadd.f32 %v4190_v42, %v8700_v20 }
 0x96c   : > { %v4334_v21 = vmin.f32 %v8735_v34, 0.0  ;;  %v8746_v18 = vadd.f32 %v4272_v52, %v4189_v14  ;;  %6248 = vtanh.f32 %v4397_v3  ;;  %vm4366_vm7 = vcmp.gt.f32.partialorder %v8735_v34, 0.0 }
 0x96d   : > { %v4335_v16 = vmin.f32 %v8740_v32, 0.0  ;;  %v8749_v19 = vadd.f32 %v4273_v9, %v4191_v13  ;;  %vm4367_vm8 = vcmp.gt.f32.partialorder %v8740_v32, 0.0 }
 0x96e   : > { %v4466_v22 = vmul.f32 1.442695, %v4334_v21  ;;  %v4336_v11 = vmin.f32 %v8746_v18, 0.0  ;;  %v4398_v3 = vmul.f32 0.5, %v4334_v21  ;;  %vm4368_vm9 = vcmp.gt.f32.partialorder %v8746_v18, 0.0 }
 0x96f   : > { %v6235_v36 = vpop.eup %6234  ;;  %v4468_v15 = vmul.f32 1.442695, %v4335_v16  ;;  %v4337_v62 = vmin.f32 %v8749_v19, 0.0  ;;  %v4399_v27 = vmul.f32 0.5, %v4335_v16  ;;  %vm4369_vm10 = vcmp.gt.f32.partialorder %v8749_v19, 0.0 }
 0x970   : > { %v6237_v37 = vpop.eup %6236  ;;  %v4522_v47 = vadd.f32 1.0, %v6235_v36  ;;  %6250 = vpow2.f32 %v4466_v22  ;;  %v4470_v50 = vmul.f32 1.442695, %v4336_v11  ;;  %v4400_v49 = vmul.f32 0.5, %v4336_v11  ;;  %v9286_v36 = vld [vmem:[#allocation10_spill] sm:$0xff] }
 0x971   : > { %v6239_v5 = vpop.eup %6238  ;;  %6252 = vpow2.f32 %v4468_v15  ;;  %v4472_v53 = vmul.f32 1.442695, %v4337_v62  ;;  %v4401_v41 = vmul.f32 0.5, %v4337_v62 }
 0x972   : > { %v6241_v10 = vpop.eup %6240  ;;  %v4523_v56 = vadd.f32 1.0, %v6239_v5  ;;  %v4554_v44 = vmul.f32 %v6237_v37, %v4522_v47  ;;  %6254 = vtanh.f32 %v4399_v27  ;;  %v9287_v47 = vld [vmem:[#allocation25_spill] sm:$0xff] }
 0x973   : > { %v6243_v43 = vpop.eup %6242  ;;  %6256 = vpow2.f32 %v4472_v53  ;;  %v4275_v11 = vmul.f32 %v8703_v39, %v9287_v47 }
 0x974   : > { %v6245_v25 = vpop.eup %6244  ;;  %v4524_v57 = vadd.f32 1.0, %v6243_v43  ;;  %v4555_v29 = vmul.f32 %v6241_v10, %v4523_v56  ;;  %v4586_v52 = vsel %vm4362_vm3, %v8711_v58, %v4554_v44  ;;  %6258 = vpow2.f32 %v4470_v50  ;;  %v9289_v44 = vld [vmem:[#allocation28_spill] sm:$0xff] }
 0x975   : > { %v6247_v51 = vpop.eup %6246  ;;  %6260 = vtanh.f32 %v4398_v3  ;;  %v4274_v58 = vmul.f32 %v8697_v17, %v9286_v36  ;;  %v4280_v36 = vmul.f32 %v8697_v17, %v8444_v38 }
 0x976   : > { %v4556_v1 = vmul.f32 %v6245_v25, %v4524_v57  ;;  %v4525_v54 = vadd.f32 1.0, %v6247_v51  ;;  %v6249_v14 = vpop.eup %6248  ;;  %6262 = vtanh.f32 %v4401_v41  ;;  %v4587_v21 = vsel %vm4363_vm5, %v8716_v63, %v4555_v29 }
 0x977   : > { %6264 = vtanh.f32 %v4400_v49  ;;  %v4277_v57 = vmul.f32 %v8703_v39, %v9289_v44 }
 0x978   : > { %v4588_v42 = vsel %vm4364_vm4, %v8722_v59, %v4556_v1  ;;  %v4557_v13 = vmul.f32 %v6249_v14, %v4525_v54 }
 0x979   : > { %v4650_v48 = vpack.c.bf16 %v4588_v42, %v4586_v52 }
 0x97a   : > { %v4589_v16 = vsel %vm4365_vm6, %v8725_v28, %v4557_v13  ;;  %v6251_v62 = vpop.eup %6250  ;;  %v9288_v28 = vld [vmem:[#allocation29_spill] sm:$0xff] }
 0x97b   : > { %v4651_v15 = vpack.c.bf16 %v4589_v16, %v4587_v21  ;;  %v6253_v10 = vpop.eup %6252  ;;  %v4276_v56 = vmul.f32 %v8697_v17, %v9288_v28  ;;  %v4526_v29 = vadd.f32 1.0, %v6251_v62  ;;  %v4278_v21 = vmul.f32 %v8697_v17, %v8439_v4 }
 0x97c   : > { %v4194_v9 = vpop.f32.mrb[152].mxu1  ;;  %v4527_v3 = vadd.f32 1.0, %v6253_v10  ;;  %v6255_v41 = vpop.eup %6254  ;;  %v4279_v16 = vmul.f32 %v8703_v39, %v8415_v31 }
 0x97d   : > { %v4195_v22 = vadd.f32 %v4194_v9, %v8694_v55  ;;  %v4196_v59 = vpop.f32.mrb[153].mxu1  ;;  %4801 = vmatprep.mubr.bf16.mxu0 %v4651_v15  ;;  %v6257_v14 = vpop.eup %6256 }
 0x97e   : > { %v4197_v37 = vadd.f32 %v4196_v59, %v8700_v20  ;;  %v4198_v5 = vpop.f32.mrb[154].mxu1  ;;  %4802 = vmatmul.mubr.bf16.vlgmr.msra.gmra.mrb[144].mxu0 %v4650_v48  ;;  %v6259_v13 = vpop.eup %6258  ;;  %v4559_v59 = vmul.f32 %v6255_v41, %v4527_v3 }
 0x97f   : > { %v8767_v27 = vadd.f32 %v4274_v58, %v4195_v22  ;;  %v4199_v63 = vadd.f32 %v4198_v5, %v8694_v55  ;;  %v4200_v43 = vpop.f32.mrb[155].mxu1  ;;  %v6261_v22 = vpop.eup %6260  ;;  %v4529_v58 = vadd.f32 1.0, %v6257_v14 }
 0x980   : > { %v8772_v53 = vadd.f32 %v4275_v11, %v4197_v37  ;;  %v4201_v25 = vadd.f32 %v4200_v43, %v8700_v20  ;;  %v6263_v15 = vpop.eup %6262  ;;  %v4558_v37 = vmul.f32 %v6261_v22, %v4526_v29  ;;  %v4528_v11 = vadd.f32 1.0, %v6259_v13 }
 0x981   : > { %v4338_v50 = vmin.f32 %v8767_v27, 0.0  ;;  %v8778_v51 = vadd.f32 %v4276_v56, %v4199_v63  ;;  %v4561_v4 = vmul.f32 %v6263_v15, %v4529_v58  ;;  %v6265_v5 = vpop.eup %6264  ;;  %v4591_v63 = vsel %vm4367_vm8, %v8740_v32, %v4559_v59 }
 0x982   : > { %v4339_v1 = vmin.f32 %v8772_v53, 0.0  ;;  %v8781_v54 = vadd.f32 %v4277_v57, %v4201_v25  ;;  %v4560_v56 = vmul.f32 %v6265_v5, %v4528_v11  ;;  %v4590_v41 = vsel %vm4366_vm7, %v8735_v34, %v4558_v37 }
 0x983   : > { %v4402_v49 = vmul.f32 0.5, %v4338_v50  ;;  %v4474_v52 = vmul.f32 1.442695, %v4338_v50  ;;  %v4340_v42 = vmin.f32 %v8778_v51, 0.0  ;;  %v4593_v28 = vsel %vm4369_vm10, %v8749_v19, %v4561_v4 }
 0x984   : > { %v4476_v9 = vmul.f32 1.442695, %v4339_v1  ;;  %v4341_v48 = vmin.f32 %v8781_v54, 0.0  ;;  %v4403_v47 = vmul.f32 0.5, %v4339_v1  ;;  %v4653_v57 = vpack.c.bf16 %v4593_v28, %v4591_v63 }
 0x985   : > { %6266 = vpow2.f32 %v4474_v52  ;;  %v4478_v62 = vmul.f32 1.442695, %v4340_v42  ;;  %v4404_v38 = vmul.f32 0.5, %v4340_v42  ;;  %v4592_v32 = vsel %vm4368_vm9, %v8746_v18, %v4560_v56 }
 0x986   : > { %6268 = vtanh.f32 %v4402_v49  ;;  %v4480_v31 = vmul.f32 1.442695, %v4341_v48  ;;  %v4405_v43 = vmul.f32 0.5, %v4341_v48  ;;  %4809 = vmatprep.mubr.bf16.mxu0 %v4653_v57  ;;  %v4652_v14 = vpack.c.bf16 %v4592_v32, %v4590_v41 }
 0x987   : > { %6270 = vpow2.f32 %v4476_v9  ;;  %v4281_v42 = vmul.f32 %v8703_v39, %v8420_v6  ;;  %v4283_v22 = vmul.f32 %v8703_v39, %v8476_v26  ;;  %v4284_v6 = vmul.f32 %v8697_v17, %v8498_v46 }
 0x988   : > { %6272 = vpow2.f32 %v4478_v62  ;;  %4810 = vmatmul.mubr.bf16.gmra.mrb[148].mxu0 %v4652_v14  ;;  %v4285_v15 = vmul.f32 %v8703_v39, %v8481_v24  ;;  %v8830_v62 = vmul.f32 %v8697_v17, %v8518_v33  ;;  %v8835_v26 = vmul.f32 %v8703_v39, %v8508_v61 }
 0x989   : > { %v4204_v10 = vpop.f32.mrb[156].mxu1  ;;  %6274 = vtanh.f32 %v4403_v47  ;;  %v8839_v46 = vmul.f32 %v8697_v17, %v8523_v23  ;;  %v8843_v24 = vmul.f32 %v8703_v39, %v8513_v8  ;;  %v8847_v33 = vmul.f32 %v8697_v17, %v8543_v30 }
 0x98a   : > { %v4205_v25 = vadd.f32 %v4204_v10, %v8694_v55  ;;  %v4206_v44 = vpop.f32.mrb[157].mxu1  ;;  %6276 = vpow2.f32 %v4480_v31  ;;  %vm4370_vm11 = vcmp.gt.f32.partialorder %v8767_v27, 0.0  ;;  %vm4371_vm12 = vcmp.gt.f32.partialorder %v8772_v53, 0.0 }
 0x98b   : > { %v4207_v50 = vadd.f32 %v4206_v44, %v8700_v20  ;;  %v4208_v3 = vpop.f32.mrb[158].mxu1  ;;  %6278 = vtanh.f32 %v4405_v43  ;;  %vm4372_vm13 = vcmp.gt.f32.partialorder %v8778_v51, 0.0  ;;  %vm4373_vm14 = vcmp.gt.f32.partialorder %v8781_v54, 0.0 }
 0x98c   : > { %v8805_v19 = vadd.f32 %v4278_v21, %v4205_v25  ;;  %v4209_v1 = vadd.f32 %v4208_v3, %v8694_v55  ;;  %v4210_v29 = vpop.f32.mrb[159].mxu1  ;;  %6280 = vtanh.f32 %v4404_v38 }
 0x98d   : > { %v8808_v49 = vadd.f32 %v4279_v16, %v4207_v50  ;;  %v4211_v52 = vadd.f32 %v4210_v29, %v8700_v20  ;;  %v4282_v16 = vmul.f32 %v8697_v17, %v8491_v7 }
 0x98e   : > { %v4342_v34 = vmin.f32 %v8805_v19, 0.0  ;;  %v8814_v13 = vadd.f32 %v4280_v36, %v4209_v1  ;;  %vm4374_vm0 = vcmp.gt.f32.partialorder %v8805_v19, 0.0 }
 0x98f   : > { %v4343_v18 = vmin.f32 %v8808_v49, 0.0  ;;  %v8817_v9 = vadd.f32 %v4281_v42, %v4211_v52  ;;  %v6267_v48 = vpop.eup %6266  ;;  %vm4375_vm2 = vcmp.gt.f32.partialorder %v8808_v49, 0.0 }
 0x990   : > { %v4406_v21 = vmul.f32 0.5, %v4342_v34  ;;  %v6269_v58 = vpop.eup %6268  ;;  %v4482_v36 = vmul.f32 1.442695, %v4342_v34  ;;  %v4344_v59 = vmin.f32 %v8814_v13, 0.0  ;;  %v4530_v47 = vadd.f32 1.0, %v6267_v48 }
 0x991   : > { %v6271_v37 = vpop.eup %6270  ;;  %v4345_v7 = vmin.f32 %v8817_v9, 0.0  ;;  %v4407_v4 = vmul.f32 0.5, %v4343_v18  ;;  %v4484_v61 = vmul.f32 1.442695, %v4343_v18  ;;  %vm4376_vm15 = vcmp.gt.f32.partialorder %v8814_v13, 0.0 }
 0x992   : > { %v4531_v11 = vadd.f32 1.0, %v6271_v37  ;;  %v6273_v5 = vpop.eup %6272  ;;  %6282 = vtanh.f32 %v4406_v21  ;;  %v4408_v8 = vmul.f32 0.5, %v4344_v59  ;;  %v4486_v31 = vmul.f32 1.442695, %v4344_v59 }
 0x993   : > { %v6275_v23 = vpop.eup %6274  ;;  %6284 = vpow2.f32 %v4482_v36  ;;  %v4409_v63 = vmul.f32 0.5, %v4345_v7  ;;  %v4532_v56 = vadd.f32 1.0, %v6273_v5  ;;  %v4562_v43 = vmul.f32 %v6269_v58, %v4530_v47 }
 0x994   : > { %v6277_v10 = vpop.eup %6276  ;;  %6286 = vtanh.f32 %v4407_v4  ;;  %v4563_v50 = vmul.f32 %v6275_v23, %v4531_v11  ;;  %v4488_v41 = vmul.f32 1.442695, %v4345_v7  ;;  %vm4377_vm1 = vcmp.gt.f32.partialorder %v8817_v9, 0.0 }
 0x995   : > { %v4214_v38 = vpop.f32.mrb[160].mxu1  ;;  %v4533_v57 = vadd.f32 1.0, %v6277_v10  ;;  %v6279_v3 = vpop.eup %6278  ;;  %6288 = vpow2.f32 %v4484_v61 }
 0x996   : > { %v4215_v30 = vadd.f32 %v4214_v38, %v8694_v55  ;;  %v4216_v28 = vpop.f32.mrb[161].mxu1  ;;  %v6281_v14 = vpop.eup %6280  ;;  %6290 = vtanh.f32 %v4408_v8 }
 0x997   : > { %v4217_v25 = vadd.f32 %v4216_v28, %v8700_v20  ;;  %v4218_v44 = vpop.f32.mrb[162].mxu1  ;;  %v4565_v34 = vmul.f32 %v6279_v3, %v4533_v57  ;;  %v4564_v21 = vmul.f32 %v6281_v14, %v4532_v56  ;;  %6292 = vpow2.f32 %v4486_v31 }
 0x998   : > { %v8855_v32 = vadd.f32 %v4282_v16, %v4215_v30  ;;  %v4219_v1 = vadd.f32 %v4218_v44, %v8694_v55  ;;  %v4220_v29 = vpop.f32.mrb[163].mxu1  ;;  %v4594_v16 = vsel %vm4370_vm11, %v8767_v27, %v4562_v43  ;;  %6294 = vtanh.f32 %v4409_v63 }
 0x999   : > { %v8858_v52 = vadd.f32 %v4283_v22, %v4217_v25  ;;  %v4221_v42 = vadd.f32 %v4220_v29, %v8700_v20  ;;  %v4595_v22 = vsel %vm4371_vm12, %v8772_v53, %v4563_v50  ;;  %6296 = vpow2.f32 %v4488_v41 }
 0x99a   : > { %v4346_v18 = vmin.f32 %v8855_v32, 0.0  ;;  %v8862_v48 = vadd.f32 %v4284_v6, %v4219_v1  ;;  %v4597_v27 = vsel %vm4373_vm14, %v8781_v54, %v4565_v34  ;;  %v4596_v61 = vsel %vm4372_vm13, %v8778_v51, %v4564_v21 }
 0x99b   : > { %v4347_v58 = vmin.f32 %v8858_v52, 0.0  ;;  %v8868_v36 = vadd.f32 %v4285_v15, %v4221_v42  ;;  %v4655_v56 = vpack.c.bf16 %v4597_v27, %v4595_v22  ;;  %v4654_v44 = vpack.c.bf16 %v4596_v61, %v4594_v16 }
 0x99c   : > { %v4410_v59 = vmul.f32 0.5, %v4346_v18  ;;  %v4490_v37 = vmul.f32 1.442695, %v4346_v18  ;;  %v4348_v6 = vmin.f32 %v8862_v48, 0.0  ;;  %v8878_v15 = vpop.eup %6282  ;;  %v4291_v29 = vmul.f32 %v8703_v39, %v8535_v45 }
 0x99d   : > { %v4411_v7 = vmul.f32 0.5, %v4347_v58  ;;  %v4349_v47 = vmin.f32 %v8868_v36, 0.0  ;;  %v4224_v4 = vpop.f32.mrb[164].mxu1  ;;  %v4492_v11 = vmul.f32 1.442695, %v4347_v58  ;;  %v8884_v23 = vpop.eup %6284  ;;  %4817 = vmatprep.mubr.bf16.mxu0 %v4655_v56  ;;  %v4292_v16 = vmul.f32 %v8697_v17, %v8546_v40 }
 0x99e   : > { %6298 = vtanh.f32 %v4410_v59  ;;  %v4225_v53 = vadd.f32 %v4224_v4, %v8694_v55  ;;  %v4226_v5 = vpop.f32.mrb[165].mxu1  ;;  %v4412_v8 = vmul.f32 0.5, %v4348_v6  ;;  %v4494_v31 = vmul.f32 1.442695, %v4348_v6  ;;  %v8891_v43 = vpop.eup %6286  ;;  %4818 = vmatmul.mubr.bf16.gmra.mrb[152].mxu0 %v4654_v44 }
 0x99f   : > { %6300 = vpow2.f32 %v4490_v37  ;;  %v4227_v38 = vadd.f32 %v4226_v5, %v8700_v20  ;;  %v4228_v10 = vpop.f32.mrb[166].mxu1  ;;  %v4413_v54 = vmul.f32 0.5, %v4349_v47  ;;  %v6289_v57 = vpop.eup %6288  ;;  %v4496_v50 = vmul.f32 1.442695, %v4349_v47 }
 0x9a0   : > { %v8888_v63 = vadd.f32 %v8830_v62, %v4225_v53  ;;  %v4229_v30 = vadd.f32 %v4228_v10, %v8694_v55  ;;  %v4230_v28 = vpop.f32.mrb[167].mxu1  ;;  %6302 = vtanh.f32 %v4411_v7  ;;  %v8901_v41 = vpop.eup %6290  ;;  %v8919_v37 = vmul.f32 %v8697_v17, %v8553_v60 }
 0x9a1   : > { %v8894_v51 = vadd.f32 %v8835_v26, %v4227_v38  ;;  %v4231_v25 = vadd.f32 %v4230_v28, %v8700_v20  ;;  %6304 = vpow2.f32 %v4492_v11  ;;  %v8932_v60 = vmul.f32 %v8697_v17, %v8556_v0 }
 0x9a2   : > { %v4350_v3 = vmin.f32 %v8888_v63, 0.0  ;;  %v8899_v62 = vadd.f32 %v8839_v46, %v4229_v30  ;;  %6306 = vtanh.f32 %v4412_v8  ;;  %v8910_v46 = vpop.eup %6292  ;;  %v4535_v30 = vadd.f32 1.0, %v6289_v57 }
 0x9a3   : > { %v4351_v1 = vmin.f32 %v8894_v51, 0.0  ;;  %v8905_v26 = vadd.f32 %v8843_v24, %v4231_v25  ;;  %6308 = vpow2.f32 %v4494_v31  ;;  %v4293_v24 = vmul.f32 %v8703_v39, %v8538_v12  ;;  %v6295_v58 = vpop.eup %6294 }
 0x9a4   : > { %v4414_v14 = vmul.f32 0.5, %v4350_v3  ;;  %v4498_v42 = vmul.f32 1.442695, %v4350_v3  ;;  %v4352_v34 = vmin.f32 %v8899_v62, 0.0  ;;  %6310 = vtanh.f32 %v4413_v54  ;;  %v6297_v6 = vpop.eup %6296 }
 0x9a5   : > { %v4415_v18 = vmul.f32 0.5, %v4351_v1  ;;  %v4234_v21 = vpop.f32.mrb[168].mxu1  ;;  %6312 = vpow2.f32 %v4496_v50  ;;  %v4500_v22 = vmul.f32 1.442695, %v4351_v1  ;;  %v4353_v45 = vmin.f32 %v8905_v26, 0.0 }
 0x9a6   : > { %v4236_v59 = vpop.f32.mrb[169].mxu1  ;;  %6314 = vtanh.f32 %v4414_v14  ;;  %v4235_v7 = vadd.f32 %v4234_v21, %v8694_v55  ;;  %v8925_v12 = vmul.f32 %v8703_v39, %v8563_v2  ;;  %v4416_v27 = vmul.f32 0.5, %v4352_v34 }
 0x9a7   : > { %v4237_v47 = vadd.f32 %v4236_v59, %v8700_v20  ;;  %v4238_v40 = vpop.f32.mrb[170].mxu1  ;;  %6316 = vpow2.f32 %v4498_v42  ;;  %v4502_v61 = vmul.f32 1.442695, %v4352_v34  ;;  %v4417_v31 = vmul.f32 0.5, %v4353_v45 }
 0x9a8   : > { %v8927_v4 = vpop.eup %6298  ;;  %v4239_v11 = vadd.f32 %v4238_v40, %v8694_v55  ;;  %v4240_v53 = vpop.f32.mrb[171].mxu1  ;;  %6318 = vtanh.f32 %v4415_v18  ;;  %v8937_v8 = vadd.f32 %v8847_v33, %v4235_v7  ;;  %v4537_v28 = vadd.f32 1.0, %v6297_v6 }
 0x9a9   : > { %v8934_v5 = vpop.eup %6300  ;;  %v8939_v2 = vadd.f32 %v4291_v29, %v4237_v47  ;;  %6320 = vpow2.f32 %v4500_v22  ;;  %v4241_v10 = vadd.f32 %v4240_v53, %v8700_v20  ;;  %v4504_v33 = vmul.f32 1.442695, %v4353_v45 }
 0x9aa   : > { %v8941_v38 = vadd.f32 %v4292_v16, %v4239_v11  ;;  %v8944_v54 = vpop.eup %6302  ;;  %v4354_v0 = vmin.f32 %v8937_v8, 0.0  ;;  %6322 = vtanh.f32 %v4416_v27  ;;  %v4297_v25 = vmul.f32 %v8703_v39, %v8566_v35 }
 0x9ab   : > { %v4355_v17 = vmin.f32 %v8939_v2, 0.0  ;;  %v8948_v56 = vpop.eup %6304  ;;  %6324 = vpow2.f32 %v4502_v61  ;;  %v8961_v29 = vadd.f32 %v4293_v24, %v4241_v10  ;;  %v4567_v42 = vmul.f32 %v8891_v43, %v4535_v30 }
 0x9ac   : > { %v8953_v44 = vpop.eup %6306  ;;  %v4356_v50 = vmin.f32 %v8941_v38, 0.0  ;;  %6326 = vtanh.f32 %v4417_v31  ;;  %v4506_v1 = vmul.f32 1.442695, %v4354_v0  ;;  %v4569_v34 = vmul.f32 %v6295_v58, %v4537_v28 }
 0x9ad   : > { %v4244_v57 = vpop.f32.mrb[172].mxu1  ;;  %v8958_v3 = vpop.eup %6308  ;;  %v4508_v39 = vmul.f32 1.442695, %v4355_v17  ;;  %v4534_v18 = vadd.f32 1.0, %v8884_v23  ;;  %6328 = vpow2.f32 %v4504_v33  ;;  %v4418_v22 = vmul.f32 0.5, %v4354_v0 }
 0x9ae   : > { %v4246_v14 = vpop.f32.mrb[173].mxu1  ;;  %v8963_v35 = vpop.eup %6310  ;;  %v4357_v45 = vmin.f32 %v8961_v29, 0.0  ;;  %v4536_v59 = vadd.f32 1.0, %v8910_v46  ;;  %v4510_v7 = vmul.f32 1.442695, %v4356_v50  ;;  %v4599_v47 = vsel %vm4375_vm2, %v8808_v49, %v4567_v42 }
 0x9af   : > { %v4248_v21 = vpop.f32.mrb[174].mxu1  ;;  %v6313_v16 = vpop.eup %6312  ;;  %v4601_v23 = vsel %vm4377_vm1, %v8817_v9, %v4569_v34  ;;  %v4566_v43 = vmul.f32 %v8878_v15, %v4534_v18  ;;  %6330 = vpow2.f32 %v4506_v1  ;;  %v4419_v40 = vmul.f32 0.5, %v4355_v17 }
 0x9b0   : > { %v4250_v6 = vpop.f32.mrb[175].mxu1  ;;  %v8969_v24 = vpop.eup %6314  ;;  %v4512_v27 = vmul.f32 1.442695, %v4357_v45  ;;  %v4657_v46 = vpack.c.bf16 %v4601_v23, %v4599_v47  ;;  %6332 = vpow2.f32 %v4508_v39  ;;  %v4420_v53 = vmul.f32 0.5, %v4356_v50 }
 0x9b1   : > { %v8978_v58 = vpop.eup %6316  ;;  %v4568_v61 = vmul.f32 %v8901_v41, %v4536_v59  ;;  %v4245_v49 = vadd.f32 %v4244_v57, %v8694_v55  ;;  %vm4379_vm3 = vcmp.gt.f32.partialorder %v8858_v52, 0.0  ;;  %v4421_v9 = vmul.f32 0.5, %v4357_v45 }
 0x9b2   : > { %v8980_v11 = vpop.eup %6318  ;;  %4825 = vmatprep.mubr.bf16.mxu0 %v4657_v46  ;;  %v4247_v15 = vadd.f32 %v4246_v14, %v8700_v20  ;;  %v4249_v10 = vadd.f32 %v4248_v21, %v8694_v55  ;;  %v4251_v0 = vadd.f32 %v4250_v6, %v8700_v20  ;;  %vm4381_vm4 = vcmp.gt.f32.partialorder %v8868_v36, 0.0 }
 0x9b3   : > { %v6321_v31 = vpop.eup %6320  ;;  %6334 = vpow2.f32 %v4510_v7  ;;  %v4598_v41 = vsel %vm4374_vm0, %v8805_v19, %v4566_v43  ;;  %v4600_v17 = vsel %vm4376_vm15, %v8814_v13, %v4568_v61  ;;  %v8996_v30 = vadd.f32 %v8919_v37, %v4245_v49 }
 0x9b4   : > { %v8998_v28 = vpop.eup %6322  ;;  %6336 = vpow2.f32 %v4512_v27  ;;  %v4656_v55 = vpack.c.bf16 %v4600_v17, %v4598_v41  ;;  %v9001_v20 = vadd.f32 %v8925_v12, %v4247_v15  ;;  %v9004_v33 = vadd.f32 %v8932_v60, %v4249_v10 }
 0x9b5   : > { %v6325_v50 = vpop.eup %6324  ;;  %vm4378_vm5 = vcmp.gt.f32.partialorder %v8855_v32, 0.0  ;;  %vm4380_vm6 = vcmp.gt.f32.partialorder %v8862_v48, 0.0  ;;  %6338 = vtanh.f32 %v4418_v22  ;;  %v4358_v19 = vmin.f32 %v8996_v30, 0.0 }
 0x9b6   : > { %v9009_v13 = vadd.f32 %v4297_v25, %v4251_v0  ;;  %v4539_v37 = vadd.f32 1.0, %v8948_v56  ;;  %v6327_v57 = vpop.eup %6326  ;;  %vm4383_vm7 = vcmp.gt.f32.partialorder %v8894_v51, 0.0  ;;  %vm4385_vm8 = vcmp.gt.f32.partialorder %v8905_v26, 0.0  ;;  %4826 = vmatmul.mubr.bf16.gmra.mrb[156].mxu0 %v4656_v55 }
 0x9b7   : > { %6340 = vtanh.f32 %v4419_v40  ;;  %v4359_v12 = vmin.f32 %v9001_v20, 0.0  ;;  %v4360_v60 = vmin.f32 %v9004_v33, 0.0  ;;  %v4541_v1 = vadd.f32 1.0, %v6313_v16  ;;  %v6329_v42 = vpop.eup %6328 }
 0x9b8   : > { %6342 = vtanh.f32 %v4420_v53  ;;  %v4422_v14 = vmul.f32 0.5, %v4358_v19  ;;  %v4514_v39 = vmul.f32 1.442695, %v4358_v19  ;;  %v4361_v25 = vmin.f32 %v9009_v13, 0.0 }
 0x9b9   : > { %6344 = vtanh.f32 %v4421_v9  ;;  %v4423_v56 = vmul.f32 0.5, %v4359_v12  ;;  %v4516_v34 = vmul.f32 1.442695, %v4359_v12  ;;  %v4424_v18 = vmul.f32 0.5, %v4360_v60  ;;  %v6331_v59 = vpop.eup %6330 }
 0x9ba   : > { %6346 = vtanh.f32 %v4422_v14  ;;  %v4518_v21 = vmul.f32 1.442695, %v4360_v60  ;;  %v4425_v22 = vmul.f32 0.5, %v4361_v25  ;;  %v4571_v45 = vmul.f32 %v8944_v54, %v4539_v37  ;;  %v6333_v47 = vpop.eup %6332 }
 0x9bb   : > { %6348 = vpow2.f32 %v4514_v39  ;;  %v4573_v6 = vmul.f32 %v8963_v35, %v4541_v1  ;;  %v4538_v16 = vadd.f32 1.0, %v8934_v5  ;;  %v4540_v7 = vadd.f32 1.0, %v8958_v3 }
 0x9bc   : > { %vm4382_vm9 = vcmp.gt.f32.partialorder %v8888_v63, 0.0  ;;  %v4520_v23 = vmul.f32 1.442695, %v4361_v25  ;;  %v4603_v43 = vsel %vm4379_vm3, %v8858_v52, %v4571_v45  ;;  %v4543_v40 = vadd.f32 1.0, %v6321_v31 }
 0x9bd   : > { %v4545_v27 = vadd.f32 1.0, %v6329_v42  ;;  %6350 = vpow2.f32 %v4516_v34  ;;  %v4605_v54 = vsel %vm4381_vm4, %v8868_v36, %v4573_v6  ;;  %v4570_v35 = vmul.f32 %v8927_v4, %v4538_v16  ;;  %v6335_v3 = vpop.eup %6334 }
 0x9be   : > { %v4572_v5 = vmul.f32 %v8953_v44, %v4540_v7  ;;  %6352 = vtanh.f32 %v4423_v56  ;;  %v4659_v46 = vpack.c.bf16 %v4605_v54, %v4603_v43  ;;  %v4575_v53 = vmul.f32 %v8980_v11, %v4543_v40  ;;  %v6337_v49 = vpop.eup %6336 }
 0x9bf   : > { %v4577_v61 = vmul.f32 %v6327_v57, %v4545_v27  ;;  %6354 = vpow2.f32 %v4518_v21  ;;  %v4602_v52 = vsel %vm4378_vm5, %v8855_v32, %v4570_v35  ;;  %v4542_v4 = vadd.f32 1.0, %v8978_v58  ;;  %v6339_v31 = vpop.eup %6338 }
 0x9c0   : > { %v4604_v36 = vsel %vm4380_vm6, %v8862_v48, %v4572_v5  ;;  %6356 = vtanh.f32 %v4424_v18  ;;  %4833 = vmatprep.mubr.bf16.mxu0 %v4659_v46  ;;  %v4607_v11 = vsel %vm4383_vm7, %v8894_v51, %v4575_v53  ;;  %v4544_v10 = vadd.f32 1.0, %v6325_v50 }
 0x9c1   : > { %v4658_v44 = vpack.c.bf16 %v4604_v36, %v4602_v52  ;;  %v4609_v9 = vsel %vm4385_vm8, %v8905_v26, %v4577_v61  ;;  %v6341_v15 = vpop.eup %6340  ;;  %6358 = vpow2.f32 %v4520_v23  ;;  %v4574_v48 = vmul.f32 %v8969_v24, %v4542_v4 }
 0x9c2   : > { %v4661_v32 = vpack.c.bf16 %v4609_v9, %v4607_v11  ;;  %v6343_v0 = vpop.eup %6342  ;;  %v4547_v58 = vadd.f32 1.0, %v6333_v47  ;;  %v4549_v41 = vadd.f32 1.0, %v6337_v49  ;;  %v4546_v17 = vadd.f32 1.0, %v6331_v59 }
 0x9c3   : > { %4834 = vmatmul.mubr.bf16.gmra.mrb[160].mxu0 %v4658_v44  ;;  %v4548_v55 = vadd.f32 1.0, %v6335_v3  ;;  %v6345_v19 = vpop.eup %6344  ;;  %vm4384_vm10 = vcmp.gt.f32.partialorder %v8899_v62, 0.0  ;;  %vm4386_vm11 = vcmp.gt.f32.partialorder %v8937_v8, 0.0  ;;  %6360 = vtanh.f32 %v4425_v22 }
 0x9c4   : > { %4841 = vmatprep.mubr.bf16.mxu0 %v4661_v32  ;;  %v4576_v51 = vmul.f32 %v8998_v28, %v4544_v10  ;;  %v6347_v26 = vpop.eup %6346  ;;  %v4579_v37 = vmul.f32 %v6341_v15, %v4547_v58  ;;  %v4581_v50 = vmul.f32 %v6345_v19, %v4549_v41  ;;  %v4578_v57 = vmul.f32 %v6339_v31, %v4546_v17 }
 0x9c5   : > { %v4580_v24 = vmul.f32 %v6343_v0, %v4548_v55  ;;  %v6349_v12 = vpop.eup %6348  ;;  %vm4387_vm12 = vcmp.gt.f32.partialorder %v8939_v2, 0.0  ;;  %vm4389_vm13 = vcmp.gt.f32.partialorder %v8961_v29, 0.0  ;;  %v4606_v60 = vsel %vm4382_vm9, %v8888_v63, %v4574_v48 }
 0x9c6   : > { %v4608_v1 = vsel %vm4384_vm10, %v8899_v62, %v4576_v51  ;;  %vm4388_vm14 = vcmp.gt.f32.partialorder %v8941_v38, 0.0  ;;  %v4611_v28 = vsel %vm4387_vm12, %v8939_v2, %v4579_v37  ;;  %v4613_v39 = vsel %vm4389_vm13, %v8961_v29, %v4581_v50 }
 0x9c7   : > { %v4660_v14 = vpack.c.bf16 %v4608_v1, %v4606_v60  ;;  %v6351_v25 = vpop.eup %6350  ;;  %v4663_v42 = vpack.c.bf16 %v4613_v39, %v4611_v28  ;;  %v4610_v56 = vsel %vm4386_vm11, %v8937_v8, %v4578_v57  ;;  %v4612_v34 = vsel %vm4388_vm14, %v8941_v38, %v4580_v24 }
 0x9c8   : > { %v4550_v18 = vadd.f32 1.0, %v6349_v12  ;;  %v6353_v21 = vpop.eup %6352  ;;  %v4662_v63 = vpack.c.bf16 %v4612_v34, %v4610_v56  ;;  %v4551_v22 = vadd.f32 1.0, %v6351_v25  ;;  %vm4390_vm0 = vcmp.gt.f32.partialorder %v8996_v30, 0.0 }
 0x9c9   : > { %v6355_v62 = vpop.eup %6354  ;;  %vm4392_vm2 = vcmp.gt.f32.partialorder %v9004_v33, 0.0  ;;  %vm4391_vm15 = vcmp.gt.f32.partialorder %v9001_v20, 0.0  ;;  %vm4393_vm1 = vcmp.gt.f32.partialorder %v9009_v13, 0.0  ;;  %vm4866_vm3 = vcmask 31744  }
 0x9ca   : > { %v6357_v45 = vpop.eup %6356  ;;  %v4552_v59 = vadd.f32 1.0, %v6355_v62  ;;  %v4582_v6 = vmul.f32 %v6347_v26, %v4550_v18  ;;  %v4583_v16 = vmul.f32 %v6353_v21, %v4551_v22 }
 0x9cb   : > { %4842 = vmatmul.mubr.bf16.gmra.mrb[164].mxu0 %v4660_v14  ;;  %v6359_v2 = vpop.eup %6358 }
 0x9cc   : > { %4849 = vmatprep.mubr.bf16.mxu0 %v4663_v42  ;;  %v4553_v29 = vadd.f32 1.0, %v6359_v2  ;;  %v4584_v7 = vmul.f32 %v6357_v45, %v4552_v59  ;;  %v4614_v38 = vsel %vm4390_vm0, %v8996_v30, %v4582_v6  ;;  %v4615_v40 = vsel %vm4391_vm15, %v9001_v20, %v4583_v16  ;;  %v9072_v30 = vld [vmem:[%s9143_s11] ss:$0 sm:$0xff] }
 0x9cd   : > { %v6361_v47 = vpop.eup %6360 }
 0x9ce   : > { %v4585_v8 = vmul.f32 %v6361_v47, %v4553_v29  ;;  %v4616_v23 = vsel %vm4392_vm2, %v9004_v33, %v4584_v7 }
 0x9cf   : > { %v4664_v43 = vpack.c.bf16 %v4616_v23, %v4614_v38 }
 0x9d0   : > { %v4617_v27 = vsel %vm4393_vm1, %v9009_v13, %v4585_v8 }
 0x9d1   : > { %v4665_v54 = vpack.c.bf16 %v4617_v27, %v4615_v40 }
 0x9d3   : > { %4850 = vmatmul.mubr.bf16.gmra.mrb[168].mxu0 %v4662_v63 }
 0x9d4   : > { %4857 = vmatprep.mubr.bf16.mxu0 %v4665_v54 }
 0x9db   : > { %4858 = vmatmul.mubr.bf16.gmra.mrb[172].mxu0 %v4664_v43 }
 0xa51   : > { %v5480_v35 = vpop.f32.mrb[144].mxu0 }
 0xa52   : > { %v5481_v33 = vpop.f32.mrb[145].mxu0 }
 0xa53   : > { %v5482_v5 = vadd.f32 %v5481_v33, %v5480_v35  ;;  %v5483_v3 = vpop.f32.mrb[146].mxu0 }
 0xa54   : > { %v5484_v20 = vpop.f32.mrb[147].mxu0 }
 0xa55   : > { %v4804_v13 = vadd.f32 %v5482_v5, %v9072_v30  ;;  %v5485_v46 = vadd.f32 %v5484_v20, %v5483_v3 }
 0xa57   : > { %4867 = vst.msk [vmem:[%s9079_s20] sm:$0xff] %vm4866_vm3, %v4804_v13  ;;  %v4807_v53 = vadd.f32 %v5485_v46, %v9072_v30 }
 0xa59   : > { %4868 = vst.msk [vmem:[%s9079_s20 + $0x8] sm:$0xff] %vm4866_vm3, %v4807_v53 }
 0xa5b   : > { %v5486_v61 = vpop.f32.mrb[148].mxu0 }
 0xa5c   : > { %v5487_v49 = vpop.f32.mrb[149].mxu0 }
 0xa5d   : > { %v5488_v52 = vadd.f32 %v5487_v49, %v5486_v61  ;;  %v5489_v36 = vpop.f32.mrb[150].mxu0 }
 0xa5e   : > { %v5490_v4 = vpop.f32.mrb[151].mxu0 }
 0xa5f   : > { %v4812_v31 = vadd.f32 %v5488_v52, %v9072_v30  ;;  %v5491_v44 = vadd.f32 %v5490_v4, %v5489_v36 }
 0xa61   : > { %4869 = vst.msk [vmem:[%s9079_s20 + $0x10] sm:$0xff] %vm4866_vm3, %v4812_v31  ;;  %v4815_v11 = vadd.f32 %v5491_v44, %v9072_v30 }
 0xa63   : > { %4870 = vst.msk [vmem:[%s9079_s20 + $0x18] sm:$0xff] %vm4866_vm3, %v4815_v11 }
 0xa71   : > { %v5492_v9 = vpop.f32.mrb[152].mxu0 }
 0xa72   : > { %v5493_v15 = vpop.f32.mrb[153].mxu0 }
 0xa73   : > { %v5494_v32 = vadd.f32 %v5493_v15, %v5492_v9  ;;  %v5495_v10 = vpop.f32.mrb[154].mxu0 }
 0xa74   : > { %v5496_v48 = vpop.f32.mrb[155].mxu0 }
 0xa75   : > { %v4820_v0 = vadd.f32 %v5494_v32, %v9072_v30  ;;  %v5497_v58 = vadd.f32 %v5496_v48, %v5495_v10 }
 0xa77   : > { %4871 = vst.msk [vmem:[%s9079_s20 + $0x20] sm:$0xff] %vm4866_vm3, %v4820_v0  ;;  %v4823_v41 = vadd.f32 %v5497_v58, %v9072_v30 }
 0xa79   : > { %4872 = vst.msk [vmem:[%s9079_s20 + $0x28] sm:$0xff] %vm4866_vm3, %v4823_v41 }
 0xa89   : > { %v5498_v17 = vpop.f32.mrb[156].mxu0 }
 0xa8a   : > { %v5499_v55 = vpop.f32.mrb[157].mxu0 }
 0xa8b   : > { %v5500_v19 = vadd.f32 %v5499_v55, %v5498_v17  ;;  %v5501_v51 = vpop.f32.mrb[158].mxu0 }
 0xa8c   : > { %v5502_v26 = vpop.f32.mrb[159].mxu0 }
 0xa8d   : > { %v4828_v37 = vadd.f32 %v5500_v19, %v9072_v30  ;;  %v5503_v50 = vadd.f32 %v5502_v26, %v5501_v51 }
 0xa8f   : > { %4873 = vst.msk [vmem:[%s9079_s20 + $0x30] sm:$0xff] %vm4866_vm3, %v4828_v37  ;;  %v4831_v57 = vadd.f32 %v5503_v50, %v9072_v30 }
 0xa91   : > { %4874 = vst.msk [vmem:[%s9079_s20 + $0x38] sm:$0xff] %vm4866_vm3, %v4831_v57 }
 0xa96   : > { %v5504_v24 = vpop.f32.mrb[160].mxu0 }
 0xa97   : > { %v5505_v12 = vpop.f32.mrb[161].mxu0 }
 0xa98   : > { %v5506_v60 = vadd.f32 %v5505_v12, %v5504_v24  ;;  %v5507_v1 = vpop.f32.mrb[162].mxu0 }
 0xa99   : > { %v5508_v14 = vpop.f32.mrb[163].mxu0 }
 0xa9a   : > { %v4836_v28 = vadd.f32 %v5506_v60, %v9072_v30  ;;  %v5509_v39 = vadd.f32 %v5508_v14, %v5507_v1 }
 0xa9c   : > { %4875 = vst.msk [vmem:[%s9079_s20 + $0x40] sm:$0xff] %vm4866_vm3, %v4836_v28  ;;  %v4839_v25 = vadd.f32 %v5509_v39, %v9072_v30 }
 0xa9e   : > { %4876 = vst.msk [vmem:[%s9079_s20 + $0x48] sm:$0xff] %vm4866_vm3, %v4839_v25  ;;  %v5510_v42 = vpop.f32.mrb[164].mxu0 }
 0xa9f   : > { %v5511_v56 = vpop.f32.mrb[165].mxu0 }
 0xaa0   : > { %v5512_v34 = vadd.f32 %v5511_v56, %v5510_v42  ;;  %v5513_v18 = vpop.f32.mrb[166].mxu0 }
 0xaa1   : > { %v5514_v21 = vpop.f32.mrb[167].mxu0 }
 0xaa2   : > { %v4844_v63 = vadd.f32 %v5512_v34, %v9072_v30  ;;  %v5515_v22 = vadd.f32 %v5514_v21, %v5513_v18 }
 0xaa4   : > { %4877 = vst.msk [vmem:[%s9079_s20 + $0x50] sm:$0xff] %vm4866_vm3, %v4844_v63  ;;  %v4847_v62 = vadd.f32 %v5515_v22, %v9072_v30 }
 0xaa6   : > { %4878 = vst.msk [vmem:[%s9079_s20 + $0x58] sm:$0xff] %vm4866_vm3, %v4847_v62  ;;  %v5516_v45 = vpop.f32.mrb[168].mxu0 }
 0xaa7   : > { %v5517_v59 = vpop.f32.mrb[169].mxu0 }
 0xaa8   : > { %v5518_v6 = vadd.f32 %v5517_v59, %v5516_v45  ;;  %v5519_v2 = vpop.f32.mrb[170].mxu0 }
 0xaa9   : > { %v5520_v29 = vpop.f32.mrb[171].mxu0 }
 0xaaa   : > { %v4852_v16 = vadd.f32 %v5518_v6, %v9072_v30  ;;  %v5521_v7 = vadd.f32 %v5520_v29, %v5519_v2 }
 0xaac   : > { %4879 = vst.msk [vmem:[%s9079_s20 + $0x60] sm:$0xff] %vm4866_vm3, %v4852_v16  ;;  %v4855_v47 = vadd.f32 %v5521_v7, %v9072_v30 }
 0xaae   : > { %4880 = vst.msk [vmem:[%s9079_s20 + $0x68] sm:$0xff] %vm4866_vm3, %v4855_v47  ;;  %v5522_v8 = vpop.f32.mrb[172].mxu0 }
 0xaaf   : > { %v5523_v38 = vpop.f32.mrb[173].mxu0 }
 0xab0   : > { %v5524_v23 = vadd.f32 %v5523_v38, %v5522_v8  ;;  %v5525_v43 = vpop.f32.mrb[174].mxu0 }
 0xab1   : > { %v5526_v40 = vpop.f32.mrb[175].mxu0 }
 0xab2   : > { %v4860_v27 = vadd.f32 %v5524_v23, %v9072_v30  ;;  %v5527_v54 = vadd.f32 %v5526_v40, %v5525_v43 }
 0xab4   : > { %4881 = vst.msk [vmem:[%s9079_s20 + $0x70] sm:$0xff] %vm4866_vm3, %v4860_v27  ;;  %v4863_v35 = vadd.f32 %v5527_v54, %v9072_v30 }
 0xab6   : > { %4882 = vst.msk [vmem:[%s9079_s20 + $0x78] sm:$0xff] %vm4866_vm3, %v4863_v35 }
 0xab7 PF: > { %s24_s21 = sadd.s32 1, %s6432_s21  }
 0xab8   : > { %p21_p7 = scmp.ge.s32.totalorder %s24_s21, 4  }
 0xaba   :  { %23 = sbr.rel (!%p21_p7) target bundleno = 2 (0x2), region = 121 }
 0xac1   :  { %4905 = vsyncpa [#allocation3], 1 }
 0xac2   :  { %4907 = vsyncpa [#allocation3 + $0x1], 1 }
 0xac3   :  { %4908 = vsyncpa [#allocation5], 1 }

</bundles_post_ra>
